<compile_context>
chip_gen: v7x
topology: tpu7x:2x2x1
jax: 0.10.0
libtpu: 0.0.40
codegen_flags: <defaults>
</compile_context>

<pallas_src>
import functools

import jax
import jax.numpy as jnp
import numpy as np
from jax.experimental import pallas as pl
from jax.experimental.pallas import tpu as pltpu

# Architecture constants of the PyTorch module (kernel_size=4, init_channels=8,
# image_channels=1, latent_dim=16, encoder 1024->256->128->16).
LATENT_DIM = 16
KS = 4
C8, C4, C2 = 64, 32, 16          # init_channels * {8, 4, 2}
IMG_CH = 1
ENC_IN, ENC_H1, ENC_H2 = 1024, 256, 128

GRID = 4                          # decoder base grid (4x4 cells)
PGRID = GRID + 2                  # zero-padded base grid (6x6)
CELLS = PGRID * PGRID             # 36 padded cells (rows) per sample


# ---------------------------------------------------------------------------
# Host-side weight preparation (all done once, numpy)
# ---------------------------------------------------------------------------
def _condensed_deconv_weight(w, b, f):
    """ConvTranspose2d(k=4, s=2, p=1) as a GEMM on a condensed (pixel-unshuffled)
    base grid.

    w: (Cin, Cout, 4, 4) PyTorch layout.  The layer input lives on the 4x4 base
    grid condensed by factor f (condensed channels ordered (ry, rx, ci)); the
    output is condensed by 2f (channels ordered (sy, sx, co)).

    Returns:
      wmat: (9 * f*f*Cin, 4*f*f*Cout), rows ordered (gy, gx, ry, rx, ci) over a
            3x3 window on the zero-padded base grid.
      bvec: (4*f*f*Cout,) bias per output column.
    """
    cin, cout = w.shape[0], w.shape[1]

    def taps(g, s):
        # contributions for condensed window offset g (0..2) and output
        # sub-position s (0..2f-1): list of (r, k) = (sub-row in source cell,
        # kernel tap index).
        out = []
        t, p = s // 2, s % 2
        for wf in range(3):
            q = t + wf - 1
            if q // f == g - 1:
                k = p + 3 - 2 * wf
                if 0 <= k <= 3:
                    out.append((q % f, k))
        return out

    wfull = np.zeros((3, 3, f, f, cin, 2 * f, 2 * f, cout), np.float32)
    for gy in range(3):
        for sy in range(2 * f):
            for ry, ky in taps(gy, sy):
                for gx in range(3):
                    for sx in range(2 * f):
                        for rx, kx in taps(gx, sx):
                            wfull[gy, gx, ry, rx, :, sy, sx, :] = w[:, :, ky, kx]
    wmat = wfull.reshape(9 * f * f * cin, 4 * f * f * cout)
    bvec = np.tile(b, 4 * f * f)                       # (sy, sx, co), co fastest
    return wmat, bvec


def prepare_params(raw):
    r = {k: np.asarray(v, np.float32) for k, v in raw.items()}
    pp = {}

    def wcast(w):
        return jnp.asarray(w, jnp.bfloat16)

    def bcast(b):
        return jnp.asarray(b, jnp.float32).reshape(1, -1)

    # Encoder linears (PyTorch Linear stores (out, in)) -> (in, out), bf16.
    pp["w1"], pp["b1"] = wcast(r["enc_fc1_w"].T), bcast(r["enc_fc1_b"])
    pp["w2"], pp["b2"] = wcast(r["enc_fc2_w"].T), bcast(r["enc_fc2_b"])

    # fc_mu / fc_log_var packed: cols [0:16] = mu, cols [128:144] = logvar.
    wml = np.zeros((ENC_H2, 256), np.float32)
    bml = np.zeros((256,), np.float32)
    wml[:, :LATENT_DIM] = r["enc_mu_w"].T
    wml[:, 128:128 + LATENT_DIM] = r["enc_lv_w"].T
    bml[:LATENT_DIM] = r["enc_mu_b"]
    bml[128:128 + LATENT_DIM] = r["enc_lv_b"]
    pp["wml"], pp["bml"] = wcast(wml), bcast(bml)

    # fc2 + dec1 merged: dec1 on a 1x1 input is h @ M1 with columns (y, x, c).
    m1 = r["dec1_w"].transpose(0, 2, 3, 1).reshape(64, KS * KS * C8)
    w_merged = r["fc2_w"].T @ m1                                   # (16, 1024)
    b_merged = r["fc2_b"] @ m1 + np.tile(r["dec1_b"], KS * KS)
    wd1 = np.zeros((128, KS * KS * C8), np.float32)                # K = z slab width
    wd1[:LATENT_DIM] = w_merged
    pp["wd1"], pp["bd1"] = wcast(wd1), bcast(b_merged)

    # Space-to-depth condensed stride-2 deconvs on the fixed 4x4 base grid.
    for idx, f in ((2, 1), (3, 2), (4, 4)):
        wmat, bvec = _condensed_deconv_weight(r[f"dec{idx}_w"], r[f"dec{idx}_b"], f)
        pp[f"wd{idx}"], pp[f"bd{idx}"] = wcast(wmat), bcast(bvec)
    return pp


# ---------------------------------------------------------------------------
# The fused Pallas kernel (encoder + reparameterize + decoder)
# ---------------------------------------------------------------------------
def _vae_kernel(x_ref, eps_ref,
                w1_ref, b1_ref, w2_ref, b2_ref, wml_ref, bml_ref,
                wd1_ref, bd1_ref, wd2_ref, bd2_ref, wd3_ref, bd3_ref,
                wd4_ref, bd4_ref,
                ml_ref, img_ref,
                buf1, buf2, buf3, *, batch):
    f32 = jnp.float32
    bf16 = jnp.bfloat16

    # ------------- Encoder: fc1 -> fc2 -> packed (mu | logvar) -------------
    h = jnp.dot(x_ref[...].astype(bf16), w1_ref[...], preferred_element_type=f32)
    h = jnp.maximum(h + b1_ref[...], 0.0).astype(bf16)
    h = jnp.dot(h, w2_ref[...], preferred_element_type=f32)
    h = jnp.maximum(h + b2_ref[...], 0.0).astype(bf16)
    ml = jnp.dot(h, wml_ref[...], preferred_element_type=f32) + bml_ref[...]
    ml_ref[...] = ml                       # cols [0:16] = mu, [128:144] = logvar

    # ------------- Reparameterize (exp on the EUP, free slot) --------------
    mu_slab = ml[:, :128]
    lv_slab = ml[:, 128:]                  # padded cols are exactly zero
    z = (mu_slab + eps_ref[...] * jnp.exp(0.5 * lv_slab)).astype(bf16)

    # ------------- fc2 + dec1 merged GEMM (columns ordered (y, x, c)) ------
    hd1 = jnp.dot(z, wd1_ref[...], preferred_element_type=f32) + bd1_ref[...]
    hd1 = jnp.maximum(hd1, 0.0)

    # Scatter into the padded base-grid layout: rows = (b, yp, xp), cols = ch.
    buf1[...] = jnp.zeros_like(buf1)
    buf2[...] = jnp.zeros_like(buf2)
    buf3[...] = jnp.zeros_like(buf3)
    for b in range(batch):
        for p in range(GRID * GRID):
            y, x = p // GRID, p % GRID
            row = b * CELLS + (y + 1) * PGRID + (x + 1)
            buf1[pl.ds(row, 1), :] = hd1[b:b + 1, C8 * p:C8 * (p + 1)]

    nrows = batch * CELLS - (2 * PGRID + 2)     # valid cells + padded filler

    def cond_deconv(in_buf, wref, bref, cin):
        """Condensed deconv: 9 accumulated MXU dots over 3x3 shifted views."""
        acc = None
        for g in range(9):
            start = (g // 3) * PGRID + (g % 3)
            a = in_buf[pl.ds(start, nrows), :].astype(bf16)
            wsub = wref[pl.ds(g * cin, cin), :]
            d = jnp.dot(a, wsub, preferred_element_type=f32)
            acc = d if acc is None else acc + d
        return acc + bref[...]

    def write_interior(out_buf, vals):
        # Valid cells of row-chunk (b, u) live at padded rows shifted by +7.
        for b in range(batch):
            for u in range(GRID):
                q0 = b * CELLS + u * PGRID
                out_buf[pl.ds(q0 + PGRID + 1, GRID), :] = vals[q0:q0 + GRID, :]

    a2 = jnp.maximum(cond_deconv(buf1, wd2_ref, bd2_ref, C8), 0.0)
    write_interior(buf2, a2)
    a3 = jnp.maximum(cond_deconv(buf2, wd3_ref, bd3_ref, 4 * C4), 0.0)
    write_interior(buf3, a3)
    a4 = jax.nn.sigmoid(cond_deconv(buf3, wd4_ref, bd4_ref, 16 * C2))
    for b in range(batch):
        for u in range(GRID):
            q0 = b * CELLS + u * PGRID
            img_ref[pl.ds(b * 16 + u * GRID, GRID), :] = a4[q0:q0 + GRID, :]


# ---------------------------------------------------------------------------
# Forward wrapper (one pallas_call + trivial XLA reshapes)
# ---------------------------------------------------------------------------
def _full_spec(shape):
    return pl.BlockSpec(shape, lambda i: (0, 0))


def vae_forward(pp, x, eps):
    B = x.shape[0]
    # PyTorch: view(-1,1,16,16) -> AdaptiveAvgPool2d((16,16)) -> reshape(-1,1024).
    # At 16x16 spatial input the adaptive pool is the identity -> plain flatten.
    # TODO(synk): AdaptiveAvgPool2d for spatial sizes other than 16x16.
    xf = x.reshape(B, ENC_IN).astype(jnp.float32)
    eps_p = jnp.pad(eps.astype(jnp.float32), ((0, 0), (0, 128 - LATENT_DIM)))

    args = (xf, eps_p,
            pp["w1"], pp["b1"], pp["w2"], pp["b2"], pp["wml"], pp["bml"],
            pp["wd1"], pp["bd1"], pp["wd2"], pp["bd2"], pp["wd3"], pp["bd3"],
            pp["wd4"], pp["bd4"])

    ml, img = pl.pallas_call(
        functools.partial(_vae_kernel, batch=B),
        out_shape=(jax.ShapeDtypeStruct((B, 256), jnp.float32),
                   jax.ShapeDtypeStruct((B * 16, 64), jnp.float32)),
        grid=(1,),
        in_specs=[_full_spec(a.shape) for a in args],
        out_specs=(_full_spec((B, 256)), _full_spec((B * 16, 64))),
        scratch_shapes=[
            pltpu.VMEM((B * CELLS, C8), jnp.float32),        # dec1 map (4x4x64)
            pltpu.VMEM((B * CELLS, 4 * C4), jnp.float32),    # dec2 map (8x8x32)
            pltpu.VMEM((B * CELLS, 16 * C2), jnp.float32),   # dec3 map (16x16x16)
        ],
        compiler_params=pltpu.CompilerParams(
            dimension_semantics=("arbitrary",)),
    )(*args)

    mu = ml[:, :LATENT_DIM]
    logvar = ml[:, 128:128 + LATENT_DIM]
    # Un-shuffle the condensed (b, u, v) x (sy, sx) slab into (B, 1, 32, 32).
    images = (img.reshape(B, GRID, GRID, 8, 8)
                 .transpose(0, 1, 3, 2, 4)
                 .reshape(B, 1, 32, 32))
    return images, mu, logvar


# ---------------------------------------------------------------------------
# Pure-JAX f32 reference of the PyTorch module (numerical verification)
# ---------------------------------------------------------------------------
def _conv_transpose2d_ref(x, w, b, stride, padding):
    k = w.shape[2]
    w_oihw = jnp.transpose(w[:, :, ::-1, ::-1], (1, 0, 2, 3))
    pad = k - 1 - padding
    out = jax.lax.conv_general_dilated(
        x, w_oihw, window_strides=(1, 1), padding=((pad, pad), (pad, pad)),
        lhs_dilation=(stride, stride), rhs_dilation=(1, 1),
        dimension_numbers=("NCHW", "OIHW", "NCHW"))
    return out + b.reshape(1, -1, 1, 1)


def vae_forward_ref(raw, x, eps):
    h = x.reshape(-1, ENC_IN)
    h = jax.nn.relu(h @ raw["enc_fc1_w"].T + raw["enc_fc1_b"])
    h = jax.nn.relu(h @ raw["enc_fc2_w"].T + raw["enc_fc2_b"])
    mu = h @ raw["enc_mu_w"].T + raw["enc_mu_b"]
    logvar = h @ raw["enc_lv_w"].T + raw["enc_lv_b"]
    z = mu + eps * jnp.exp(0.5 * logvar)
    d = (z @ raw["fc2_w"].T + raw["fc2_b"]).reshape(-1, 64, 1, 1)
    d = jax.nn.relu(_conv_transpose2d_ref(d, raw["dec1_w"], raw["dec1_b"], 1, 0))
    d = jax.nn.relu(_conv_transpose2d_ref(d, raw["dec2_w"], raw["dec2_b"], 2, 1))
    d = jax.nn.relu(_conv_transpose2d_ref(d, raw["dec3_w"], raw["dec3_b"], 2, 1))
    img = jax.nn.sigmoid(_conv_transpose2d_ref(d, raw["dec4_w"], raw["dec4_b"], 2, 1))
    return img, mu, logvar


# ---------------------------------------------------------------------------
# Deterministic PyTorch-layout parameter init
# ---------------------------------------------------------------------------
def init_raw_params(key):
    ks = jax.random.split(key, 18)

    def uni(k, shape, fan_in):
        bound = 1.0 / jnp.sqrt(jnp.float32(fan_in))
        return jax.random.uniform(k, shape, jnp.float32, -bound, bound)

    kk = KS * KS
    return {
        # Encoder
        "enc_fc1_w": uni(ks[0], (ENC_H1, ENC_IN), ENC_IN),
        "enc_fc1_b": uni(ks[1], (ENC_H1,), ENC_IN),
        "enc_fc2_w": uni(ks[2], (ENC_H2, ENC_H1), ENC_H1),
        "enc_fc2_b": uni(ks[3], (ENC_H2,), ENC_H1),
        "enc_mu_w": uni(ks[4], (LATENT_DIM, ENC_H2), ENC_H2),
        "enc_mu_b": uni(ks[5], (LATENT_DIM,), ENC_H2),
        "enc_lv_w": uni(ks[6], (LATENT_DIM, ENC_H2), ENC_H2),
        "enc_lv_b": uni(ks[7], (LATENT_DIM,), ENC_H2),
        # Decoder
        "fc2_w": uni(ks[8], (64, LATENT_DIM), LATENT_DIM),
        "fc2_b": uni(ks[9], (64,), LATENT_DIM),
        "dec1_w": uni(ks[10], (64, C8, KS, KS), 64 * kk),
        "dec1_b": uni(ks[11], (C8,), 64 * kk),
        "dec2_w": uni(ks[12], (C8, C4, KS, KS), C8 * kk),
        "dec2_b": uni(ks[13], (C4,), C8 * kk),
        "dec3_w": uni(ks[14], (C4, C2, KS, KS), C4 * kk),
        "dec3_b": uni(ks[15], (C2,), C4 * kk),
        "dec4_w": uni(ks[16], (C2, IMG_CH, KS, KS), C2 * kk),
        "dec4_b": uni(ks[17], (IMG_CH,), C2 * kk),
    }


if __name__ == "__main__":
    key = jax.random.PRNGKey(0)
    k_params, k_x, k_eps = jax.random.split(key, 3)

    raw = init_raw_params(k_params)
    params = prepare_params(raw)             # one-time host-side weight prep

    batch = 2
    x = jax.random.normal(k_x, (batch, 4, 16, 16), jnp.float32)
    eps = jax.random.normal(k_eps, (batch, LATENT_DIM), jnp.float32)

    fwd = jax.jit(vae_forward)
    images, mu, logvar = fwd(params, x, eps)
    images = jax.block_until_ready(images)

    assert images.shape == (batch, 1, 32, 32), images.shape
    assert mu.shape == (batch, LATENT_DIM) and logvar.shape == (batch, LATENT_DIM)
    assert bool(jnp.all(jnp.isfinite(images)))
    assert bool(jnp.all((images >= 0.0) & (images <= 1.0)))

    # Numerical check against the pure-JAX f32 reference (bf16 MXU, f32 accum).
    ref_img, ref_mu, ref_lv = jax.jit(vae_forward_ref)(raw, x, eps)
    assert float(jnp.max(jnp.abs(mu - ref_mu))) < 5e-2
    assert float(jnp.max(jnp.abs(logvar - ref_lv))) < 5e-2
    assert float(jnp.max(jnp.abs(images - ref_img))) < 5e-2

    print("KERNEL_OK")
</pallas_src>

<mosaic_0001>
module attributes {stable_mosaic.version = 11 : i64} {
  func.func @_vae_kernel(%arg0: i32, %arg1: memref<2x1024xf32, #tpu.memory_space<vmem>>, %arg2: memref<2x128xf32, #tpu.memory_space<vmem>>, %arg3: memref<1024x256xbf16, #tpu.memory_space<vmem>>, %arg4: memref<1x256xf32, #tpu.memory_space<vmem>>, %arg5: memref<256x128xbf16, #tpu.memory_space<vmem>>, %arg6: memref<1x128xf32, #tpu.memory_space<vmem>>, %arg7: memref<128x256xbf16, #tpu.memory_space<vmem>>, %arg8: memref<1x256xf32, #tpu.memory_space<vmem>>, %arg9: memref<128x1024xbf16, #tpu.memory_space<vmem>>, %arg10: memref<1x1024xf32, #tpu.memory_space<vmem>>, %arg11: memref<576x128xbf16, #tpu.memory_space<vmem>>, %arg12: memref<1x128xf32, #tpu.memory_space<vmem>>, %arg13: memref<1152x256xbf16, #tpu.memory_space<vmem>>, %arg14: memref<1x256xf32, #tpu.memory_space<vmem>>, %arg15: memref<2304x64xbf16, #tpu.memory_space<vmem>>, %arg16: memref<1x64xf32, #tpu.memory_space<vmem>>, %arg17: memref<2x256xf32, #tpu.memory_space<vmem>>, %arg18: memref<32x64xf32, #tpu.memory_space<vmem>>, %arg19: memref<72x64xf32, #tpu.memory_space<vmem>>, %arg20: memref<72x128xf32, #tpu.memory_space<vmem>>, %arg21: memref<72x256xf32, #tpu.memory_space<vmem>>) attributes {dimension_semantics = [#tpu.dimension_semantics<arbitrary>], iteration_bounds = array<i64: 1>, scalar_prefetch = 0 : i64, scratch_operands = 3 : i64, tpu.core_type = #tpu.core_type<tc>, window_params = [{pipeline_mode = #tpu.pipeline_mode<synchronous>, transform_indices = @transform_0, window_bounds = array<i64: 2, 1024>}, {pipeline_mode = #tpu.pipeline_mode<synchronous>, transform_indices = @transform_1, window_bounds = array<i64: 2, 128>}, {pipeline_mode = #tpu.pipeline_mode<synchronous>, transform_indices = @transform_2, window_bounds = array<i64: 1024, 256>}, {pipeline_mode = #tpu.pipeline_mode<synchronous>, transform_indices = @transform_3, window_bounds = array<i64: 1, 256>}, {pipeline_mode = #tpu.pipeline_mode<synchronous>, transform_indices = @transform_4, window_bounds = array<i64: 256, 128>}, {pipeline_mode = #tpu.pipeline_mode<synchronous>, transform_indices = @transform_5, window_bounds = array<i64: 1, 128>}, {pipeline_mode = #tpu.pipeline_mode<synchronous>, transform_indices = @transform_6, window_bounds = array<i64: 128, 256>}, {pipeline_mode = #tpu.pipeline_mode<synchronous>, transform_indices = @transform_7, window_bounds = array<i64: 1, 256>}, {pipeline_mode = #tpu.pipeline_mode<synchronous>, transform_indices = @transform_8, window_bounds = array<i64: 128, 1024>}, {pipeline_mode = #tpu.pipeline_mode<synchronous>, transform_indices = @transform_9, window_bounds = array<i64: 1, 1024>}, {pipeline_mode = #tpu.pipeline_mode<synchronous>, transform_indices = @transform_10, window_bounds = array<i64: 576, 128>}, {pipeline_mode = #tpu.pipeline_mode<synchronous>, transform_indices = @transform_11, window_bounds = array<i64: 1, 128>}, {pipeline_mode = #tpu.pipeline_mode<synchronous>, transform_indices = @transform_12, window_bounds = array<i64: 1152, 256>}, {pipeline_mode = #tpu.pipeline_mode<synchronous>, transform_indices = @transform_13, window_bounds = array<i64: 1, 256>}, {pipeline_mode = #tpu.pipeline_mode<synchronous>, transform_indices = @transform_14, window_bounds = array<i64: 2304, 64>}, {pipeline_mode = #tpu.pipeline_mode<synchronous>, transform_indices = @transform_15, window_bounds = array<i64: 1, 64>}, {pipeline_mode = #tpu.pipeline_mode<synchronous>, transform_indices = @transform_16, window_bounds = array<i64: 2, 256>}, {pipeline_mode = #tpu.pipeline_mode<synchronous>, transform_indices = @transform_17, window_bounds = array<i64: 32, 64>}]} {
    %c0 = arith.constant 0 : index
    %c0_0 = arith.constant 0 : index
    %0 = vector.load %arg1[%c0, %c0_0] : memref<2x1024xf32, #tpu.memory_space<vmem>>, vector<2x1024xf32>
    %1 = arith.truncf %0 : vector<2x1024xf32> to vector<2x1024xbf16>
    %c0_1 = arith.constant 0 : index
    %c0_2 = arith.constant 0 : index
    %2 = vector.load %arg3[%c0_1, %c0_2] : memref<1024x256xbf16, #tpu.memory_space<vmem>>, vector<1024x256xbf16>
    %cst = arith.constant dense<0.000000e+00> : vector<2x256xf32>
    %3 = tpu.matmul %1, %2, %cst {dimension_numbers = #tpu.dot_dimension_numbers<[1], [0], [0], [1], [0, 0, 1, 1], [], []>} : vector<2x1024xbf16>, vector<1024x256xbf16>, vector<2x256xf32> -> vector<2x256xf32>
    %c0_3 = arith.constant 0 : index
    %c0_4 = arith.constant 0 : index
    %4 = vector.load %arg4[%c0_3, %c0_4] : memref<1x256xf32, #tpu.memory_space<vmem>>, vector<1x256xf32>
    %5 = vector.broadcast %4 : vector<1x256xf32> to vector<2x256xf32>
    %6 = arith.addf %3, %5 : vector<2x256xf32>
    %cst_5 = arith.constant 0.000000e+00 : f32
    %7 = vector.broadcast %cst_5 : f32 to vector<2x256xf32>
    %8 = arith.maximumf %6, %7 : vector<2x256xf32>
    %9 = arith.truncf %8 : vector<2x256xf32> to vector<2x256xbf16>
    %c0_6 = arith.constant 0 : index
    %c0_7 = arith.constant 0 : index
    %10 = vector.load %arg5[%c0_6, %c0_7] : memref<256x128xbf16, #tpu.memory_space<vmem>>, vector<256x128xbf16>
    %cst_8 = arith.constant dense<0.000000e+00> : vector<2x128xf32>
    %11 = tpu.matmul %9, %10, %cst_8 {dimension_numbers = #tpu.dot_dimension_numbers<[1], [0], [0], [1], [0, 0, 1, 1], [], []>} : vector<2x256xbf16>, vector<256x128xbf16>, vector<2x128xf32> -> vector<2x128xf32>
    %c0_9 = arith.constant 0 : index
    %c0_10 = arith.constant 0 : index
    %12 = vector.load %arg6[%c0_9, %c0_10] : memref<1x128xf32, #tpu.memory_space<vmem>>, vector<1x128xf32>
    %13 = vector.broadcast %12 : vector<1x128xf32> to vector<2x128xf32>
    %14 = arith.addf %11, %13 : vector<2x128xf32>
    %cst_11 = arith.constant 0.000000e+00 : f32
    %15 = vector.broadcast %cst_11 : f32 to vector<2x128xf32>
    %16 = arith.maximumf %14, %15 : vector<2x128xf32>
    %17 = arith.truncf %16 : vector<2x128xf32> to vector<2x128xbf16>
    %c0_12 = arith.constant 0 : index
    %c0_13 = arith.constant 0 : index
    %18 = vector.load %arg7[%c0_12, %c0_13] : memref<128x256xbf16, #tpu.memory_space<vmem>>, vector<128x256xbf16>
    %cst_14 = arith.constant dense<0.000000e+00> : vector<2x256xf32>
    %19 = tpu.matmul %17, %18, %cst_14 {dimension_numbers = #tpu.dot_dimension_numbers<[1], [0], [0], [1], [0, 0, 1, 1], [], []>} : vector<2x128xbf16>, vector<128x256xbf16>, vector<2x256xf32> -> vector<2x256xf32>
    %c0_15 = arith.constant 0 : index
    %c0_16 = arith.constant 0 : index
    %20 = vector.load %arg8[%c0_15, %c0_16] : memref<1x256xf32, #tpu.memory_space<vmem>>, vector<1x256xf32>
    %21 = vector.broadcast %20 : vector<1x256xf32> to vector<2x256xf32>
    %22 = arith.addf %19, %21 : vector<2x256xf32>
    %c0_17 = arith.constant 0 : index
    %c0_18 = arith.constant 0 : index
    %23 = vector.load %arg17[%c0_17, %c0_18] : memref<2x256xf32, #tpu.memory_space<vmem>>, vector<2x256xf32>
    tpu.vector_store %arg17[%c0_17, %c0_18], %22 {strides = array<i32>} : memref<2x256xf32, #tpu.memory_space<vmem>>, vector<2x256xf32>,
    %24 = vector.extract_strided_slice %22 {offsets = [0, 0], sizes = [2, 128], strides = [1, 1]} : vector<2x256xf32> to vector<2x128xf32>
    %25 = vector.extract_strided_slice %22 {offsets = [0, 128], sizes = [2, 128], strides = [1, 1]} : vector<2x256xf32> to vector<2x128xf32>
    %c0_19 = arith.constant 0 : index
    %c0_20 = arith.constant 0 : index
    %26 = vector.load %arg2[%c0_19, %c0_20] : memref<2x128xf32, #tpu.memory_space<vmem>>, vector<2x128xf32>
    %cst_21 = arith.constant 5.000000e-01 : f32
    %27 = vector.broadcast %cst_21 : f32 to vector<2x128xf32>
    %28 = arith.mulf %27, %25 : vector<2x128xf32>
    %29 = math.exp %28 : vector<2x128xf32>
    %30 = arith.mulf %26, %29 : vector<2x128xf32>
    %31 = arith.addf %24, %30 : vector<2x128xf32>
    %32 = arith.truncf %31 : vector<2x128xf32> to vector<2x128xbf16>
    %c0_22 = arith.constant 0 : index
    %c0_23 = arith.constant 0 : index
    %33 = vector.load %arg9[%c0_22, %c0_23] : memref<128x1024xbf16, #tpu.memory_space<vmem>>, vector<128x1024xbf16>
    %cst_24 = arith.constant dense<0.000000e+00> : vector<2x1024xf32>
    %34 = tpu.matmul %32, %33, %cst_24 {dimension_numbers = #tpu.dot_dimension_numbers<[1], [0], [0], [1], [0, 0, 1, 1], [], []>} : vector<2x128xbf16>, vector<128x1024xbf16>, vector<2x1024xf32> -> vector<2x1024xf32>
    %c0_25 = arith.constant 0 : index
    %c0_26 = arith.constant 0 : index
    %35 = vector.load %arg10[%c0_25, %c0_26] : memref<1x1024xf32, #tpu.memory_space<vmem>>, vector<1x1024xf32>
    %36 = vector.broadcast %35 : vector<1x1024xf32> to vector<2x1024xf32>
    %37 = arith.addf %34, %36 : vector<2x1024xf32>
    %cst_27 = arith.constant 0.000000e+00 : f32
    %38 = vector.broadcast %cst_27 : f32 to vector<2x1024xf32>
    %39 = arith.maximumf %37, %38 : vector<2x1024xf32>
    %cst_28 = arith.constant 0.000000e+00 : f32
    %40 = vector.broadcast %cst_28 : f32 to vector<72x64xf32>
    %c0_29 = arith.constant 0 : index
    %c0_30 = arith.constant 0 : index
    %41 = vector.load %arg19[%c0_29, %c0_30] : memref<72x64xf32, #tpu.memory_space<vmem>>, vector<72x64xf32>
    tpu.vector_store %arg19[%c0_29, %c0_30], %40 {strides = array<i32>} : memref<72x64xf32, #tpu.memory_space<vmem>>, vector<72x64xf32>,
    %cst_31 = arith.constant 0.000000e+00 : f32
    %42 = vector.broadcast %cst_31 : f32 to vector<72x128xf32>
    %c0_32 = arith.constant 0 : index
    %c0_33 = arith.constant 0 : index
    %43 = vector.load %arg20[%c0_32, %c0_33] : memref<72x128xf32, #tpu.memory_space<vmem>>, vector<72x128xf32>
    tpu.vector_store %arg20[%c0_32, %c0_33], %42 {strides = array<i32>} : memref<72x128xf32, #tpu.memory_space<vmem>>, vector<72x128xf32>,
    %cst_34 = arith.constant 0.000000e+00 : f32
    %44 = vector.broadcast %cst_34 : f32 to vector<72x256xf32>
    %c0_35 = arith.constant 0 : index
    %c0_36 = arith.constant 0 : index
    %45 = vector.load %arg21[%c0_35, %c0_36] : memref<72x256xf32, #tpu.memory_space<vmem>>, vector<72x256xf32>
    tpu.vector_store %arg21[%c0_35, %c0_36], %44 {strides = array<i32>} : memref<72x256xf32, #tpu.memory_space<vmem>>, vector<72x256xf32>,
    %46 = vector.extract_strided_slice %39 {offsets = [0, 0], sizes = [1, 64], strides = [1, 1]} : vector<2x1024xf32> to vector<1x64xf32>
    %c7 = arith.constant 7 : index
    %c0_37 = arith.constant 0 : index
    %47 = vector.load %arg19[%c7, %c0_37] : memref<72x64xf32, #tpu.memory_space<vmem>>, vector<1x64xf32>
    tpu.vector_store %arg19[%c7, %c0_37], %46 {strides = array<i32>} : memref<72x64xf32, #tpu.memory_space<vmem>>, vector<1x64xf32>,
    %48 = vector.extract_strided_slice %39 {offsets = [0, 64], sizes = [1, 64], strides = [1, 1]} : vector<2x1024xf32> to vector<1x64xf32>
    %c8 = arith.constant 8 : index
    %c0_38 = arith.constant 0 : index
    %49 = vector.load %arg19[%c8, %c0_38] : memref<72x64xf32, #tpu.memory_space<vmem>>, vector<1x64xf32>
    tpu.vector_store %arg19[%c8, %c0_38], %48 {strides = array<i32>} : memref<72x64xf32, #tpu.memory_space<vmem>>, vector<1x64xf32>,
    %50 = vector.extract_strided_slice %39 {offsets = [0, 128], sizes = [1, 64], strides = [1, 1]} : vector<2x1024xf32> to vector<1x64xf32>
    %c9 = arith.constant 9 : index
    %c0_39 = arith.constant 0 : index
    %51 = vector.load %arg19[%c9, %c0_39] : memref<72x64xf32, #tpu.memory_space<vmem>>, vector<1x64xf32>
    tpu.vector_store %arg19[%c9, %c0_39], %50 {strides = array<i32>} : memref<72x64xf32, #tpu.memory_space<vmem>>, vector<1x64xf32>,
    %52 = vector.extract_strided_slice %39 {offsets = [0, 192], sizes = [1, 64], strides = [1, 1]} : vector<2x1024xf32> to vector<1x64xf32>
    %c10 = arith.constant 10 : index
    %c0_40 = arith.constant 0 : index
    %53 = vector.load %arg19[%c10, %c0_40] : memref<72x64xf32, #tpu.memory_space<vmem>>, vector<1x64xf32>
    tpu.vector_store %arg19[%c10, %c0_40], %52 {strides = array<i32>} : memref<72x64xf32, #tpu.memory_space<vmem>>, vector<1x64xf32>,
    %54 = vector.extract_strided_slice %39 {offsets = [0, 256], sizes = [1, 64], strides = [1, 1]} : vector<2x1024xf32> to vector<1x64xf32>
    %c13 = arith.constant 13 : index
    %c0_41 = arith.constant 0 : index
    %55 = vector.load %arg19[%c13, %c0_41] : memref<72x64xf32, #tpu.memory_space<vmem>>, vector<1x64xf32>
    tpu.vector_store %arg19[%c13, %c0_41], %54 {strides = array<i32>} : memref<72x64xf32, #tpu.memory_space<vmem>>, vector<1x64xf32>,
    %56 = vector.extract_strided_slice %39 {offsets = [0, 320], sizes = [1, 64], strides = [1, 1]} : vector<2x1024xf32> to vector<1x64xf32>
    %c14 = arith.constant 14 : index
    %c0_42 = arith.constant 0 : index
    %57 = vector.load %arg19[%c14, %c0_42] : memref<72x64xf32, #tpu.memory_space<vmem>>, vector<1x64xf32>
    tpu.vector_store %arg19[%c14, %c0_42], %56 {strides = array<i32>} : memref<72x64xf32, #tpu.memory_space<vmem>>, vector<1x64xf32>,
    %58 = vector.extract_strided_slice %39 {offsets = [0, 384], sizes = [1, 64], strides = [1, 1]} : vector<2x1024xf32> to vector<1x64xf32>
    %c15 = arith.constant 15 : index
    %c0_43 = arith.constant 0 : index
    %59 = vector.load %arg19[%c15, %c0_43] : memref<72x64xf32, #tpu.memory_space<vmem>>, vector<1x64xf32>
    tpu.vector_store %arg19[%c15, %c0_43], %58 {strides = array<i32>} : memref<72x64xf32, #tpu.memory_space<vmem>>, vector<1x64xf32>,
    %60 = vector.extract_strided_slice %39 {offsets = [0, 448], sizes = [1, 64], strides = [1, 1]} : vector<2x1024xf32> to vector<1x64xf32>
    %c16 = arith.constant 16 : index
    %c0_44 = arith.constant 0 : index
    %61 = vector.load %arg19[%c16, %c0_44] : memref<72x64xf32, #tpu.memory_space<vmem>>, vector<1x64xf32>
    tpu.vector_store %arg19[%c16, %c0_44], %60 {strides = array<i32>} : memref<72x64xf32, #tpu.memory_space<vmem>>, vector<1x64xf32>,
    %62 = vector.extract_strided_slice %39 {offsets = [0, 512], sizes = [1, 64], strides = [1, 1]} : vector<2x1024xf32> to vector<1x64xf32>
    %c19 = arith.constant 19 : index
    %c0_45 = arith.constant 0 : index
    %63 = vector.load %arg19[%c19, %c0_45] : memref<72x64xf32, #tpu.memory_space<vmem>>, vector<1x64xf32>
    tpu.vector_store %arg19[%c19, %c0_45], %62 {strides = array<i32>} : memref<72x64xf32, #tpu.memory_space<vmem>>, vector<1x64xf32>,
    %64 = vector.extract_strided_slice %39 {offsets = [0, 576], sizes = [1, 64], strides = [1, 1]} : vector<2x1024xf32> to vector<1x64xf32>
    %c20 = arith.constant 20 : index
    %c0_46 = arith.constant 0 : index
    %65 = vector.load %arg19[%c20, %c0_46] : memref<72x64xf32, #tpu.memory_space<vmem>>, vector<1x64xf32>
    tpu.vector_store %arg19[%c20, %c0_46], %64 {strides = array<i32>} : memref<72x64xf32, #tpu.memory_space<vmem>>, vector<1x64xf32>,
    %66 = vector.extract_strided_slice %39 {offsets = [0, 640], sizes = [1, 64], strides = [1, 1]} : vector<2x1024xf32> to vector<1x64xf32>
    %c21 = arith.constant 21 : index
    %c0_47 = arith.constant 0 : index
    %67 = vector.load %arg19[%c21, %c0_47] : memref<72x64xf32, #tpu.memory_space<vmem>>, vector<1x64xf32>
    tpu.vector_store %arg19[%c21, %c0_47], %66 {strides = array<i32>} : memref<72x64xf32, #tpu.memory_space<vmem>>, vector<1x64xf32>,
    %68 = vector.extract_strided_slice %39 {offsets = [0, 704], sizes = [1, 64], strides = [1, 1]} : vector<2x1024xf32> to vector<1x64xf32>
    %c22 = arith.constant 22 : index
    %c0_48 = arith.constant 0 : index
    %69 = vector.load %arg19[%c22, %c0_48] : memref<72x64xf32, #tpu.memory_space<vmem>>, vector<1x64xf32>
    tpu.vector_store %arg19[%c22, %c0_48], %68 {strides = array<i32>} : memref<72x64xf32, #tpu.memory_space<vmem>>, vector<1x64xf32>,
    %70 = vector.extract_strided_slice %39 {offsets = [0, 768], sizes = [1, 64], strides = [1, 1]} : vector<2x1024xf32> to vector<1x64xf32>
    %c25 = arith.constant 25 : index
    %c0_49 = arith.constant 0 : index
    %71 = vector.load %arg19[%c25, %c0_49] : memref<72x64xf32, #tpu.memory_space<vmem>>, vector<1x64xf32>
    tpu.vector_store %arg19[%c25, %c0_49], %70 {strides = array<i32>} : memref<72x64xf32, #tpu.memory_space<vmem>>, vector<1x64xf32>,
    %72 = vector.extract_strided_slice %39 {offsets = [0, 832], sizes = [1, 64], strides = [1, 1]} : vector<2x1024xf32> to vector<1x64xf32>
    %c26 = arith.constant 26 : index
    %c0_50 = arith.constant 0 : index
    %73 = vector.load %arg19[%c26, %c0_50] : memref<72x64xf32, #tpu.memory_space<vmem>>, vector<1x64xf32>
    tpu.vector_store %arg19[%c26, %c0_50], %72 {strides = array<i32>} : memref<72x64xf32, #tpu.memory_space<vmem>>, vector<1x64xf32>,
    %74 = vector.extract_strided_slice %39 {offsets = [0, 896], sizes = [1, 64], strides = [1, 1]} : vector<2x1024xf32> to vector<1x64xf32>
    %c27 = arith.constant 27 : index
    %c0_51 = arith.constant 0 : index
    %75 = vector.load %arg19[%c27, %c0_51] : memref<72x64xf32, #tpu.memory_space<vmem>>, vector<1x64xf32>
    tpu.vector_store %arg19[%c27, %c0_51], %74 {strides = array<i32>} : memref<72x64xf32, #tpu.memory_space<vmem>>, vector<1x64xf32>,
    %76 = vector.extract_strided_slice %39 {offsets = [0, 960], sizes = [1, 64], strides = [1, 1]} : vector<2x1024xf32> to vector<1x64xf32>
    %c28 = arith.constant 28 : index
    %c0_52 = arith.constant 0 : index
    %77 = vector.load %arg19[%c28, %c0_52] : memref<72x64xf32, #tpu.memory_space<vmem>>, vector<1x64xf32>
    tpu.vector_store %arg19[%c28, %c0_52], %76 {strides = array<i32>} : memref<72x64xf32, #tpu.memory_space<vmem>>, vector<1x64xf32>,
    %78 = vector.extract_strided_slice %39 {offsets = [1, 0], sizes = [1, 64], strides = [1, 1]} : vector<2x1024xf32> to vector<1x64xf32>
    %c43 = arith.constant 43 : index
    %c0_53 = arith.constant 0 : index
    %79 = vector.load %arg19[%c43, %c0_53] : memref<72x64xf32, #tpu.memory_space<vmem>>, vector<1x64xf32>
    tpu.vector_store %arg19[%c43, %c0_53], %78 {strides = array<i32>} : memref<72x64xf32, #tpu.memory_space<vmem>>, vector<1x64xf32>,
    %80 = vector.extract_strided_slice %39 {offsets = [1, 64], sizes = [1, 64], strides = [1, 1]} : vector<2x1024xf32> to vector<1x64xf32>
    %c44 = arith.constant 44 : index
    %c0_54 = arith.constant 0 : index
    %81 = vector.load %arg19[%c44, %c0_54] : memref<72x64xf32, #tpu.memory_space<vmem>>, vector<1x64xf32>
    tpu.vector_store %arg19[%c44, %c0_54], %80 {strides = array<i32>} : memref<72x64xf32, #tpu.memory_space<vmem>>, vector<1x64xf32>,
    %82 = vector.extract_strided_slice %39 {offsets = [1, 128], sizes = [1, 64], strides = [1, 1]} : vector<2x1024xf32> to vector<1x64xf32>
    %c45 = arith.constant 45 : index
    %c0_55 = arith.constant 0 : index
    %83 = vector.load %arg19[%c45, %c0_55] : memref<72x64xf32, #tpu.memory_space<vmem>>, vector<1x64xf32>
    tpu.vector_store %arg19[%c45, %c0_55], %82 {strides = array<i32>} : memref<72x64xf32, #tpu.memory_space<vmem>>, vector<1x64xf32>,
    %84 = vector.extract_strided_slice %39 {offsets = [1, 192], sizes = [1, 64], strides = [1, 1]} : vector<2x1024xf32> to vector<1x64xf32>
    %c46 = arith.constant 46 : index
    %c0_56 = arith.constant 0 : index
    %85 = vector.load %arg19[%c46, %c0_56] : memref<72x64xf32, #tpu.memory_space<vmem>>, vector<1x64xf32>
    tpu.vector_store %arg19[%c46, %c0_56], %84 {strides = array<i32>} : memref<72x64xf32, #tpu.memory_space<vmem>>, vector<1x64xf32>,
    %86 = vector.extract_strided_slice %39 {offsets = [1, 256], sizes = [1, 64], strides = [1, 1]} : vector<2x1024xf32> to vector<1x64xf32>
    %c49 = arith.constant 49 : index
    %c0_57 = arith.constant 0 : index
    %87 = vector.load %arg19[%c49, %c0_57] : memref<72x64xf32, #tpu.memory_space<vmem>>, vector<1x64xf32>
    tpu.vector_store %arg19[%c49, %c0_57], %86 {strides = array<i32>} : memref<72x64xf32, #tpu.memory_space<vmem>>, vector<1x64xf32>,
    %88 = vector.extract_strided_slice %39 {offsets = [1, 320], sizes = [1, 64], strides = [1, 1]} : vector<2x1024xf32> to vector<1x64xf32>
    %c50 = arith.constant 50 : index
    %c0_58 = arith.constant 0 : index
    %89 = vector.load %arg19[%c50, %c0_58] : memref<72x64xf32, #tpu.memory_space<vmem>>, vector<1x64xf32>
    tpu.vector_store %arg19[%c50, %c0_58], %88 {strides = array<i32>} : memref<72x64xf32, #tpu.memory_space<vmem>>, vector<1x64xf32>,
    %90 = vector.extract_strided_slice %39 {offsets = [1, 384], sizes = [1, 64], strides = [1, 1]} : vector<2x1024xf32> to vector<1x64xf32>
    %c51 = arith.constant 51 : index
    %c0_59 = arith.constant 0 : index
    %91 = vector.load %arg19[%c51, %c0_59] : memref<72x64xf32, #tpu.memory_space<vmem>>, vector<1x64xf32>
    tpu.vector_store %arg19[%c51, %c0_59], %90 {strides = array<i32>} : memref<72x64xf32, #tpu.memory_space<vmem>>, vector<1x64xf32>,
    %92 = vector.extract_strided_slice %39 {offsets = [1, 448], sizes = [1, 64], strides = [1, 1]} : vector<2x1024xf32> to vector<1x64xf32>
    %c52 = arith.constant 52 : index
    %c0_60 = arith.constant 0 : index
    %93 = vector.load %arg19[%c52, %c0_60] : memref<72x64xf32, #tpu.memory_space<vmem>>, vector<1x64xf32>
    tpu.vector_store %arg19[%c52, %c0_60], %92 {strides = array<i32>} : memref<72x64xf32, #tpu.memory_space<vmem>>, vector<1x64xf32>,
    %94 = vector.extract_strided_slice %39 {offsets = [1, 512], sizes = [1, 64], strides = [1, 1]} : vector<2x1024xf32> to vector<1x64xf32>
    %c55 = arith.constant 55 : index
    %c0_61 = arith.constant 0 : index
    %95 = vector.load %arg19[%c55, %c0_61] : memref<72x64xf32, #tpu.memory_space<vmem>>, vector<1x64xf32>
    tpu.vector_store %arg19[%c55, %c0_61], %94 {strides = array<i32>} : memref<72x64xf32, #tpu.memory_space<vmem>>, vector<1x64xf32>,
    %96 = vector.extract_strided_slice %39 {offsets = [1, 576], sizes = [1, 64], strides = [1, 1]} : vector<2x1024xf32> to vector<1x64xf32>
    %c56 = arith.constant 56 : index
    %c0_62 = arith.constant 0 : index
    %97 = vector.load %arg19[%c56, %c0_62] : memref<72x64xf32, #tpu.memory_space<vmem>>, vector<1x64xf32>
    tpu.vector_store %arg19[%c56, %c0_62], %96 {strides = array<i32>} : memref<72x64xf32, #tpu.memory_space<vmem>>, vector<1x64xf32>,
    %98 = vector.extract_strided_slice %39 {offsets = [1, 640], sizes = [1, 64], strides = [1, 1]} : vector<2x1024xf32> to vector<1x64xf32>
    %c57 = arith.constant 57 : index
    %c0_63 = arith.constant 0 : index
    %99 = vector.load %arg19[%c57, %c0_63] : memref<72x64xf32, #tpu.memory_space<vmem>>, vector<1x64xf32>
    tpu.vector_store %arg19[%c57, %c0_63], %98 {strides = array<i32>} : memref<72x64xf32, #tpu.memory_space<vmem>>, vector<1x64xf32>,
    %100 = vector.extract_strided_slice %39 {offsets = [1, 704], sizes = [1, 64], strides = [1, 1]} : vector<2x1024xf32> to vector<1x64xf32>
    %c58 = arith.constant 58 : index
    %c0_64 = arith.constant 0 : index
    %101 = vector.load %arg19[%c58, %c0_64] : memref<72x64xf32, #tpu.memory_space<vmem>>, vector<1x64xf32>
    tpu.vector_store %arg19[%c58, %c0_64], %100 {strides = array<i32>} : memref<72x64xf32, #tpu.memory_space<vmem>>, vector<1x64xf32>,
    %102 = vector.extract_strided_slice %39 {offsets = [1, 768], sizes = [1, 64], strides = [1, 1]} : vector<2x1024xf32> to vector<1x64xf32>
    %c61 = arith.constant 61 : index
    %c0_65 = arith.constant 0 : index
    %103 = vector.load %arg19[%c61, %c0_65] : memref<72x64xf32, #tpu.memory_space<vmem>>, vector<1x64xf32>
    tpu.vector_store %arg19[%c61, %c0_65], %102 {strides = array<i32>} : memref<72x64xf32, #tpu.memory_space<vmem>>, vector<1x64xf32>,
    %104 = vector.extract_strided_slice %39 {offsets = [1, 832], sizes = [1, 64], strides = [1, 1]} : vector<2x1024xf32> to vector<1x64xf32>
    %c62 = arith.constant 62 : index
    %c0_66 = arith.constant 0 : index
    %105 = vector.load %arg19[%c62, %c0_66] : memref<72x64xf32, #tpu.memory_space<vmem>>, vector<1x64xf32>
    tpu.vector_store %arg19[%c62, %c0_66], %104 {strides = array<i32>} : memref<72x64xf32, #tpu.memory_space<vmem>>, vector<1x64xf32>,
    %106 = vector.extract_strided_slice %39 {offsets = [1, 896], sizes = [1, 64], strides = [1, 1]} : vector<2x1024xf32> to vector<1x64xf32>
    %c63 = arith.constant 63 : index
    %c0_67 = arith.constant 0 : index
    %107 = vector.load %arg19[%c63, %c0_67] : memref<72x64xf32, #tpu.memory_space<vmem>>, vector<1x64xf32>
    tpu.vector_store %arg19[%c63, %c0_67], %106 {strides = array<i32>} : memref<72x64xf32, #tpu.memory_space<vmem>>, vector<1x64xf32>,
    %108 = vector.extract_strided_slice %39 {offsets = [1, 960], sizes = [1, 64], strides = [1, 1]} : vector<2x1024xf32> to vector<1x64xf32>
    %c64 = arith.constant 64 : index
    %c0_68 = arith.constant 0 : index
    %109 = vector.load %arg19[%c64, %c0_68] : memref<72x64xf32, #tpu.memory_space<vmem>>, vector<1x64xf32>
    tpu.vector_store %arg19[%c64, %c0_68], %108 {strides = array<i32>} : memref<72x64xf32, #tpu.memory_space<vmem>>, vector<1x64xf32>,
    %c0_69 = arith.constant 0 : index
    %c0_70 = arith.constant 0 : index
    %110 = vector.load %arg19[%c0_69, %c0_70] : memref<72x64xf32, #tpu.memory_space<vmem>>, vector<58x64xf32>
    %111 = arith.truncf %110 : vector<58x64xf32> to vector<58x64xbf16>
    %c0_71 = arith.constant 0 : index
    %c0_72 = arith.constant 0 : index
    %112 = vector.load %arg11[%c0_71, %c0_72] : memref<576x128xbf16, #tpu.memory_space<vmem>>, vector<64x128xbf16>
    %cst_73 = arith.constant dense<0.000000e+00> : vector<58x128xf32>
    %113 = tpu.matmul %111, %112, %cst_73 {dimension_numbers = #tpu.dot_dimension_numbers<[1], [0], [0], [1], [0, 0, 1, 1], [], []>} : vector<58x64xbf16>, vector<64x128xbf16>, vector<58x128xf32> -> vector<58x128xf32>
    %c1 = arith.constant 1 : index
    %c0_74 = arith.constant 0 : index
    %114 = vector.load %arg19[%c1, %c0_74] : memref<72x64xf32, #tpu.memory_space<vmem>>, vector<58x64xf32>
    %115 = arith.truncf %114 : vector<58x64xf32> to vector<58x64xbf16>
    %c64_75 = arith.constant 64 : index
    %c0_76 = arith.constant 0 : index
    %116 = vector.load %arg11[%c64_75, %c0_76] : memref<576x128xbf16, #tpu.memory_space<vmem>>, vector<64x128xbf16>
    %cst_77 = arith.constant dense<0.000000e+00> : vector<58x128xf32>
    %117 = tpu.matmul %115, %116, %cst_77 {dimension_numbers = #tpu.dot_dimension_numbers<[1], [0], [0], [1], [0, 0, 1, 1], [], []>} : vector<58x64xbf16>, vector<64x128xbf16>, vector<58x128xf32> -> vector<58x128xf32>
    %118 = arith.addf %113, %117 : vector<58x128xf32>
    %c2 = arith.constant 2 : index
    %c0_78 = arith.constant 0 : index
    %119 = vector.load %arg19[%c2, %c0_78] : memref<72x64xf32, #tpu.memory_space<vmem>>, vector<58x64xf32>
    %120 = arith.truncf %119 : vector<58x64xf32> to vector<58x64xbf16>
    %c128 = arith.constant 128 : index
    %c0_79 = arith.constant 0 : index
    %121 = vector.load %arg11[%c128, %c0_79] : memref<576x128xbf16, #tpu.memory_space<vmem>>, vector<64x128xbf16>
    %cst_80 = arith.constant dense<0.000000e+00> : vector<58x128xf32>
    %122 = tpu.matmul %120, %121, %cst_80 {dimension_numbers = #tpu.dot_dimension_numbers<[1], [0], [0], [1], [0, 0, 1, 1], [], []>} : vector<58x64xbf16>, vector<64x128xbf16>, vector<58x128xf32> -> vector<58x128xf32>
    %123 = arith.addf %118, %122 : vector<58x128xf32>
    %c6 = arith.constant 6 : index
    %c0_81 = arith.constant 0 : index
    %124 = vector.load %arg19[%c6, %c0_81] : memref<72x64xf32, #tpu.memory_space<vmem>>, vector<58x64xf32>
    %125 = arith.truncf %124 : vector<58x64xf32> to vector<58x64xbf16>
    %c192 = arith.constant 192 : index
    %c0_82 = arith.constant 0 : index
    %126 = vector.load %arg11[%c192, %c0_82] : memref<576x128xbf16, #tpu.memory_space<vmem>>, vector<64x128xbf16>
    %cst_83 = arith.constant dense<0.000000e+00> : vector<58x128xf32>
    %127 = tpu.matmul %125, %126, %cst_83 {dimension_numbers = #tpu.dot_dimension_numbers<[1], [0], [0], [1], [0, 0, 1, 1], [], []>} : vector<58x64xbf16>, vector<64x128xbf16>, vector<58x128xf32> -> vector<58x128xf32>
    %128 = arith.addf %123, %127 : vector<58x128xf32>
    %c7_84 = arith.constant 7 : index
    %c0_85 = arith.constant 0 : index
    %129 = vector.load %arg19[%c7_84, %c0_85] : memref<72x64xf32, #tpu.memory_space<vmem>>, vector<58x64xf32>
    %130 = arith.truncf %129 : vector<58x64xf32> to vector<58x64xbf16>
    %c256 = arith.constant 256 : index
    %c0_86 = arith.constant 0 : index
    %131 = vector.load %arg11[%c256, %c0_86] : memref<576x128xbf16, #tpu.memory_space<vmem>>, vector<64x128xbf16>
    %cst_87 = arith.constant dense<0.000000e+00> : vector<58x128xf32>
    %132 = tpu.matmul %130, %131, %cst_87 {dimension_numbers = #tpu.dot_dimension_numbers<[1], [0], [0], [1], [0, 0, 1, 1], [], []>} : vector<58x64xbf16>, vector<64x128xbf16>, vector<58x128xf32> -> vector<58x128xf32>
    %133 = arith.addf %128, %132 : vector<58x128xf32>
    %c8_88 = arith.constant 8 : index
    %c0_89 = arith.constant 0 : index
    %134 = vector.load %arg19[%c8_88, %c0_89] : memref<72x64xf32, #tpu.memory_space<vmem>>, vector<58x64xf32>
    %135 = arith.truncf %134 : vector<58x64xf32> to vector<58x64xbf16>
    %c320 = arith.constant 320 : index
    %c0_90 = arith.constant 0 : index
    %136 = vector.load %arg11[%c320, %c0_90] : memref<576x128xbf16, #tpu.memory_space<vmem>>, vector<64x128xbf16>
    %cst_91 = arith.constant dense<0.000000e+00> : vector<58x128xf32>
    %137 = tpu.matmul %135, %136, %cst_91 {dimension_numbers = #tpu.dot_dimension_numbers<[1], [0], [0], [1], [0, 0, 1, 1], [], []>} : vector<58x64xbf16>, vector<64x128xbf16>, vector<58x128xf32> -> vector<58x128xf32>
    %138 = arith.addf %133, %137 : vector<58x128xf32>
    %c12 = arith.constant 12 : index
    %c0_92 = arith.constant 0 : index
    %139 = vector.load %arg19[%c12, %c0_92] : memref<72x64xf32, #tpu.memory_space<vmem>>, vector<58x64xf32>
    %140 = arith.truncf %139 : vector<58x64xf32> to vector<58x64xbf16>
    %c384 = arith.constant 384 : index
    %c0_93 = arith.constant 0 : index
    %141 = vector.load %arg11[%c384, %c0_93] : memref<576x128xbf16, #tpu.memory_space<vmem>>, vector<64x128xbf16>
    %cst_94 = arith.constant dense<0.000000e+00> : vector<58x128xf32>
    %142 = tpu.matmul %140, %141, %cst_94 {dimension_numbers = #tpu.dot_dimension_numbers<[1], [0], [0], [1], [0, 0, 1, 1], [], []>} : vector<58x64xbf16>, vector<64x128xbf16>, vector<58x128xf32> -> vector<58x128xf32>
    %143 = arith.addf %138, %142 : vector<58x128xf32>
    %c13_95 = arith.constant 13 : index
    %c0_96 = arith.constant 0 : index
    %144 = vector.load %arg19[%c13_95, %c0_96] : memref<72x64xf32, #tpu.memory_space<vmem>>, vector<58x64xf32>
    %145 = arith.truncf %144 : vector<58x64xf32> to vector<58x64xbf16>
    %c448 = arith.constant 448 : index
    %c0_97 = arith.constant 0 : index
    %146 = vector.load %arg11[%c448, %c0_97] : memref<576x128xbf16, #tpu.memory_space<vmem>>, vector<64x128xbf16>
    %cst_98 = arith.constant dense<0.000000e+00> : vector<58x128xf32>
    %147 = tpu.matmul %145, %146, %cst_98 {dimension_numbers = #tpu.dot_dimension_numbers<[1], [0], [0], [1], [0, 0, 1, 1], [], []>} : vector<58x64xbf16>, vector<64x128xbf16>, vector<58x128xf32> -> vector<58x128xf32>
    %148 = arith.addf %143, %147 : vector<58x128xf32>
    %c14_99 = arith.constant 14 : index
    %c0_100 = arith.constant 0 : index
    %149 = vector.load %arg19[%c14_99, %c0_100] : memref<72x64xf32, #tpu.memory_space<vmem>>, vector<58x64xf32>
    %150 = arith.truncf %149 : vector<58x64xf32> to vector<58x64xbf16>
    %c512 = arith.constant 512 : index
    %c0_101 = arith.constant 0 : index
    %151 = vector.load %arg11[%c512, %c0_101] : memref<576x128xbf16, #tpu.memory_space<vmem>>, vector<64x128xbf16>
    %cst_102 = arith.constant dense<0.000000e+00> : vector<58x128xf32>
    %152 = tpu.matmul %150, %151, %cst_102 {dimension_numbers = #tpu.dot_dimension_numbers<[1], [0], [0], [1], [0, 0, 1, 1], [], []>} : vector<58x64xbf16>, vector<64x128xbf16>, vector<58x128xf32> -> vector<58x128xf32>
    %153 = arith.addf %148, %152 : vector<58x128xf32>
    %c0_103 = arith.constant 0 : index
    %c0_104 = arith.constant 0 : index
    %154 = vector.load %arg12[%c0_103, %c0_104] : memref<1x128xf32, #tpu.memory_space<vmem>>, vector<1x128xf32>
    %155 = vector.broadcast %154 : vector<1x128xf32> to vector<58x128xf32>
    %156 = arith.addf %153, %155 : vector<58x128xf32>
    %cst_105 = arith.constant 0.000000e+00 : f32
    %157 = vector.broadcast %cst_105 : f32 to vector<58x128xf32>
    %158 = arith.maximumf %156, %157 : vector<58x128xf32>
    %159 = vector.extract_strided_slice %158 {offsets = [0, 0], sizes = [4, 128], strides = [1, 1]} : vector<58x128xf32> to vector<4x128xf32>
    %c7_106 = arith.constant 7 : index
    %c0_107 = arith.constant 0 : index
    %160 = vector.load %arg20[%c7_106, %c0_107] : memref<72x128xf32, #tpu.memory_space<vmem>>, vector<4x128xf32>
    tpu.vector_store %arg20[%c7_106, %c0_107], %159 {strides = array<i32>} : memref<72x128xf32, #tpu.memory_space<vmem>>, vector<4x128xf32>,
    %161 = vector.extract_strided_slice %158 {offsets = [6, 0], sizes = [4, 128], strides = [1, 1]} : vector<58x128xf32> to vector<4x128xf32>
    %c13_108 = arith.constant 13 : index
    %c0_109 = arith.constant 0 : index
    %162 = vector.load %arg20[%c13_108, %c0_109] : memref<72x128xf32, #tpu.memory_space<vmem>>, vector<4x128xf32>
    tpu.vector_store %arg20[%c13_108, %c0_109], %161 {strides = array<i32>} : memref<72x128xf32, #tpu.memory_space<vmem>>, vector<4x128xf32>,
    %163 = vector.extract_strided_slice %158 {offsets = [12, 0], sizes = [4, 128], strides = [1, 1]} : vector<58x128xf32> to vector<4x128xf32>
    %c19_110 = arith.constant 19 : index
    %c0_111 = arith.constant 0 : index
    %164 = vector.load %arg20[%c19_110, %c0_111] : memref<72x128xf32, #tpu.memory_space<vmem>>, vector<4x128xf32>
    tpu.vector_store %arg20[%c19_110, %c0_111], %163 {strides = array<i32>} : memref<72x128xf32, #tpu.memory_space<vmem>>, vector<4x128xf32>,
    %165 = vector.extract_strided_slice %158 {offsets = [18, 0], sizes = [4, 128], strides = [1, 1]} : vector<58x128xf32> to vector<4x128xf32>
    %c25_112 = arith.constant 25 : index
    %c0_113 = arith.constant 0 : index
    %166 = vector.load %arg20[%c25_112, %c0_113] : memref<72x128xf32, #tpu.memory_space<vmem>>, vector<4x128xf32>
    tpu.vector_store %arg20[%c25_112, %c0_113], %165 {strides = array<i32>} : memref<72x128xf32, #tpu.memory_space<vmem>>, vector<4x128xf32>,
    %167 = vector.extract_strided_slice %158 {offsets = [36, 0], sizes = [4, 128], strides = [1, 1]} : vector<58x128xf32> to vector<4x128xf32>
    %c43_114 = arith.constant 43 : index
    %c0_115 = arith.constant 0 : index
    %168 = vector.load %arg20[%c43_114, %c0_115] : memref<72x128xf32, #tpu.memory_space<vmem>>, vector<4x128xf32>
    tpu.vector_store %arg20[%c43_114, %c0_115], %167 {strides = array<i32>} : memref<72x128xf32, #tpu.memory_space<vmem>>, vector<4x128xf32>,
    %169 = vector.extract_strided_slice %158 {offsets = [42, 0], sizes = [4, 128], strides = [1, 1]} : vector<58x128xf32> to vector<4x128xf32>
    %c49_116 = arith.constant 49 : index
    %c0_117 = arith.constant 0 : index
    %170 = vector.load %arg20[%c49_116, %c0_117] : memref<72x128xf32, #tpu.memory_space<vmem>>, vector<4x128xf32>
    tpu.vector_store %arg20[%c49_116, %c0_117], %169 {strides = array<i32>} : memref<72x128xf32, #tpu.memory_space<vmem>>, vector<4x128xf32>,
    %171 = vector.extract_strided_slice %158 {offsets = [48, 0], sizes = [4, 128], strides = [1, 1]} : vector<58x128xf32> to vector<4x128xf32>
    %c55_118 = arith.constant 55 : index
    %c0_119 = arith.constant 0 : index
    %172 = vector.load %arg20[%c55_118, %c0_119] : memref<72x128xf32, #tpu.memory_space<vmem>>, vector<4x128xf32>
    tpu.vector_store %arg20[%c55_118, %c0_119], %171 {strides = array<i32>} : memref<72x128xf32, #tpu.memory_space<vmem>>, vector<4x128xf32>,
    %173 = vector.extract_strided_slice %158 {offsets = [54, 0], sizes = [4, 128], strides = [1, 1]} : vector<58x128xf32> to vector<4x128xf32>
    %c61_120 = arith.constant 61 : index
    %c0_121 = arith.constant 0 : index
    %174 = vector.load %arg20[%c61_120, %c0_121] : memref<72x128xf32, #tpu.memory_space<vmem>>, vector<4x128xf32>
    tpu.vector_store %arg20[%c61_120, %c0_121], %173 {strides = array<i32>} : memref<72x128xf32, #tpu.memory_space<vmem>>, vector<4x128xf32>,
    %c0_122 = arith.constant 0 : index
    %c0_123 = arith.constant 0 : index
    %175 = vector.load %arg20[%c0_122, %c0_123] : memref<72x128xf32, #tpu.memory_space<vmem>>, vector<58x128xf32>
    %176 = arith.truncf %175 : vector<58x128xf32> to vector<58x128xbf16>
    %c0_124 = arith.constant 0 : index
    %c0_125 = arith.constant 0 : index
    %177 = vector.load %arg13[%c0_124, %c0_125] : memref<1152x256xbf16, #tpu.memory_space<vmem>>, vector<128x256xbf16>
    %cst_126 = arith.constant dense<0.000000e+00> : vector<58x256xf32>
    %178 = tpu.matmul %176, %177, %cst_126 {dimension_numbers = #tpu.dot_dimension_numbers<[1], [0], [0], [1], [0, 0, 1, 1], [], []>} : vector<58x128xbf16>, vector<128x256xbf16>, vector<58x256xf32> -> vector<58x256xf32>
    %c1_127 = arith.constant 1 : index
    %c0_128 = arith.constant 0 : index
    %179 = vector.load %arg20[%c1_127, %c0_128] : memref<72x128xf32, #tpu.memory_space<vmem>>, vector<58x128xf32>
    %180 = arith.truncf %179 : vector<58x128xf32> to vector<58x128xbf16>
    %c128_129 = arith.constant 128 : index
    %c0_130 = arith.constant 0 : index
    %181 = vector.load %arg13[%c128_129, %c0_130] : memref<1152x256xbf16, #tpu.memory_space<vmem>>, vector<128x256xbf16>
    %cst_131 = arith.constant dense<0.000000e+00> : vector<58x256xf32>
    %182 = tpu.matmul %180, %181, %cst_131 {dimension_numbers = #tpu.dot_dimension_numbers<[1], [0], [0], [1], [0, 0, 1, 1], [], []>} : vector<58x128xbf16>, vector<128x256xbf16>, vector<58x256xf32> -> vector<58x256xf32>
    %183 = arith.addf %178, %182 : vector<58x256xf32>
    %c2_132 = arith.constant 2 : index
    %c0_133 = arith.constant 0 : index
    %184 = vector.load %arg20[%c2_132, %c0_133] : memref<72x128xf32, #tpu.memory_space<vmem>>, vector<58x128xf32>
    %185 = arith.truncf %184 : vector<58x128xf32> to vector<58x128xbf16>
    %c256_134 = arith.constant 256 : index
    %c0_135 = arith.constant 0 : index
    %186 = vector.load %arg13[%c256_134, %c0_135] : memref<1152x256xbf16, #tpu.memory_space<vmem>>, vector<128x256xbf16>
    %cst_136 = arith.constant dense<0.000000e+00> : vector<58x256xf32>
    %187 = tpu.matmul %185, %186, %cst_136 {dimension_numbers = #tpu.dot_dimension_numbers<[1], [0], [0], [1], [0, 0, 1, 1], [], []>} : vector<58x128xbf16>, vector<128x256xbf16>, vector<58x256xf32> -> vector<58x256xf32>
    %188 = arith.addf %183, %187 : vector<58x256xf32>
    %c6_137 = arith.constant 6 : index
    %c0_138 = arith.constant 0 : index
    %189 = vector.load %arg20[%c6_137, %c0_138] : memref<72x128xf32, #tpu.memory_space<vmem>>, vector<58x128xf32>
    %190 = arith.truncf %189 : vector<58x128xf32> to vector<58x128xbf16>
    %c384_139 = arith.constant 384 : index
    %c0_140 = arith.constant 0 : index
    %191 = vector.load %arg13[%c384_139, %c0_140] : memref<1152x256xbf16, #tpu.memory_space<vmem>>, vector<128x256xbf16>
    %cst_141 = arith.constant dense<0.000000e+00> : vector<58x256xf32>
    %192 = tpu.matmul %190, %191, %cst_141 {dimension_numbers = #tpu.dot_dimension_numbers<[1], [0], [0], [1], [0, 0, 1, 1], [], []>} : vector<58x128xbf16>, vector<128x256xbf16>, vector<58x256xf32> -> vector<58x256xf32>
    %193 = arith.addf %188, %192 : vector<58x256xf32>
    %c7_142 = arith.constant 7 : index
    %c0_143 = arith.constant 0 : index
    %194 = vector.load %arg20[%c7_142, %c0_143] : memref<72x128xf32, #tpu.memory_space<vmem>>, vector<58x128xf32>
    %195 = arith.truncf %194 : vector<58x128xf32> to vector<58x128xbf16>
    %c512_144 = arith.constant 512 : index
    %c0_145 = arith.constant 0 : index
    %196 = vector.load %arg13[%c512_144, %c0_145] : memref<1152x256xbf16, #tpu.memory_space<vmem>>, vector<128x256xbf16>
    %cst_146 = arith.constant dense<0.000000e+00> : vector<58x256xf32>
    %197 = tpu.matmul %195, %196, %cst_146 {dimension_numbers = #tpu.dot_dimension_numbers<[1], [0], [0], [1], [0, 0, 1, 1], [], []>} : vector<58x128xbf16>, vector<128x256xbf16>, vector<58x256xf32> -> vector<58x256xf32>
    %198 = arith.addf %193, %197 : vector<58x256xf32>
    %c8_147 = arith.constant 8 : index
    %c0_148 = arith.constant 0 : index
    %199 = vector.load %arg20[%c8_147, %c0_148] : memref<72x128xf32, #tpu.memory_space<vmem>>, vector<58x128xf32>
    %200 = arith.truncf %199 : vector<58x128xf32> to vector<58x128xbf16>
    %c640 = arith.constant 640 : index
    %c0_149 = arith.constant 0 : index
    %201 = vector.load %arg13[%c640, %c0_149] : memref<1152x256xbf16, #tpu.memory_space<vmem>>, vector<128x256xbf16>
    %cst_150 = arith.constant dense<0.000000e+00> : vector<58x256xf32>
    %202 = tpu.matmul %200, %201, %cst_150 {dimension_numbers = #tpu.dot_dimension_numbers<[1], [0], [0], [1], [0, 0, 1, 1], [], []>} : vector<58x128xbf16>, vector<128x256xbf16>, vector<58x256xf32> -> vector<58x256xf32>
    %203 = arith.addf %198, %202 : vector<58x256xf32>
    %c12_151 = arith.constant 12 : index
    %c0_152 = arith.constant 0 : index
    %204 = vector.load %arg20[%c12_151, %c0_152] : memref<72x128xf32, #tpu.memory_space<vmem>>, vector<58x128xf32>
    %205 = arith.truncf %204 : vector<58x128xf32> to vector<58x128xbf16>
    %c768 = arith.constant 768 : index
    %c0_153 = arith.constant 0 : index
    %206 = vector.load %arg13[%c768, %c0_153] : memref<1152x256xbf16, #tpu.memory_space<vmem>>, vector<128x256xbf16>
    %cst_154 = arith.constant dense<0.000000e+00> : vector<58x256xf32>
    %207 = tpu.matmul %205, %206, %cst_154 {dimension_numbers = #tpu.dot_dimension_numbers<[1], [0], [0], [1], [0, 0, 1, 1], [], []>} : vector<58x128xbf16>, vector<128x256xbf16>, vector<58x256xf32> -> vector<58x256xf32>
    %208 = arith.addf %203, %207 : vector<58x256xf32>
    %c13_155 = arith.constant 13 : index
    %c0_156 = arith.constant 0 : index
    %209 = vector.load %arg20[%c13_155, %c0_156] : memref<72x128xf32, #tpu.memory_space<vmem>>, vector<58x128xf32>
    %210 = arith.truncf %209 : vector<58x128xf32> to vector<58x128xbf16>
    %c896 = arith.constant 896 : index
    %c0_157 = arith.constant 0 : index
    %211 = vector.load %arg13[%c896, %c0_157] : memref<1152x256xbf16, #tpu.memory_space<vmem>>, vector<128x256xbf16>
    %cst_158 = arith.constant dense<0.000000e+00> : vector<58x256xf32>
    %212 = tpu.matmul %210, %211, %cst_158 {dimension_numbers = #tpu.dot_dimension_numbers<[1], [0], [0], [1], [0, 0, 1, 1], [], []>} : vector<58x128xbf16>, vector<128x256xbf16>, vector<58x256xf32> -> vector<58x256xf32>
    %213 = arith.addf %208, %212 : vector<58x256xf32>
    %c14_159 = arith.constant 14 : index
    %c0_160 = arith.constant 0 : index
    %214 = vector.load %arg20[%c14_159, %c0_160] : memref<72x128xf32, #tpu.memory_space<vmem>>, vector<58x128xf32>
    %215 = arith.truncf %214 : vector<58x128xf32> to vector<58x128xbf16>
    %c1024 = arith.constant 1024 : index
    %c0_161 = arith.constant 0 : index
    %216 = vector.load %arg13[%c1024, %c0_161] : memref<1152x256xbf16, #tpu.memory_space<vmem>>, vector<128x256xbf16>
    %cst_162 = arith.constant dense<0.000000e+00> : vector<58x256xf32>
    %217 = tpu.matmul %215, %216, %cst_162 {dimension_numbers = #tpu.dot_dimension_numbers<[1], [0], [0], [1], [0, 0, 1, 1], [], []>} : vector<58x128xbf16>, vector<128x256xbf16>, vector<58x256xf32> -> vector<58x256xf32>
    %218 = arith.addf %213, %217 : vector<58x256xf32>
    %c0_163 = arith.constant 0 : index
    %c0_164 = arith.constant 0 : index
    %219 = vector.load %arg14[%c0_163, %c0_164] : memref<1x256xf32, #tpu.memory_space<vmem>>, vector<1x256xf32>
    %220 = vector.broadcast %219 : vector<1x256xf32> to vector<58x256xf32>
    %221 = arith.addf %218, %220 : vector<58x256xf32>
    %cst_165 = arith.constant 0.000000e+00 : f32
    %222 = vector.broadcast %cst_165 : f32 to vector<58x256xf32>
    %223 = arith.maximumf %221, %222 : vector<58x256xf32>
    %224 = vector.extract_strided_slice %223 {offsets = [0, 0], sizes = [4, 256], strides = [1, 1]} : vector<58x256xf32> to vector<4x256xf32>
    %c7_166 = arith.constant 7 : index
    %c0_167 = arith.constant 0 : index
    %225 = vector.load %arg21[%c7_166, %c0_167] : memref<72x256xf32, #tpu.memory_space<vmem>>, vector<4x256xf32>
    tpu.vector_store %arg21[%c7_166, %c0_167], %224 {strides = array<i32>} : memref<72x256xf32, #tpu.memory_space<vmem>>, vector<4x256xf32>,
    %226 = vector.extract_strided_slice %223 {offsets = [6, 0], sizes = [4, 256], strides = [1, 1]} : vector<58x256xf32> to vector<4x256xf32>
    %c13_168 = arith.constant 13 : index
    %c0_169 = arith.constant 0 : index
    %227 = vector.load %arg21[%c13_168, %c0_169] : memref<72x256xf32, #tpu.memory_space<vmem>>, vector<4x256xf32>
    tpu.vector_store %arg21[%c13_168, %c0_169], %226 {strides = array<i32>} : memref<72x256xf32, #tpu.memory_space<vmem>>, vector<4x256xf32>,
    %228 = vector.extract_strided_slice %223 {offsets = [12, 0], sizes = [4, 256], strides = [1, 1]} : vector<58x256xf32> to vector<4x256xf32>
    %c19_170 = arith.constant 19 : index
    %c0_171 = arith.constant 0 : index
    %229 = vector.load %arg21[%c19_170, %c0_171] : memref<72x256xf32, #tpu.memory_space<vmem>>, vector<4x256xf32>
    tpu.vector_store %arg21[%c19_170, %c0_171], %228 {strides = array<i32>} : memref<72x256xf32, #tpu.memory_space<vmem>>, vector<4x256xf32>,
    %230 = vector.extract_strided_slice %223 {offsets = [18, 0], sizes = [4, 256], strides = [1, 1]} : vector<58x256xf32> to vector<4x256xf32>
    %c25_172 = arith.constant 25 : index
    %c0_173 = arith.constant 0 : index
    %231 = vector.load %arg21[%c25_172, %c0_173] : memref<72x256xf32, #tpu.memory_space<vmem>>, vector<4x256xf32>
    tpu.vector_store %arg21[%c25_172, %c0_173], %230 {strides = array<i32>} : memref<72x256xf32, #tpu.memory_space<vmem>>, vector<4x256xf32>,
    %232 = vector.extract_strided_slice %223 {offsets = [36, 0], sizes = [4, 256], strides = [1, 1]} : vector<58x256xf32> to vector<4x256xf32>
    %c43_174 = arith.constant 43 : index
    %c0_175 = arith.constant 0 : index
    %233 = vector.load %arg21[%c43_174, %c0_175] : memref<72x256xf32, #tpu.memory_space<vmem>>, vector<4x256xf32>
    tpu.vector_store %arg21[%c43_174, %c0_175], %232 {strides = array<i32>} : memref<72x256xf32, #tpu.memory_space<vmem>>, vector<4x256xf32>,
    %234 = vector.extract_strided_slice %223 {offsets = [42, 0], sizes = [4, 256], strides = [1, 1]} : vector<58x256xf32> to vector<4x256xf32>
    %c49_176 = arith.constant 49 : index
    %c0_177 = arith.constant 0 : index
    %235 = vector.load %arg21[%c49_176, %c0_177] : memref<72x256xf32, #tpu.memory_space<vmem>>, vector<4x256xf32>
    tpu.vector_store %arg21[%c49_176, %c0_177], %234 {strides = array<i32>} : memref<72x256xf32, #tpu.memory_space<vmem>>, vector<4x256xf32>,
    %236 = vector.extract_strided_slice %223 {offsets = [48, 0], sizes = [4, 256], strides = [1, 1]} : vector<58x256xf32> to vector<4x256xf32>
    %c55_178 = arith.constant 55 : index
    %c0_179 = arith.constant 0 : index
    %237 = vector.load %arg21[%c55_178, %c0_179] : memref<72x256xf32, #tpu.memory_space<vmem>>, vector<4x256xf32>
    tpu.vector_store %arg21[%c55_178, %c0_179], %236 {strides = array<i32>} : memref<72x256xf32, #tpu.memory_space<vmem>>, vector<4x256xf32>,
    %238 = vector.extract_strided_slice %223 {offsets = [54, 0], sizes = [4, 256], strides = [1, 1]} : vector<58x256xf32> to vector<4x256xf32>
    %c61_180 = arith.constant 61 : index
    %c0_181 = arith.constant 0 : index
    %239 = vector.load %arg21[%c61_180, %c0_181] : memref<72x256xf32, #tpu.memory_space<vmem>>, vector<4x256xf32>
    tpu.vector_store %arg21[%c61_180, %c0_181], %238 {strides = array<i32>} : memref<72x256xf32, #tpu.memory_space<vmem>>, vector<4x256xf32>,
    %c0_182 = arith.constant 0 : index
    %c0_183 = arith.constant 0 : index
    %240 = vector.load %arg21[%c0_182, %c0_183] : memref<72x256xf32, #tpu.memory_space<vmem>>, vector<58x256xf32>
    %241 = arith.truncf %240 : vector<58x256xf32> to vector<58x256xbf16>
    %c0_184 = arith.constant 0 : index
    %c0_185 = arith.constant 0 : index
    %242 = vector.load %arg15[%c0_184, %c0_185] : memref<2304x64xbf16, #tpu.memory_space<vmem>>, vector<256x64xbf16>
    %cst_186 = arith.constant dense<0.000000e+00> : vector<58x64xf32>
    %243 = tpu.matmul %241, %242, %cst_186 {dimension_numbers = #tpu.dot_dimension_numbers<[1], [0], [0], [1], [0, 0, 1, 1], [], []>} : vector<58x256xbf16>, vector<256x64xbf16>, vector<58x64xf32> -> vector<58x64xf32>
    %c1_187 = arith.constant 1 : index
    %c0_188 = arith.constant 0 : index
    %244 = vector.load %arg21[%c1_187, %c0_188] : memref<72x256xf32, #tpu.memory_space<vmem>>, vector<58x256xf32>
    %245 = arith.truncf %244 : vector<58x256xf32> to vector<58x256xbf16>
    %c256_189 = arith.constant 256 : index
    %c0_190 = arith.constant 0 : index
    %246 = vector.load %arg15[%c256_189, %c0_190] : memref<2304x64xbf16, #tpu.memory_space<vmem>>, vector<256x64xbf16>
    %cst_191 = arith.constant dense<0.000000e+00> : vector<58x64xf32>
    %247 = tpu.matmul %245, %246, %cst_191 {dimension_numbers = #tpu.dot_dimension_numbers<[1], [0], [0], [1], [0, 0, 1, 1], [], []>} : vector<58x256xbf16>, vector<256x64xbf16>, vector<58x64xf32> -> vector<58x64xf32>
    %248 = arith.addf %243, %247 : vector<58x64xf32>
    %c2_192 = arith.constant 2 : index
    %c0_193 = arith.constant 0 : index
    %249 = vector.load %arg21[%c2_192, %c0_193] : memref<72x256xf32, #tpu.memory_space<vmem>>, vector<58x256xf32>
    %250 = arith.truncf %249 : vector<58x256xf32> to vector<58x256xbf16>
    %c512_194 = arith.constant 512 : index
    %c0_195 = arith.constant 0 : index
    %251 = vector.load %arg15[%c512_194, %c0_195] : memref<2304x64xbf16, #tpu.memory_space<vmem>>, vector<256x64xbf16>
    %cst_196 = arith.constant dense<0.000000e+00> : vector<58x64xf32>
    %252 = tpu.matmul %250, %251, %cst_196 {dimension_numbers = #tpu.dot_dimension_numbers<[1], [0], [0], [1], [0, 0, 1, 1], [], []>} : vector<58x256xbf16>, vector<256x64xbf16>, vector<58x64xf32> -> vector<58x64xf32>
    %253 = arith.addf %248, %252 : vector<58x64xf32>
    %c6_197 = arith.constant 6 : index
    %c0_198 = arith.constant 0 : index
    %254 = vector.load %arg21[%c6_197, %c0_198] : memref<72x256xf32, #tpu.memory_space<vmem>>, vector<58x256xf32>
    %255 = arith.truncf %254 : vector<58x256xf32> to vector<58x256xbf16>
    %c768_199 = arith.constant 768 : index
    %c0_200 = arith.constant 0 : index
    %256 = vector.load %arg15[%c768_199, %c0_200] : memref<2304x64xbf16, #tpu.memory_space<vmem>>, vector<256x64xbf16>
    %cst_201 = arith.constant dense<0.000000e+00> : vector<58x64xf32>
    %257 = tpu.matmul %255, %256, %cst_201 {dimension_numbers = #tpu.dot_dimension_numbers<[1], [0], [0], [1], [0, 0, 1, 1], [], []>} : vector<58x256xbf16>, vector<256x64xbf16>, vector<58x64xf32> -> vector<58x64xf32>
    %258 = arith.addf %253, %257 : vector<58x64xf32>
    %c7_202 = arith.constant 7 : index
    %c0_203 = arith.constant 0 : index
    %259 = vector.load %arg21[%c7_202, %c0_203] : memref<72x256xf32, #tpu.memory_space<vmem>>, vector<58x256xf32>
    %260 = arith.truncf %259 : vector<58x256xf32> to vector<58x256xbf16>
    %c1024_204 = arith.constant 1024 : index
    %c0_205 = arith.constant 0 : index
    %261 = vector.load %arg15[%c1024_204, %c0_205] : memref<2304x64xbf16, #tpu.memory_space<vmem>>, vector<256x64xbf16>
    %cst_206 = arith.constant dense<0.000000e+00> : vector<58x64xf32>
    %262 = tpu.matmul %260, %261, %cst_206 {dimension_numbers = #tpu.dot_dimension_numbers<[1], [0], [0], [1], [0, 0, 1, 1], [], []>} : vector<58x256xbf16>, vector<256x64xbf16>, vector<58x64xf32> -> vector<58x64xf32>
    %263 = arith.addf %258, %262 : vector<58x64xf32>
    %c8_207 = arith.constant 8 : index
    %c0_208 = arith.constant 0 : index
    %264 = vector.load %arg21[%c8_207, %c0_208] : memref<72x256xf32, #tpu.memory_space<vmem>>, vector<58x256xf32>
    %265 = arith.truncf %264 : vector<58x256xf32> to vector<58x256xbf16>
    %c1280 = arith.constant 1280 : index
    %c0_209 = arith.constant 0 : index
    %266 = vector.load %arg15[%c1280, %c0_209] : memref<2304x64xbf16, #tpu.memory_space<vmem>>, vector<256x64xbf16>
    %cst_210 = arith.constant dense<0.000000e+00> : vector<58x64xf32>
    %267 = tpu.matmul %265, %266, %cst_210 {dimension_numbers = #tpu.dot_dimension_numbers<[1], [0], [0], [1], [0, 0, 1, 1], [], []>} : vector<58x256xbf16>, vector<256x64xbf16>, vector<58x64xf32> -> vector<58x64xf32>
    %268 = arith.addf %263, %267 : vector<58x64xf32>
    %c12_211 = arith.constant 12 : index
    %c0_212 = arith.constant 0 : index
    %269 = vector.load %arg21[%c12_211, %c0_212] : memref<72x256xf32, #tpu.memory_space<vmem>>, vector<58x256xf32>
    %270 = arith.truncf %269 : vector<58x256xf32> to vector<58x256xbf16>
    %c1536 = arith.constant 1536 : index
    %c0_213 = arith.constant 0 : index
    %271 = vector.load %arg15[%c1536, %c0_213] : memref<2304x64xbf16, #tpu.memory_space<vmem>>, vector<256x64xbf16>
    %cst_214 = arith.constant dense<0.000000e+00> : vector<58x64xf32>
    %272 = tpu.matmul %270, %271, %cst_214 {dimension_numbers = #tpu.dot_dimension_numbers<[1], [0], [0], [1], [0, 0, 1, 1], [], []>} : vector<58x256xbf16>, vector<256x64xbf16>, vector<58x64xf32> -> vector<58x64xf32>
    %273 = arith.addf %268, %272 : vector<58x64xf32>
    %c13_215 = arith.constant 13 : index
    %c0_216 = arith.constant 0 : index
    %274 = vector.load %arg21[%c13_215, %c0_216] : memref<72x256xf32, #tpu.memory_space<vmem>>, vector<58x256xf32>
    %275 = arith.truncf %274 : vector<58x256xf32> to vector<58x256xbf16>
    %c1792 = arith.constant 1792 : index
    %c0_217 = arith.constant 0 : index
    %276 = vector.load %arg15[%c1792, %c0_217] : memref<2304x64xbf16, #tpu.memory_space<vmem>>, vector<256x64xbf16>
    %cst_218 = arith.constant dense<0.000000e+00> : vector<58x64xf32>
    %277 = tpu.matmul %275, %276, %cst_218 {dimension_numbers = #tpu.dot_dimension_numbers<[1], [0], [0], [1], [0, 0, 1, 1], [], []>} : vector<58x256xbf16>, vector<256x64xbf16>, vector<58x64xf32> -> vector<58x64xf32>
    %278 = arith.addf %273, %277 : vector<58x64xf32>
    %c14_219 = arith.constant 14 : index
    %c0_220 = arith.constant 0 : index
    %279 = vector.load %arg21[%c14_219, %c0_220] : memref<72x256xf32, #tpu.memory_space<vmem>>, vector<58x256xf32>
    %280 = arith.truncf %279 : vector<58x256xf32> to vector<58x256xbf16>
    %c2048 = arith.constant 2048 : index
    %c0_221 = arith.constant 0 : index
    %281 = vector.load %arg15[%c2048, %c0_221] : memref<2304x64xbf16, #tpu.memory_space<vmem>>, vector<256x64xbf16>
    %cst_222 = arith.constant dense<0.000000e+00> : vector<58x64xf32>
    %282 = tpu.matmul %280, %281, %cst_222 {dimension_numbers = #tpu.dot_dimension_numbers<[1], [0], [0], [1], [0, 0, 1, 1], [], []>} : vector<58x256xbf16>, vector<256x64xbf16>, vector<58x64xf32> -> vector<58x64xf32>
    %283 = arith.addf %278, %282 : vector<58x64xf32>
    %c0_223 = arith.constant 0 : index
    %c0_224 = arith.constant 0 : index
    %284 = vector.load %arg16[%c0_223, %c0_224] : memref<1x64xf32, #tpu.memory_space<vmem>>, vector<1x64xf32>
    %285 = vector.broadcast %284 : vector<1x64xf32> to vector<58x64xf32>
    %286 = arith.addf %283, %285 : vector<58x64xf32>
    %287 = arith.negf %286 : vector<58x64xf32>
    %288 = math.exp %287 : vector<58x64xf32>
    %cst_225 = arith.constant 1.000000e+00 : f32
    %289 = vector.broadcast %cst_225 : f32 to vector<58x64xf32>
    %290 = arith.addf %289, %288 : vector<58x64xf32>
    %291 = arith.divf %289, %290 : vector<58x64xf32>
    %292 = vector.extract_strided_slice %291 {offsets = [0, 0], sizes = [4, 64], strides = [1, 1]} : vector<58x64xf32> to vector<4x64xf32>
    %c0_226 = arith.constant 0 : index
    %c0_227 = arith.constant 0 : index
    %293 = vector.load %arg18[%c0_226, %c0_227] : memref<32x64xf32, #tpu.memory_space<vmem>>, vector<4x64xf32>
    tpu.vector_store %arg18[%c0_226, %c0_227], %292 {strides = array<i32>} : memref<32x64xf32, #tpu.memory_space<vmem>>, vector<4x64xf32>,
    %294 = vector.extract_strided_slice %291 {offsets = [6, 0], sizes = [4, 64], strides = [1, 1]} : vector<58x64xf32> to vector<4x64xf32>
    %c4 = arith.constant 4 : index
    %c0_228 = arith.constant 0 : index
    %295 = vector.load %arg18[%c4, %c0_228] : memref<32x64xf32, #tpu.memory_space<vmem>>, vector<4x64xf32>
    tpu.vector_store %arg18[%c4, %c0_228], %294 {strides = array<i32>} : memref<32x64xf32, #tpu.memory_space<vmem>>, vector<4x64xf32>,
    %296 = vector.extract_strided_slice %291 {offsets = [12, 0], sizes = [4, 64], strides = [1, 1]} : vector<58x64xf32> to vector<4x64xf32>
    %c8_229 = arith.constant 8 : index
    %c0_230 = arith.constant 0 : index
    %297 = vector.load %arg18[%c8_229, %c0_230] : memref<32x64xf32, #tpu.memory_space<vmem>>, vector<4x64xf32>
    tpu.vector_store %arg18[%c8_229, %c0_230], %296 {strides = array<i32>} : memref<32x64xf32, #tpu.memory_space<vmem>>, vector<4x64xf32>,
    %298 = vector.extract_strided_slice %291 {offsets = [18, 0], sizes = [4, 64], strides = [1, 1]} : vector<58x64xf32> to vector<4x64xf32>
    %c12_231 = arith.constant 12 : index
    %c0_232 = arith.constant 0 : index
    %299 = vector.load %arg18[%c12_231, %c0_232] : memref<32x64xf32, #tpu.memory_space<vmem>>, vector<4x64xf32>
    tpu.vector_store %arg18[%c12_231, %c0_232], %298 {strides = array<i32>} : memref<32x64xf32, #tpu.memory_space<vmem>>, vector<4x64xf32>,
    %300 = vector.extract_strided_slice %291 {offsets = [36, 0], sizes = [4, 64], strides = [1, 1]} : vector<58x64xf32> to vector<4x64xf32>
    %c16_233 = arith.constant 16 : index
    %c0_234 = arith.constant 0 : index
    %301 = vector.load %arg18[%c16_233, %c0_234] : memref<32x64xf32, #tpu.memory_space<vmem>>, vector<4x64xf32>
    tpu.vector_store %arg18[%c16_233, %c0_234], %300 {strides = array<i32>} : memref<32x64xf32, #tpu.memory_space<vmem>>, vector<4x64xf32>,
    %302 = vector.extract_strided_slice %291 {offsets = [42, 0], sizes = [4, 64], strides = [1, 1]} : vector<58x64xf32> to vector<4x64xf32>
    %c20_235 = arith.constant 20 : index
    %c0_236 = arith.constant 0 : index
    %303 = vector.load %arg18[%c20_235, %c0_236] : memref<32x64xf32, #tpu.memory_space<vmem>>, vector<4x64xf32>
    tpu.vector_store %arg18[%c20_235, %c0_236], %302 {strides = array<i32>} : memref<32x64xf32, #tpu.memory_space<vmem>>, vector<4x64xf32>,
    %304 = vector.extract_strided_slice %291 {offsets = [48, 0], sizes = [4, 64], strides = [1, 1]} : vector<58x64xf32> to vector<4x64xf32>
    %c24 = arith.constant 24 : index
    %c0_237 = arith.constant 0 : index
    %305 = vector.load %arg18[%c24, %c0_237] : memref<32x64xf32, #tpu.memory_space<vmem>>, vector<4x64xf32>
    tpu.vector_store %arg18[%c24, %c0_237], %304 {strides = array<i32>} : memref<32x64xf32, #tpu.memory_space<vmem>>, vector<4x64xf32>,
    %306 = vector.extract_strided_slice %291 {offsets = [54, 0], sizes = [4, 64], strides = [1, 1]} : vector<58x64xf32> to vector<4x64xf32>
    %c28_238 = arith.constant 28 : index
    %c0_239 = arith.constant 0 : index
    %307 = vector.load %arg18[%c28_238, %c0_239] : memref<32x64xf32, #tpu.memory_space<vmem>>, vector<4x64xf32>
    tpu.vector_store %arg18[%c28_238, %c0_239], %306 {strides = array<i32>} : memref<32x64xf32, #tpu.memory_space<vmem>>, vector<4x64xf32>,
    return
  }
  func.func @transform_0(%arg0: i32) -> (i32, i32) {
    %c0_i32 = arith.constant 0 : i32
    %c0_i32_0 = arith.constant 0 : i32
    %c0_i32_1 = arith.constant 0 : i32
    return %c0_i32, %c0_i32_0 : i32, i32
  }
  func.func @transform_1(%arg0: i32) -> (i32, i32) {
    %c0_i32 = arith.constant 0 : i32
    %c0_i32_0 = arith.constant 0 : i32
    %c0_i32_1 = arith.constant 0 : i32
    return %c0_i32, %c0_i32_0 : i32, i32
  }
  func.func @transform_2(%arg0: i32) -> (i32, i32) {
    %c0_i32 = arith.constant 0 : i32
    %c0_i32_0 = arith.constant 0 : i32
    %c0_i32_1 = arith.constant 0 : i32
    return %c0_i32, %c0_i32_0 : i32, i32
  }
  func.func @transform_3(%arg0: i32) -> (i32, i32) {
    %c0_i32 = arith.constant 0 : i32
    %c0_i32_0 = arith.constant 0 : i32
    %c0_i32_1 = arith.constant 0 : i32
    return %c0_i32, %c0_i32_0 : i32, i32
  }
  func.func @transform_4(%arg0: i32) -> (i32, i32) {
    %c0_i32 = arith.constant 0 : i32
    %c0_i32_0 = arith.constant 0 : i32
    %c0_i32_1 = arith.constant 0 : i32
    return %c0_i32, %c0_i32_0 : i32, i32
  }
  func.func @transform_5(%arg0: i32) -> (i32, i32) {
    %c0_i32 = arith.constant 0 : i32
    %c0_i32_0 = arith.constant 0 : i32
    %c0_i32_1 = arith.constant 0 : i32
    return %c0_i32, %c0_i32_0 : i32, i32
  }
  func.func @transform_6(%arg0: i32) -> (i32, i32) {
    %c0_i32 = arith.constant 0 : i32
    %c0_i32_0 = arith.constant 0 : i32
    %c0_i32_1 = arith.constant 0 : i32
    return %c0_i32, %c0_i32_0 : i32, i32
  }
  func.func @transform_7(%arg0: i32) -> (i32, i32) {
    %c0_i32 = arith.constant 0 : i32
    %c0_i32_0 = arith.constant 0 : i32
    %c0_i32_1 = arith.constant 0 : i32
    return %c0_i32, %c0_i32_0 : i32, i32
  }
  func.func @transform_8(%arg0: i32) -> (i32, i32) {
    %c0_i32 = arith.constant 0 : i32
    %c0_i32_0 = arith.constant 0 : i32
    %c0_i32_1 = arith.constant 0 : i32
    return %c0_i32, %c0_i32_0 : i32, i32
  }
  func.func @transform_9(%arg0: i32) -> (i32, i32) {
    %c0_i32 = arith.constant 0 : i32
    %c0_i32_0 = arith.constant 0 : i32
    %c0_i32_1 = arith.constant 0 : i32
    return %c0_i32, %c0_i32_0 : i32, i32
  }
  func.func @transform_10(%arg0: i32) -> (i32, i32) {
    %c0_i32 = arith.constant 0 : i32
    %c0_i32_0 = arith.constant 0 : i32
    %c0_i32_1 = arith.constant 0 : i32
    return %c0_i32, %c0_i32_0 : i32, i32
  }
  func.func @transform_11(%arg0: i32) -> (i32, i32) {
    %c0_i32 = arith.constant 0 : i32
    %c0_i32_0 = arith.constant 0 : i32
    %c0_i32_1 = arith.constant 0 : i32
    return %c0_i32, %c0_i32_0 : i32, i32
  }
  func.func @transform_12(%arg0: i32) -> (i32, i32) {
    %c0_i32 = arith.constant 0 : i32
    %c0_i32_0 = arith.constant 0 : i32
    %c0_i32_1 = arith.constant 0 : i32
    return %c0_i32, %c0_i32_0 : i32, i32
  }
  func.func @transform_13(%arg0: i32) -> (i32, i32) {
    %c0_i32 = arith.constant 0 : i32
    %c0_i32_0 = arith.constant 0 : i32
    %c0_i32_1 = arith.constant 0 : i32
    return %c0_i32, %c0_i32_0 : i32, i32
  }
  func.func @transform_14(%arg0: i32) -> (i32, i32) {
    %c0_i32 = arith.constant 0 : i32
    %c0_i32_0 = arith.constant 0 : i32
    %c0_i32_1 = arith.constant 0 : i32
    return %c0_i32, %c0_i32_0 : i32, i32
  }
  func.func @transform_15(%arg0: i32) -> (i32, i32) {
    %c0_i32 = arith.constant 0 : i32
    %c0_i32_0 = arith.constant 0 : i32
    %c0_i32_1 = arith.constant 0 : i32
    return %c0_i32, %c0_i32_0 : i32, i32
  }
  func.func @transform_16(%arg0: i32) -> (i32, i32) {
    %c0_i32 = arith.constant 0 : i32
    %c0_i32_0 = arith.constant 0 : i32
    %c0_i32_1 = arith.constant 0 : i32
    return %c0_i32, %c0_i32_0 : i32, i32
  }
  func.func @transform_17(%arg0: i32) -> (i32, i32) {
    %c0_i32 = arith.constant 0 : i32
    %c0_i32_0 = arith.constant 0 : i32
    %c0_i32_1 = arith.constant 0 : i32
    return %c0_i32, %c0_i32_0 : i32, i32
  }
}

</mosaic_0001>

<bundles_post_ra>
// kernel: vae_forward.1
= control target key start
LH: loop header
LB: loop body
LE: loop exit
PB: predicated region body
PF: predicated region fallthrough
CT: control target
= control target key end

     0   :  { %s11627_s0 = inlined_call_operand.vmem [shape: f32[2,1024], index: 0, kind: input, shape index: {}]   ;;  %s11628_s1 = inlined_call_operand.vmem [shape: f32[2,128], index: 1, kind: input, shape index: {}]   ;;  %s11629_s2 = inlined_call_operand.hbm [shape: bf16[1024,256], index: 2, kind: input, shape index: {}]   ;;  %s11630_s3 = inlined_call_operand.vmem [shape: f32[1,256], index: 3, kind: input, shape index: {}]   ;;  %s11631_s4 = inlined_call_operand.vmem [shape: bf16[256,128], index: 4, kind: input, shape index: {}]   ;;  %s11632_s5 = inlined_call_operand.vmem [shape: f32[1,128], index: 5, kind: input, shape index: {}]   ;;  %s11633_s6 = inlined_call_operand.hbm [shape: bf16[128,256], index: 6, kind: input, shape index: {}]   ;;  %s11634_s7 = inlined_call_operand.vmem [shape: f32[1,256], index: 7, kind: input, shape index: {}]   ;;  %s11635_s8 = inlined_call_operand.vmem [shape: bf16[128,1024], index: 8, kind: input, shape index: {}]   ;;  %s11636_s9 = inlined_call_operand.vmem [shape: f32[1,1024], index: 9, kind: input, shape index: {}]   ;;  %s11637_s10 = inlined_call_operand.hbm [shape: bf16[576,128], index: 10, kind: input, shape index: {}]   ;;  %s11638_s11 = inlined_call_operand.vmem [shape: f32[1,128], index: 11, kind: input, shape index: {}]   ;;  %s11639_s12 = inlined_call_operand.vmem [shape: bf16[1152,256], index: 12, kind: input, shape index: {}]   ;;  %s11640_s13 = inlined_call_operand.vmem [shape: f32[1,256], index: 13, kind: input, shape index: {}]   ;;  %s11641_s14 = inlined_call_operand.vmem [shape: bf16[2304,64], index: 14, kind: input, shape index: {}]   ;;  %s11642_s15 = inlined_call_operand.vmem [shape: f32[1,64], index: 15, kind: input, shape index: {}]   ;;  %s11643_s16 = inlined_call_operand.vmem [shape: f32[2,256], index: 16, kind: output, shape index: {0}]   ;;  %s11644_s17 = inlined_call_operand.vmem [shape: f32[32,64], index: 17, kind: output, shape index: {1}]  }
   0x1   :  { %11649 = sst [smem:[#allocation12_spill]] %s11627_s0 }
   0x2   :  { %11650 = sst [smem:[#allocation13_spill]] %s11628_s1 }
   0x3   :  { %23 = vsyncpa [#allocation6], 0 }
   0x4   :  { %24 = vsyncpa [#allocation8], 0  ;;  %s9547_s24 = smov [#allocation7]   ;;  %s9548_s26 = smov [#allocation5]  }
   0x5   :  { %s52_s25 = sshll.u32 %s9547_s24, 4  ;;  %s34_s27 = sshll.u32 %s9548_s26, 4  ;;  %s53_s25 = int_to_ptr.vmem [resolvable:$true] %s52_s25  ;;  %s9647_s27 = int_to_ptr.vmem [resolvable:$true] %s34_s27 }
   0x6   :  { %s9477_s0 = scalar_lea.hbm %s11633_s6, 2048 }
   0x7   :  { %p9478_p0 = scmp.ne.s32.totalorder %s11633_s6, %s9477_s0  ;;  %p9481_p1 = scmp.lt.u32.totalorder %s9477_s0, %s11633_s6 }
   0x9   :  { %p9483_p2 = pnand %p9481_p1, %p9478_p0 }
   0xb   :  { %9486 = shalt.err (!%p9483_p2)
}
   0xc   :  { %s9487_s20 = scalar_lea.vmem %s53_s25, 2048  ;;  %p9492_p4 = scmp.lt.s32.totalorder %s53_s25, %s53_s25 }
   0xd   :  { %p9488_p3 = scmp.ne.s32.totalorder %s53_s25, %s9487_s20  ;;  %p9493_p5 = scmp.lt.s32.totalorder %s9487_s20, %s9487_s20 }
   0xf   :  { %p9494_p6 = por %p9493_p5, %p9492_p4 }
  0x11   :  { %p9495_p7 = pnand %p9494_p6, %p9488_p3 }
  0x13   :  { %9498 = shalt.err (!%p9495_p7)
}
  0x14   :  { %s9549_s21 = smov 128   ;;  %s9550_s22 = smov 8  }
  0x15   :  { %58 = dma.hbm_to_vmem [thread:$0]  %s11633_s6, 2048, %s53_s25, [#allocation8], %s9549_s21, %s9549_s21, %s9550_s22  }
  0x16   :  { %s9499_s29 = scalar_lea.hbm %s11629_s2, 16384 }
  0x17   :  { %p9500_p8 = scmp.ne.s32.totalorder %s11629_s2, %s9499_s29  ;;  %p9503_p9 = scmp.lt.u32.totalorder %s9499_s29, %s11629_s2 }
  0x19   :  { %p9505_p10 = pnand %p9503_p9, %p9500_p8 }
  0x1b   :  { %9508 = shalt.err (!%p9505_p10)
}
  0x1c   :  { %s9509_s1 = scalar_lea.vmem %s9647_s27, 16384  ;;  %p9514_p12 = scmp.lt.s32.totalorder %s9647_s27, %s9647_s27 }
  0x1d   :  { %p9510_p11 = scmp.ne.s32.totalorder %s9647_s27, %s9509_s1  ;;  %p9515_p13 = scmp.lt.s32.totalorder %s9509_s1, %s9509_s1 }
  0x1f   :  { %p9516_p0 = por %p9515_p13, %p9514_p12 }
  0x21   :  { %p9517_p1 = pnand %p9516_p0, %p9510_p11 }
  0x23   :  { %9520 = shalt.err (!%p9517_p1)
}
  0x24   :  { %40 = dma.hbm_to_vmem [thread:$0]  %s11629_s2, 16384, %s9647_s27, [#allocation6], %s9549_s21, %s9549_s21, %s9550_s22  }
  0x25   :  { %s9551_s20 = smov [#allocation9]   ;;  %s9521_s28 = scalar_lea.hbm %s11637_s10, 4608 }
  0x26   :  { %s70_s23 = sshll.u32 %s9551_s20, 4  ;;  %p9522_p2 = scmp.ne.s32.totalorder %s11637_s10, %s9521_s28  ;;  %s71_s23 = int_to_ptr.vmem [resolvable:$true] %s70_s23 }
  0x27   :  { %p9525_p3 = scmp.lt.u32.totalorder %s9521_s28, %s11637_s10 }
  0x29   :  { %p9527_p4 = pnand %p9525_p3, %p9522_p2 }
  0x2b   :  { %9530 = shalt.err (!%p9527_p4)
}
  0x2c   :  { %s9531_s19 = scalar_lea.vmem %s71_s23, 4608  ;;  %p9536_p6 = scmp.lt.s32.totalorder %s71_s23, %s71_s23 }
  0x2d   :  { %p9532_p5 = scmp.ne.s32.totalorder %s71_s23, %s9531_s19  ;;  %p9537_p7 = scmp.lt.s32.totalorder %s9531_s19, %s9531_s19 }
  0x2f   :  { %p9538_p8 = por %p9537_p7, %p9536_p6 }
  0x31   :  { %p9539_p9 = pnand %p9538_p8, %p9532_p5 }
  0x33   :  { %9542 = shalt.err (!%p9539_p9)
}
  0x34   :  { %s9552_s2 = smov 64   ;;  %s9553_s27 = smov 4  }
  0x35   :  { %76 = dma.hbm_to_vmem [thread:$0]  %s11637_s10, 4608, %s71_s23, [#allocation8], %s9552_s2, %s9552_s2, %s9553_s27  }
  0x36   :  { %9543 = dma.done.wait [#allocation6], 16384  }
  0x37   :  { %9544 = vsyncadd [#allocation6], 4294950912 }
  0x38   :  { %9545 = dma.done.wait [#allocation8], 6656  }
  0x39   :  { %9546 = vsyncadd [#allocation8], 4294960640  ;;  %v8812_v0 = vld [vmem:[#allocation5 + $0x4] ss:$8 sps:$4 sm:$0xff]   ;;  %v8814_v1 = vld [vmem:[#allocation5] ss:$8 sps:$4 sm:$0xff]   ;;  %v105_v9 = vlaneseq }
  0x3a   :  { %931 = vmatprep.subr.bf16.mxu0 %v8812_v0  ;;  %v8815_v2 = vld [vmem:[#allocation5 + $0x14] ss:$8 sps:$4 sm:$0xff]   ;;  %v8817_v3 = vld [vmem:[#allocation5 + $0x10] ss:$8 sps:$4 sm:$0xff]   ;;  %v8818_v4 = vld [vmem:[#allocation5 + $0x24] ss:$8 sps:$4 sm:$0xff]  }
  0x3b   :  { %932 = vmatpush1.bf16.msra.mxu0 %v8814_v1  ;;  %v8820_v5 = vld [vmem:[#allocation5 + $0x20] ss:$8 sps:$4 sm:$0xff]   ;;  %v8821_v6 = vld [vmem:[#allocation5 + $0x34] ss:$8 sps:$4 sm:$0xff]   ;;  %v9554_v7 = vmov 1983009808  }
  0x3c   :  { %933 = vmatprep.subr.bf16.mxu0 %v8815_v2  ;;  %v103_v8 = vunpack.c.l.s4 %v9554_v7  ;;  %v8823_v10 = vld [vmem:[#allocation5 + $0x30] ss:$8 sps:$4 sm:$0xff]   ;;  %v8824_v11 = vld [vmem:[#allocation5 + $0x44] ss:$8 sps:$4 sm:$0xff]   ;;  %v9692_v13 = vshrl.u32 %v105_v9, 7  ;;  %s11651_s6 = sld [smem:[#allocation12_spill]] }
  0x3d   :  { %v8826_v14 = vld [vmem:[#allocation5 + $0x40] ss:$8 sps:$4 sm:$0xff]   ;;  %v8827_v15 = vld [vmem:[#allocation5 + $0x54] ss:$8 sps:$4 sm:$0xff]   ;;  %v8829_v17 = vld [vmem:[#allocation5 + $0x50] ss:$8 sps:$4 sm:$0xff]  }
  0x3e   :  { %v104_v12 = vunpack.c.0.s8 %v103_v8  ;;  %v8830_v18 = vld [vmem:[#allocation5 + $0x64] ss:$8 sps:$4 sm:$0xff]   ;;  %v8832_v21 = vld [vmem:[#allocation5 + $0x60] ss:$8 sps:$4 sm:$0xff]   ;;  %v8833_v22 = vld [vmem:[#allocation5 + $0x74] ss:$8 sps:$4 sm:$0xff]  }
  0x3f   :  { %934 = vmatpush1.bf16.msra.mxu0 %v8817_v3  ;;  %v8835_v25 = vld [vmem:[#allocation5 + $0x70] ss:$8 sps:$4 sm:$0xff]   ;;  %v8836_v26 = vld [vmem:[#allocation5 + $0x84] ss:$8 sps:$4 sm:$0xff]   ;;  %v8838_v27 = vld [vmem:[#allocation5 + $0x80] ss:$8 sps:$4 sm:$0xff]  }
  0x40   :  { %935 = vmatprep.subr.bf16.mxu0 %v8818_v4  ;;  %v9695_v16 = vsub.s32 %v104_v12, %v9692_v13  ;;  %v8839_v28 = vld [vmem:[#allocation5 + $0x94] ss:$8 sps:$4 sm:$0xff]   ;;  %v8841_v29 = vld [vmem:[#allocation5 + $0x90] ss:$8 sps:$4 sm:$0xff]   ;;  %v8842_v30 = vld [vmem:[#allocation5 + $0xa4] ss:$8 sps:$4 sm:$0xff]  }
  0x41   :  { %v8844_v31 = vld [vmem:[#allocation5 + $0xa0] ss:$8 sps:$4 sm:$0xff]   ;;  %v8845_v32 = vld [vmem:[#allocation5 + $0xb4] ss:$8 sps:$4 sm:$0xff]   ;;  %v8847_v33 = vld [vmem:[#allocation5 + $0xb0] ss:$8 sps:$4 sm:$0xff]  }
  0x42   :  { %v97_v19 = vld [vmem:[%s11651_s6] sm:$0xff]  ;;  %v8851_v36 = vld [vmem:[#allocation5 + $0xd4] ss:$8 sps:$4 sm:$0xff]   ;;  %v8853_v37 = vld [vmem:[#allocation5 + $0xd0] ss:$8 sps:$4 sm:$0xff]   ;;  %s11652_s24 = sld [smem:[#allocation13_spill]] }
  0x43   :  { %936 = vmatpush1.bf16.msra.mxu0 %v8820_v5  ;;  %v108_v20 = vrot.slane %v97_v19, %v9695_v16  ;;  %v8848_v34 = vld [vmem:[#allocation5 + $0xc4] ss:$8 sps:$4 sm:$0xff]   ;;  %v8850_v35 = vld [vmem:[#allocation5 + $0xc0] ss:$8 sps:$4 sm:$0xff]   ;;  %v101_v38 = vcombine.high %v97_v19, %v97_v19  ;;  %v8857_v42 = vld [vmem:[#allocation5 + $0xf4] ss:$8 sps:$4 sm:$0xff]  }
  0x44   :  { %937 = vmatprep.subr.bf16.mxu0 %v8821_v6  ;;  %v8854_v39 = vld [vmem:[#allocation5 + $0xe4] ss:$8 sps:$4 sm:$0xff]   ;;  %v8856_v40 = vld [vmem:[#allocation5 + $0xe0] ss:$8 sps:$4 sm:$0xff]   ;;  %v8859_v43 = vld [vmem:[#allocation5 + $0xf0] ss:$8 sps:$4 sm:$0xff]  }
  0x45   :  { %v116_v23 = vcombine.high %v108_v20, %v108_v20  ;;  %v9702_v41 = vrot.slane %v101_v38, %v9695_v16  ;;  %v8863_v45 = vld [vmem:[#allocation5 + $0x104] ss:$8 sps:$4 sm:$0xff]   ;;  %v143_v46 = vpack.c.bf16 %v108_v20, %v108_v20  ;;  %v8861_v47 = vld [vmem:[#allocation5 + $0x100] ss:$8 sps:$4 sm:$0xff]   ;;  %v8866_v49 = vld [vmem:[#allocation5 + $0x114] ss:$8 sps:$4 sm:$0xff]  }
  0x46   :  { %v8864_v50 = vld [vmem:[#allocation5 + $0x110] ss:$8 sps:$4 sm:$0xff]   ;;  %v8869_v51 = vld [vmem:[#allocation5 + $0x124] ss:$8 sps:$4 sm:$0xff]   ;;  %v8867_v52 = vld [vmem:[#allocation5 + $0x120] ss:$8 sps:$4 sm:$0xff]  }
  0x47   :  { %938 = vmatpush1.bf16.msra.mxu0 %v8823_v10  ;;  %v144_v24 = vpack.c.bf16 %v116_v23, %v116_v23  ;;  %v117_v44 = vcombine.high %v9702_v41, %v9702_v41  ;;  %v8872_v53 = vld [vmem:[#allocation5 + $0x134] ss:$8 sps:$4 sm:$0xff]   ;;  %v8870_v54 = vld [vmem:[#allocation5 + $0x130] ss:$8 sps:$4 sm:$0xff]   ;;  %v8875_v55 = vld [vmem:[#allocation5 + $0x144] ss:$8 sps:$4 sm:$0xff]  }
  0x48   :  { %939 = vmatprep.subr.bf16.mxu0 %v8824_v11  ;;  %v8873_v56 = vld [vmem:[#allocation5 + $0x140] ss:$8 sps:$4 sm:$0xff]   ;;  %v8878_v57 = vld [vmem:[#allocation5 + $0x154] ss:$8 sps:$4 sm:$0xff]   ;;  %v8876_v58 = vld [vmem:[#allocation5 + $0x150] ss:$8 sps:$4 sm:$0xff]  }
  0x49   :  { %963 = vmatprep.mubr.bf16.mxu0 %v144_v24  ;;  %v146_v48 = vpack.c.bf16 %v117_v44, %v117_v44  ;;  %v8881_v59 = vld [vmem:[#allocation5 + $0x164] ss:$8 sps:$4 sm:$0xff]   ;;  %v8879_v60 = vld [vmem:[#allocation5 + $0x160] ss:$8 sps:$4 sm:$0xff]   ;;  %v8884_v61 = vld [vmem:[#allocation5 + $0x174] ss:$8 sps:$4 sm:$0xff]  }
  0x4a   :  { %v8882_v62 = vld [vmem:[#allocation5 + $0x170] ss:$8 sps:$4 sm:$0xff]   ;;  %v8887_v63 = vld [vmem:[#allocation5 + $0x184] ss:$8 sps:$4 sm:$0xff]   ;;  %v8885_v0 = vld [vmem:[#allocation5 + $0x180] ss:$8 sps:$4 sm:$0xff]  }
  0x4b   :  { %940 = vmatpush1.bf16.msra.mxu0 %v8826_v14  ;;  %v8890_v1 = vld [vmem:[#allocation5 + $0x194] ss:$8 sps:$4 sm:$0xff]   ;;  %v8888_v2 = vld [vmem:[#allocation5 + $0x190] ss:$8 sps:$4 sm:$0xff]   ;;  %v8893_v3 = vld [vmem:[#allocation5 + $0x1a4] ss:$8 sps:$4 sm:$0xff]  }
  0x4c   :  { %941 = vmatprep.subr.bf16.mxu0 %v8827_v15  ;;  %v8891_v4 = vld [vmem:[#allocation5 + $0x1a0] ss:$8 sps:$4 sm:$0xff]   ;;  %v8896_v5 = vld [vmem:[#allocation5 + $0x1b4] ss:$8 sps:$4 sm:$0xff]   ;;  %v8894_v6 = vld [vmem:[#allocation5 + $0x1b0] ss:$8 sps:$4 sm:$0xff]  }
  0x4d   :  { %v8899_v7 = vld [vmem:[#allocation5 + $0x1c4] ss:$8 sps:$4 sm:$0xff]   ;;  %v8897_v8 = vld [vmem:[#allocation5 + $0x1c0] ss:$8 sps:$4 sm:$0xff]   ;;  %v8902_v9 = vld [vmem:[#allocation5 + $0x1d4] ss:$8 sps:$4 sm:$0xff]  }
  0x4e   :  { %v8900_v10 = vld [vmem:[#allocation5 + $0x1d0] ss:$8 sps:$4 sm:$0xff]   ;;  %v8905_v11 = vld [vmem:[#allocation5 + $0x1e4] ss:$8 sps:$4 sm:$0xff]   ;;  %v8903_v14 = vld [vmem:[#allocation5 + $0x1e0] ss:$8 sps:$4 sm:$0xff]  }
  0x4f   :  { %942 = vmatpush1.bf16.msra.mxu0 %v8829_v17  ;;  %v9709_v12 = vld [vmem:[%s11651_s6 + $0x8] sm:$0xff]  ;;  %v8908_v15 = vld [vmem:[#allocation5 + $0x1f4] ss:$8 sps:$4 sm:$0xff]   ;;  %v8924_v44 = vld [vmem:[#allocation5 + $0x250] ss:$8 sps:$4 sm:$0xff]   ;;  %vm2042_vm0 = vcmask 523264  }
  0x50   :  { %943 = vmatprep.subr.bf16.mxu0 %v8830_v18  ;;  %v9713_v17 = vrot.slane %v9709_v12, %v9695_v16  ;;  %v8906_v18 = vld [vmem:[#allocation5 + $0x1f0] ss:$8 sps:$4 sm:$0xff]   ;;  %v8911_v19 = vld [vmem:[#allocation5 + $0x204] ss:$8 sps:$4 sm:$0xff]   ;;  %v8914_v23 = vld [vmem:[#allocation5 + $0x214] ss:$8 sps:$4 sm:$0xff]  }
  0x51   :  { %v9013_v38 = vld [vmem:[%s11631_s4 + $0x18] sm:$0xff]   ;;  %vm2079_vm1 = vcmask 516096   ;;  %vm2128_vm2 = vcmask 517121   ;;  %vm5066_vm3 = vcmask 1046528   ;;  %vm5225_vm4 = vsmask.f32 7424 }
  0x52   :  { %v133_v20 = vcombine.high %v9713_v17, %v9713_v17  ;;  %vm6891_vm5 = vsmask.f32 5376  ;;  %vm5898_vm6 = vcmask 1044480   ;;  %vm6148_vm7 = vsmask.f32 4352 }
  0x53   :  { %944 = vmatpush1.bf16.msra.mxu0 %v8832_v21  ;;  %v8909_v21 = vld [vmem:[#allocation5 + $0x200] ss:$8 sps:$4 sm:$0xff]   ;;  %vm6661_vm8 = vcmask 1045504   ;;  %vm7426_vm9 = vcmask 519168   ;;  %vm7428_vm10 = vcmask 523270   ;;  %vm7432_vm11 = vcmask 523268  }
  0x54   :  { %945 = vmatprep.subr.bf16.mxu0 %v8833_v22  ;;  %v145_v22 = vpack.c.bf16 %v9702_v41, %v9702_v41  ;;  %v148_v24 = vpack.c.bf16 %v133_v20, %v133_v20  ;;  %v8926_v41 = vld [vmem:[#allocation5 + $0x254] ss:$8 sps:$4 sm:$0xff]   ;;  %v8977_v20 = vld [vmem:[#allocation5 + $0x364] ss:$8 sps:$4 sm:$0xff]   ;;  %vm7430_vm12 = vcmask 517120   ;;  %vm7434_vm13 = vcmask 521218  }
  0x57   :  { %946 = vmatpush1.bf16.msra.mxu0 %v8835_v25  ;;  %v9006_v25 = vld [vmem:[%s11631_s4 + $0x40] sm:$0xff]  }
  0x58   :  { %947 = vmatprep.subr.bf16.mxu0 %v8836_v26  ;;  %v9007_v26 = vld [vmem:[%s11631_s4] sm:$0xff]   ;;  %8046 = vmatprep.subr.bf16.mxu1 %v9006_v25 }
  0x59   :  { %8047 = vmatpush3.bf16.msra.mxu1 %v9007_v26  ;;  %v8981_v25 = vld [vmem:[#allocation5 + $0x380] ss:$8 sps:$4 sm:$0xff]   ;;  %v8986_v26 = vld [vmem:[#allocation5 + $0x394] ss:$8 sps:$4 sm:$0xff]  }
  0x5b   :  { %948 = vmatpush1.bf16.msra.mxu0 %v8838_v27  ;;  %v9008_v27 = vld [vmem:[%s11631_s4 + $0x48] sm:$0xff]  }
  0x5c   :  { %949 = vmatprep.subr.bf16.mxu0 %v8839_v28  ;;  %v8912_v28 = vld [vmem:[#allocation5 + $0x210] ss:$8 sps:$4 sm:$0xff]   ;;  %8048 = vmatprep.subr.bf16.mxu1 %v9008_v27 }
  0x5d   :  { %v8984_v27 = vld [vmem:[#allocation5 + $0x390] ss:$8 sps:$4 sm:$0xff]  }
  0x5f   :  { %950 = vmatpush1.bf16.msra.mxu0 %v8841_v29  ;;  %v8917_v29 = vld [vmem:[#allocation5 + $0x224] ss:$8 sps:$4 sm:$0xff]  }
  0x60   :  { %951 = vmatprep.subr.bf16.mxu0 %v8842_v30  ;;  %v8915_v30 = vld [vmem:[#allocation5 + $0x220] ss:$8 sps:$4 sm:$0xff]  }
  0x63   :  { %952 = vmatpush1.bf16.msra.mxu0 %v8844_v31  ;;  %v9009_v31 = vld [vmem:[%s11631_s4 + $0x8] sm:$0xff]  }
  0x64   :  { %953 = vmatprep.subr.bf16.mxu0 %v8845_v32  ;;  %v8920_v32 = vld [vmem:[#allocation5 + $0x234] ss:$8 sps:$4 sm:$0xff]   ;;  %8049 = vmatpush3.bf16.msra.mxu1 %v9009_v31  ;;  %v8990_v31 = vld [vmem:[#allocation5 + $0x3b0] ss:$8 sps:$4 sm:$0xff]  }
  0x67   :  { %954 = vmatpush1.bf16.msra.mxu0 %v8847_v33  ;;  %v9010_v33 = vld [vmem:[%s11631_s4 + $0x50] sm:$0xff]  }
  0x68   :  { %955 = vmatprep.subr.bf16.mxu0 %v8848_v34  ;;  %v9011_v34 = vld [vmem:[%s11631_s4 + $0x10] sm:$0xff]   ;;  %8050 = vmatprep.subr.bf16.mxu1 %v9010_v33  ;;  %v8993_v33 = vld [vmem:[#allocation5 + $0x3c0] ss:$8 sps:$4 sm:$0xff]  }
  0x69   :  { %8051 = vmatpush3.bf16.msra.mxu1 %v9011_v34  ;;  %v8998_v34 = vld [vmem:[#allocation5 + $0x3d4] ss:$8 sps:$4 sm:$0xff]  }
  0x6b   :  { %956 = vmatpush1.bf16.msra.mxu0 %v8850_v35  ;;  %v9012_v35 = vld [vmem:[%s11631_s4 + $0x58] sm:$0xff]  }
  0x6c   :  { %957 = vmatprep.subr.bf16.mxu0 %v8851_v36  ;;  %v8918_v36 = vld [vmem:[#allocation5 + $0x230] ss:$8 sps:$4 sm:$0xff]   ;;  %8052 = vmatprep.subr.bf16.mxu1 %v9012_v35 }
  0x6d   :  { %8053 = vmatpush3.bf16.msra.mxu1 %v9013_v38  ;;  %v8996_v35 = vld [vmem:[#allocation5 + $0x3d0] ss:$8 sps:$4 sm:$0xff]   ;;  %v9004_v38 = vld [vmem:[#allocation5 + $0x3f4] ss:$8 sps:$4 sm:$0xff]  }
  0x6f   :  { %958 = vmatpush1.bf16.msra.mxu0 %v8853_v37  ;;  %v8923_v37 = vld [vmem:[#allocation5 + $0x244] ss:$8 sps:$4 sm:$0xff]  }
  0x70   :  { %959 = vmatprep.subr.bf16.mxu0 %v8854_v39  ;;  %v9014_v39 = vld [vmem:[%s11631_s4 + $0x60] sm:$0xff]  }
  0x71   :  { %8054 = vmatprep.subr.bf16.mxu1 %v9014_v39  ;;  %v9002_v39 = vld [vmem:[#allocation5 + $0x3f0] ss:$8 sps:$4 sm:$0xff]  }
  0x73   :  { %960 = vmatpush1.bf16.msra.mxu0 %v8856_v40  ;;  %v8921_v40 = vld [vmem:[#allocation5 + $0x240] ss:$8 sps:$4 sm:$0xff]  }
  0x74   :  { %961 = vmatprep.subr.bf16.mxu0 %v8857_v42  ;;  %v9015_v42 = vld [vmem:[%s11631_s4 + $0x20] sm:$0xff]  }
  0x75   :  { %8055 = vmatpush3.bf16.msra.mxu1 %v9015_v42  ;;  %v9019_v42 = vld [vmem:[%s11631_s4 + $0x30] sm:$0xff]  }
  0x77   :  { %962 = vmatpush1.bf16.msra.mxu0 %v8859_v43  ;;  %v9016_v43 = vld [vmem:[%s11631_s4 + $0x68] sm:$0xff]  }
  0x78   :  { %972 = vmatprep.subr.bf16.mxu0 %v8863_v45  ;;  %v8929_v45 = vld [vmem:[#allocation5 + $0x264] ss:$8 sps:$4 sm:$0xff]   ;;  %8056 = vmatprep.subr.bf16.mxu1 %v9016_v43  ;;  %v9020_v43 = vld [vmem:[%s11631_s4 + $0x78] sm:$0xff]  }
  0x7a   :  { %964 = vmatmul.mubr.bf16.vlgmr.msra.gmra.mrb[0].mxu0 %v143_v46  ;;  %v9017_v46 = vld [vmem:[%s11631_s4 + $0x28] sm:$0xff]  }
  0x7b   :  { %973 = vmatpush1.bf16.msra.mxu0 %v8861_v47  ;;  %1004 = vmatprep.mubr.bf16.mxu0 %v146_v48  ;;  %v8927_v47 = vld [vmem:[#allocation5 + $0x260] ss:$8 sps:$4 sm:$0xff]   ;;  %v8932_v48 = vld [vmem:[#allocation5 + $0x274] ss:$8 sps:$4 sm:$0xff]  }
  0x7c   :  { %974 = vmatprep.subr.bf16.mxu0 %v8866_v49  ;;  %v8930_v49 = vld [vmem:[#allocation5 + $0x270] ss:$8 sps:$4 sm:$0xff]   ;;  %8057 = vmatpush3.bf16.msra.mxu1 %v9017_v46  ;;  %v9779_v46 = vsub.s32 0, %v9692_v13 }
  0x7f   :  { %975 = vmatpush1.bf16.msra.mxu0 %v8864_v50  ;;  %v8935_v50 = vld [vmem:[#allocation5 + $0x284] ss:$8 sps:$4 sm:$0xff]  }
  0x80   :  { %976 = vmatprep.subr.bf16.mxu0 %v8869_v51  ;;  %v8933_v51 = vld [vmem:[#allocation5 + $0x280] ss:$8 sps:$4 sm:$0xff]  }
  0x83   :  { %977 = vmatpush1.bf16.msra.mxu0 %v8867_v52  ;;  %v8938_v52 = vld [vmem:[#allocation5 + $0x294] ss:$8 sps:$4 sm:$0xff]  }
  0x84   :  { %978 = vmatprep.subr.bf16.mxu0 %v8872_v53  ;;  %v8936_v53 = vld [vmem:[#allocation5 + $0x290] ss:$8 sps:$4 sm:$0xff]  }
  0x87   :  { %979 = vmatpush1.bf16.msra.mxu0 %v8870_v54  ;;  %v8941_v54 = vld [vmem:[#allocation5 + $0x2a4] ss:$8 sps:$4 sm:$0xff]  }
  0x88   :  { %980 = vmatprep.subr.bf16.mxu0 %v8875_v55  ;;  %v8939_v55 = vld [vmem:[#allocation5 + $0x2a0] ss:$8 sps:$4 sm:$0xff]  }
  0x8b   :  { %981 = vmatpush1.bf16.msra.mxu0 %v8873_v56  ;;  %v8944_v56 = vld [vmem:[#allocation5 + $0x2b4] ss:$8 sps:$4 sm:$0xff]  }
  0x8c   :  { %982 = vmatprep.subr.bf16.mxu0 %v8878_v57  ;;  %v8942_v57 = vld [vmem:[#allocation5 + $0x2b0] ss:$8 sps:$4 sm:$0xff]  }
  0x8f   :  { %983 = vmatpush1.bf16.msra.mxu0 %v8876_v58  ;;  %v8947_v58 = vld [vmem:[#allocation5 + $0x2c4] ss:$8 sps:$4 sm:$0xff]  }
  0x90   :  { %984 = vmatprep.subr.bf16.mxu0 %v8881_v59  ;;  %v8945_v59 = vld [vmem:[#allocation5 + $0x2c0] ss:$8 sps:$4 sm:$0xff]  }
  0x93   :  { %985 = vmatpush1.bf16.msra.mxu0 %v8879_v60  ;;  %v8950_v60 = vld [vmem:[#allocation5 + $0x2d4] ss:$8 sps:$4 sm:$0xff]  }
  0x94   :  { %986 = vmatprep.subr.bf16.mxu0 %v8884_v61  ;;  %v8948_v61 = vld [vmem:[#allocation5 + $0x2d0] ss:$8 sps:$4 sm:$0xff]  }
  0x97   :  { %987 = vmatpush1.bf16.msra.mxu0 %v8882_v62  ;;  %v8953_v62 = vld [vmem:[#allocation5 + $0x2e4] ss:$8 sps:$4 sm:$0xff]  }
  0x98   :  { %988 = vmatprep.subr.bf16.mxu0 %v8887_v63  ;;  %v118_v63 = vcombine.high %v9709_v12, %v9709_v12  ;;  %v8968_v12 = vld [vmem:[#allocation5 + $0x334] ss:$8 sps:$4 sm:$0xff]  }
  0x9b   :  { %989 = vmatpush1.bf16.msra.mxu0 %v8885_v0  ;;  %v8951_v0 = vld [vmem:[#allocation5 + $0x2e0] ss:$8 sps:$4 sm:$0xff]  }
  0x9c   :  { %990 = vmatprep.subr.bf16.mxu0 %v8890_v1  ;;  %v8956_v1 = vld [vmem:[#allocation5 + $0x2f4] ss:$8 sps:$4 sm:$0xff]  }
  0x9f   :  { %991 = vmatpush1.bf16.msra.mxu0 %v8888_v2  ;;  %v9758_v2 = vrot.slane %v118_v63, %v9695_v16  ;;  %v8965_v16 = vld [vmem:[#allocation5 + $0x324] ss:$8 sps:$4 sm:$0xff]   ;;  %v9025_v63 = vld [vmem:[#allocation7 + $0x10] ss:$8 sps:$4 sm:$0xff]  }
  0xa0   :  { %992 = vmatprep.subr.bf16.mxu0 %v8893_v3  ;;  %v8954_v3 = vld [vmem:[#allocation5 + $0x2f0] ss:$8 sps:$4 sm:$0xff]  }
  0xa3   :  { %993 = vmatpush1.bf16.msra.mxu0 %v8891_v4  ;;  %v8959_v4 = vld [vmem:[#allocation5 + $0x304] ss:$8 sps:$4 sm:$0xff]  }
  0xa4   :  { %994 = vmatprep.subr.bf16.mxu0 %v8896_v5  ;;  %v134_v5 = vcombine.high %v9758_v2, %v9758_v2 }
  0xa7   :  { %995 = vmatpush1.bf16.msra.mxu0 %v8894_v6  ;;  %v8957_v6 = vld [vmem:[#allocation5 + $0x300] ss:$8 sps:$4 sm:$0xff]  }
  0xa8   :  { %996 = vmatprep.subr.bf16.mxu0 %v8899_v7  ;;  %v147_v7 = vpack.c.bf16 %v9713_v17, %v9713_v17  ;;  %v8974_v17 = vld [vmem:[#allocation5 + $0x354] ss:$8 sps:$4 sm:$0xff]  }
  0xab   :  { %997 = vmatpush1.bf16.msra.mxu0 %v8897_v8  ;;  %v8962_v8 = vld [vmem:[#allocation5 + $0x314] ss:$8 sps:$4 sm:$0xff]  }
  0xac   :  { %998 = vmatprep.subr.bf16.mxu0 %v8902_v9  ;;  %v150_v9 = vpack.c.bf16 %v134_v5, %v134_v5  ;;  %v9034_v5 = vld [vmem:[#allocation7 + $0x40] ss:$8 sps:$4 sm:$0xff]  }
  0xaf   :  { %999 = vmatpush1.bf16.msra.mxu0 %v8900_v10  ;;  %v8960_v10 = vld [vmem:[#allocation5 + $0x310] ss:$8 sps:$4 sm:$0xff]  }
  0xb0   :  { %1000 = vmatprep.subr.bf16.mxu0 %v8905_v11  ;;  %v8963_v11 = vld [vmem:[#allocation5 + $0x320] ss:$8 sps:$4 sm:$0xff]  }
  0xb3   :  { %1001 = vmatpush1.bf16.msra.mxu0 %v8903_v14  ;;  %v8966_v14 = vld [vmem:[#allocation5 + $0x330] ss:$8 sps:$4 sm:$0xff]  }
  0xb4   :  { %1002 = vmatprep.subr.bf16.mxu0 %v8908_v15  ;;  %v8971_v15 = vld [vmem:[#allocation5 + $0x344] ss:$8 sps:$4 sm:$0xff]  }
  0xb7   :  { %1003 = vmatpush1.bf16.msra.mxu0 %v8906_v18  ;;  %v8969_v18 = vld [vmem:[#allocation5 + $0x340] ss:$8 sps:$4 sm:$0xff]  }
  0xb8   :  { %1013 = vmatprep.subr.bf16.mxu0 %v8911_v19  ;;  %v8972_v19 = vld [vmem:[#allocation5 + $0x350] ss:$8 sps:$4 sm:$0xff]  }
  0xba   :  { %1005 = vmatmul.mubr.bf16.vlgmr.msra.gmra.mrb[0].mxu0 %v145_v22  ;;  %v8980_v22 = vld [vmem:[#allocation5 + $0x374] ss:$8 sps:$4 sm:$0xff]  }
  0xbb   :  { %1014 = vmatpush1.bf16.msra.mxu0 %v8909_v21  ;;  %1045 = vmatprep.mubr.bf16.mxu0 %v148_v24  ;;  %v8975_v21 = vld [vmem:[#allocation5 + $0x360] ss:$8 sps:$4 sm:$0xff]   ;;  %v8983_v24 = vld [vmem:[#allocation5 + $0x384] ss:$8 sps:$4 sm:$0xff]  }
  0xbc   :  { %1015 = vmatprep.subr.bf16.mxu0 %v8914_v23  ;;  %v8978_v23 = vld [vmem:[#allocation5 + $0x370] ss:$8 sps:$4 sm:$0xff]  }
  0xbf   :  { %1016 = vmatpush1.bf16.msra.mxu0 %v8912_v28  ;;  %v8989_v28 = vld [vmem:[#allocation5 + $0x3a4] ss:$8 sps:$4 sm:$0xff]  }
  0xc0   :  { %1017 = vmatprep.subr.bf16.mxu0 %v8917_v29  ;;  %v8987_v29 = vld [vmem:[#allocation5 + $0x3a0] ss:$8 sps:$4 sm:$0xff]  }
  0xc3   :  { %1018 = vmatpush1.bf16.msra.mxu0 %v8915_v30  ;;  %v8992_v30 = vld [vmem:[#allocation5 + $0x3b4] ss:$8 sps:$4 sm:$0xff]  }
  0xc4   :  { %1019 = vmatprep.subr.bf16.mxu0 %v8920_v32  ;;  %v8995_v32 = vld [vmem:[#allocation5 + $0x3c4] ss:$8 sps:$4 sm:$0xff]  }
  0xc7   :  { %1020 = vmatpush1.bf16.msra.mxu0 %v8918_v36  ;;  %v9001_v36 = vld [vmem:[#allocation5 + $0x3e4] ss:$8 sps:$4 sm:$0xff]  }
  0xc8   :  { %1021 = vmatprep.subr.bf16.mxu0 %v8923_v37  ;;  %v8999_v37 = vld [vmem:[#allocation5 + $0x3e0] ss:$8 sps:$4 sm:$0xff]  }
  0xcb   :  { %1022 = vmatpush1.bf16.msra.mxu0 %v8921_v40  ;;  %v149_v40 = vpack.c.bf16 %v9758_v2, %v9758_v2  ;;  %v9033_v2 = vld [vmem:[#allocation7 + $0x34] ss:$8 sps:$4 sm:$0xff]  }
  0xcc   :  { %1023 = vmatprep.subr.bf16.mxu0 %v8926_v41  ;;  %v9018_v41 = vld [vmem:[%s11631_s4 + $0x70] sm:$0xff]  }
  0xcd   :  { %8058 = vmatprep.subr.bf16.mxu1 %v9018_v41 }
  0xce   :  { %8059 = vmatpush3.bf16.msra.mxu1 %v9019_v42 }
  0xcf   :  { %1024 = vmatpush1.bf16.msra.mxu0 %v8924_v44  ;;  %v9021_v44 = vld [vmem:[%s11631_s4 + $0x38] sm:$0xff]   ;;  %8060 = vmatprep.subr.bf16.mxu1 %v9020_v43  ;;  %v1484_v43 = vld [vmem:[%s11635_s8 + $0x140] sm:$0xff] }
  0xd0   :  { %1025 = vmatprep.subr.bf16.mxu0 %v8929_v45  ;;  %v9024_v45 = vld [vmem:[#allocation7 + $0x4] ss:$8 sps:$4 sm:$0xff]  }
  0xd2   :  { %8061 = vmatpush3.bf16.msra.mxu1 %v9021_v44  ;;  %v1488_v44 = vld [vmem:[%s11635_s8 + $0x160] sm:$0xff] }
  0xd3   :  { %1026 = vmatpush1.bf16.msra.mxu0 %v8927_v47  ;;  %1384 = vmatprep.subr.bf16.mxu1 %v9024_v45  ;;  %v279_v47 = vld [vmem:[%s11630_s3] sm:$0x3] }
  0xd4   :  { %1027 = vmatprep.subr.bf16.mxu0 %v8932_v48  ;;  %v9785_v48 = vsub.s32 1, %v9692_v13  ;;  %v1492_v45 = vld [vmem:[%s11635_s8 + $0x180] sm:$0xff] }
  0xd7   :  { %1028 = vmatpush1.bf16.msra.mxu0 %v8930_v49  ;;  %v284_v49 = vrot.slane %v279_v47, %v9779_v46 }
  0xd8   :  { %1029 = vmatprep.subr.bf16.mxu0 %v8935_v50  ;;  %v288_v50 = vrot.slane %v279_v47, %v9785_v48  ;;  %v7653_v47 = vcombine.low %v1484_v43, %v1488_v44 }
  0xdb   :  { %1030 = vmatpush1.bf16.msra.mxu0 %v8933_v51 }
  0xdc   :  { %1031 = vmatprep.subr.bf16.mxu0 %v8938_v52 }
  0xdf   :  { %1032 = vmatpush1.bf16.msra.mxu0 %v8936_v53 }
  0xe0   :  { %1033 = vmatprep.subr.bf16.mxu0 %v8941_v54 }
  0xe3   :  { %1034 = vmatpush1.bf16.msra.mxu0 %v8939_v55 }
  0xe4   :  { %1035 = vmatprep.subr.bf16.mxu0 %v8944_v56 }
  0xe7   :  { %1036 = vmatpush1.bf16.msra.mxu0 %v8942_v57 }
  0xe8   :  { %1037 = vmatprep.subr.bf16.mxu0 %v8947_v58 }
  0xeb   :  { %1038 = vmatpush1.bf16.msra.mxu0 %v8945_v59 }
  0xec   :  { %1039 = vmatprep.subr.bf16.mxu0 %v8950_v60  ;;  %v9022_v60 = vld [vmem:[#allocation7] ss:$8 sps:$4 sm:$0xff]  }
  0xef   :  { %1040 = vmatpush1.bf16.msra.mxu0 %v8948_v61 }
  0xf0   :  { %1041 = vmatprep.subr.bf16.mxu0 %v8953_v62  ;;  %v9027_v62 = vld [vmem:[#allocation7 + $0x14] ss:$8 sps:$4 sm:$0xff]  }
  0xf3   :  { %1042 = vmatpush1.bf16.msra.mxu0 %v8951_v0  ;;  %v9030_v0 = vld [vmem:[#allocation7 + $0x24] ss:$8 sps:$4 sm:$0xff]  }
  0xf4   :  { %1043 = vmatprep.subr.bf16.mxu0 %v8956_v1  ;;  %v9028_v1 = vld [vmem:[#allocation7 + $0x20] ss:$8 sps:$4 sm:$0xff]  }
  0xf7   :  { %1044 = vmatpush1.bf16.msra.mxu0 %v8954_v3  ;;  %v9031_v3 = vld [vmem:[#allocation7 + $0x30] ss:$8 sps:$4 sm:$0xff]  }
  0xf8   :  { %1054 = vmatprep.subr.bf16.mxu0 %v8959_v4  ;;  %v9036_v4 = vld [vmem:[#allocation7 + $0x44] ss:$8 sps:$4 sm:$0xff]  }
  0xfa   :  { %1046 = vmatmul.mubr.bf16.vlgmr.msra.gmra.mrb[0].mxu0 %v147_v7  ;;  %v9037_v7 = vld [vmem:[#allocation7 + $0x50] ss:$8 sps:$4 sm:$0xff]  }
  0xfb   :  { %1055 = vmatpush1.bf16.msra.mxu0 %v8957_v6  ;;  %1086 = vmatprep.mubr.bf16.mxu0 %v150_v9  ;;  %v9039_v6 = vld [vmem:[#allocation7 + $0x54] ss:$8 sps:$4 sm:$0xff]   ;;  %v9040_v9 = vld [vmem:[#allocation7 + $0x60] ss:$8 sps:$4 sm:$0xff]  }
  0xfc   :  { %1056 = vmatprep.subr.bf16.mxu0 %v8962_v8  ;;  %v9042_v8 = vld [vmem:[#allocation7 + $0x64] ss:$8 sps:$4 sm:$0xff]  }
  0xff   :  { %1057 = vmatpush1.bf16.msra.mxu0 %v8960_v10  ;;  %v9045_v10 = vld [vmem:[#allocation7 + $0x74] ss:$8 sps:$4 sm:$0xff]  }
 0x100   :  { %1058 = vmatprep.subr.bf16.mxu0 %v8965_v16  ;;  %v9043_v16 = vld [vmem:[#allocation7 + $0x70] ss:$8 sps:$4 sm:$0xff]  }
 0x103   :  { %1059 = vmatpush1.bf16.msra.mxu0 %v8963_v11  ;;  %v9555_v11 = vmov 0  }
 0x104   :  { %1060 = vmatprep.subr.bf16.mxu0 %v8968_v12  ;;  %v1444_v12 = vld [vmem:[%s11635_s8] sm:$0xff] }
 0x107   :  { %1061 = vmatpush1.bf16.msra.mxu0 %v8966_v14  ;;  %v1448_v14 = vld [vmem:[%s11635_s8 + $0x20] sm:$0xff] }
 0x108   :  { %1062 = vmatprep.subr.bf16.mxu0 %v8971_v15  ;;  %v7613_v15 = vcombine.low %v1444_v12, %v1448_v14 }
 0x10b   :  { %1063 = vmatpush1.bf16.msra.mxu0 %v8969_v18  ;;  %v7614_v18 = vcombine.high %v1444_v12, %v1448_v14  ;;  %v1453_v12 = vld [vmem:[%s11635_s8 + $0x48] sm:$0xff] }
 0x10c   :  { %1064 = vmatprep.subr.bf16.mxu0 %v8974_v17  ;;  %v1457_v14 = vld [vmem:[%s11635_s8 + $0x68] sm:$0xff] }
 0x10f   :  { %1065 = vmatpush1.bf16.msra.mxu0 %v8972_v19  ;;  %v7579_v19 = vld [vmem:[%s11632_s5] ss:$0 sm:$0xff] }
 0x110   :  { %1066 = vmatprep.subr.bf16.mxu0 %v8977_v20 }
 0x113   :  { %1067 = vmatpush1.bf16.msra.mxu0 %v8975_v21 }
 0x114   :  { %1068 = vmatprep.subr.bf16.mxu0 %v8980_v22 }
 0x117   :  { %1069 = vmatpush1.bf16.msra.mxu0 %v8978_v23 }
 0x118   :  { %1070 = vmatprep.subr.bf16.mxu0 %v8983_v24 }
 0x11b   :  { %1071 = vmatpush1.bf16.msra.mxu0 %v8981_v25  ;;  %v1452_v25 = vld [vmem:[%s11635_s8 + $0x40] sm:$0xff] }
 0x11c   :  { %1072 = vmatprep.subr.bf16.mxu0 %v8986_v26  ;;  %v1456_v26 = vld [vmem:[%s11635_s8 + $0x60] sm:$0xff] }
 0x11f   :  { %1073 = vmatpush1.bf16.msra.mxu0 %v8984_v27 }
 0x120   :  { %1074 = vmatprep.subr.bf16.mxu0 %v8989_v28 }
 0x123   :  { %1075 = vmatpush1.bf16.msra.mxu0 %v8987_v29  ;;  %v7622_v29 = vcombine.high %v1452_v25, %v1456_v26 }
 0x124   :  { %1076 = vmatprep.subr.bf16.mxu0 %v8992_v30  ;;  %v7621_v30 = vcombine.low %v1452_v25, %v1456_v26 }
 0x127   :  { %1077 = vmatpush1.bf16.msra.mxu0 %v8990_v31  ;;  %v1460_v31 = vld [vmem:[%s11635_s8 + $0x80] sm:$0xff] }
 0x128   :  { %1078 = vmatprep.subr.bf16.mxu0 %v8995_v32  ;;  %v1464_v32 = vld [vmem:[%s11635_s8 + $0xa0] sm:$0xff] }
 0x12b   :  { %1079 = vmatpush1.bf16.msra.mxu0 %v8993_v33  ;;  %v7630_v33 = vcombine.high %v1460_v31, %v1464_v32 }
 0x12c   :  { %1080 = vmatprep.subr.bf16.mxu0 %v8998_v34  ;;  %v7629_v34 = vcombine.low %v1460_v31, %v1464_v32  ;;  %v1485_v31 = vld [vmem:[%s11635_s8 + $0x148] sm:$0xff] }
 0x12d   :  { %v1489_v32 = vld [vmem:[%s11635_s8 + $0x168] sm:$0xff] }
 0x12f   :  { %1081 = vmatpush1.bf16.msra.mxu0 %v8996_v35  ;;  %v1468_v35 = vld [vmem:[%s11635_s8 + $0xc0] sm:$0xff] }
 0x130   :  { %1082 = vmatprep.subr.bf16.mxu0 %v9001_v36  ;;  %v1472_v36 = vld [vmem:[%s11635_s8 + $0xe0] sm:$0xff] }
 0x133   :  { %1083 = vmatpush1.bf16.msra.mxu0 %v8999_v37  ;;  %v7638_v37 = vcombine.high %v1468_v35, %v1472_v36 }
 0x134   :  { %1084 = vmatprep.subr.bf16.mxu0 %v9004_v38  ;;  %v7637_v38 = vcombine.low %v1468_v35, %v1472_v36  ;;  %v1493_v35 = vld [vmem:[%s11635_s8 + $0x188] sm:$0xff] }
 0x135   :  { %v1497_v36 = vld [vmem:[%s11635_s8 + $0x1a8] sm:$0xff] }
 0x137   :  { %1085 = vmatpush1.bf16.msra.mxu0 %v9002_v39  ;;  %v1476_v39 = vld [vmem:[%s11635_s8 + $0x100] sm:$0xff] }
 0x13a   :  { %1087 = vmatmul.mubr.bf16.vlgmr.msra.gmra.mrb[0].mxu0 %v149_v40  ;;  %v1480_v40 = vld [vmem:[%s11635_s8 + $0x120] sm:$0xff] }
 0x13b   :  { %3473 = vmatprep.mubr.bf16.mxu0 %v9555_v11  ;;  %v7646_v41 = vcombine.high %v1476_v39, %v1480_v40  ;;  %v7645_v42 = vcombine.low %v1476_v39, %v1480_v40  ;;  %v1501_v39 = vld [vmem:[%s11635_s8 + $0x1c8] sm:$0xff] }
 0x13c   :  { %v1505_v40 = vld [vmem:[%s11635_s8 + $0x1e8] sm:$0xff] }
 0x20d   :  { %v1088_v51 = vpop.f32.mrb[0].mxu0 }
 0x20e   :  { %v8660_v52 = vadd.f32 %v1088_v51, %v284_v49  ;;  %v1090_v53 = vpop.f32.mrb[1].mxu0  ;;  %v7654_v49 = vcombine.high %v1484_v43, %v1488_v44  ;;  %v1446_v43 = vld [vmem:[%s11635_s8 + $0x10] sm:$0xff] }
 0x20f   :  { %v8661_v54 = vadd.f32 %v1090_v53, %v288_v50  ;;  %v1092_v55 = vpop.f32.mrb[2].mxu0  ;;  %v1496_v50 = vld [vmem:[%s11635_s8 + $0x1a0] sm:$0xff]  ;;  %v1449_v53 = vld [vmem:[%s11635_s8 + $0x28] sm:$0xff]  ;;  %v1450_v44 = vld [vmem:[%s11635_s8 + $0x30] sm:$0xff] }
 0x210   :  { %v1095_v56 = vmax.f32 %v8660_v52, 0.0  ;;  %v1093_v57 = vpop.f32.mrb[3].mxu0  ;;  %v7662_v51 = vcombine.high %v1492_v45, %v1496_v50  ;;  %v1445_v52 = vld [vmem:[%s11635_s8 + $0x8] sm:$0xff]  ;;  %v1504_v55 = vld [vmem:[%s11635_s8 + $0x1e0] sm:$0xff] }
 0x211   :  { %v1096_v58 = vmax.f32 %v8661_v54, 0.0  ;;  %v1500_v54 = vld [vmem:[%s11635_s8 + $0x1c0] sm:$0xff]  ;;  %v7661_v57 = vcombine.low %v1492_v45, %v1496_v50  ;;  %v7671_v45 = vcombine.low %v1501_v39, %v1505_v40  ;;  %v1458_v50 = vld [vmem:[%s11635_s8 + $0x70] sm:$0xff] }
 0x212   :  { %v1097_v61 = vpack.c.bf16 %v1095_v56, %v1095_v56  ;;  %v7615_v56 = vcombine.low %v1445_v52, %v1449_v53 }
 0x213   :  { %v1098_v59 = vpack.c.bf16 %v1096_v58, %v1096_v58  ;;  %v7670_v58 = vcombine.high %v1500_v54, %v1504_v55 }
 0x215   :  { %1266 = vmatprep.mubr.bf16.mxu1 %v1098_v59  ;;  %v7669_v59 = vcombine.low %v1500_v54, %v1504_v55  ;;  %v1466_v54 = vld [vmem:[%s11635_s8 + $0xb0] sm:$0xff] }
 0x216   :  { %1267 = vmatmul.mubr.bf16.vlgmr.msra.gmra.mrb[0].mxu1 %v1097_v61  ;;  %v1292_v61 = vld [vmem:[%s11634_s7] sm:$0x3] }
 0x217   :  { %1385 = vmatpush1.bf16.msra.mxu1 %v9022_v60  ;;  %1416 = vmatprep.mubr.bf16.mxu1 %v9555_v11  ;;  %v7616_v60 = vcombine.high %v1445_v52, %v1449_v53  ;;  %v1462_v53 = vld [vmem:[%s11635_s8 + $0x90] sm:$0xff] }
 0x218   :  { %1386 = vmatprep.subr.bf16.mxu1 %v9027_v62  ;;  %v1297_v62 = vrot.slane %v1292_v61, %v9779_v46 }
 0x21b   :  { %1387 = vmatpush1.bf16.msra.mxu1 %v9025_v63  ;;  %v1301_v63 = vrot.slane %v1292_v61, %v9785_v48  ;;  %v1478_v61 = vld [vmem:[%s11635_s8 + $0x110] sm:$0xff] }
 0x21c   :  { %1388 = vmatprep.subr.bf16.mxu1 %v9030_v0 }
 0x21f   :  { %1389 = vmatpush1.bf16.msra.mxu1 %v9028_v1 }
 0x220   :  { %1390 = vmatprep.subr.bf16.mxu1 %v9033_v2 }
 0x223   :  { %1391 = vmatpush1.bf16.msra.mxu1 %v9031_v3 }
 0x224   :  { %1392 = vmatprep.subr.bf16.mxu1 %v9036_v4 }
 0x227   :  { %1393 = vmatpush1.bf16.msra.mxu1 %v9034_v5 }
 0x228   :  { %1394 = vmatprep.subr.bf16.mxu1 %v9039_v6 }
 0x22b   :  { %1395 = vmatpush1.bf16.msra.mxu1 %v9037_v7 }
 0x22c   :  { %1396 = vmatprep.subr.bf16.mxu1 %v9042_v8 }
 0x22f   :  { %1397 = vmatpush1.bf16.msra.mxu1 %v9040_v9  ;;  %v1437_v9 = vld [vmem:[%s11652_s24] sm:$0x3] }
 0x230   :  { %1398 = vmatprep.subr.bf16.mxu1 %v9045_v10 }
 0x233   :  { %1399 = vmatpush1.bf16.msra.mxu1 %v9043_v16 }
 0x234   :  { %1870 = vmatprep.subr.bf16.mxu1 %v7614_v18 }
 0x2e9   :  { %v8062_v17 = vpop.f32.mrb[0].mxu1 }
 0x2ea   :  { %v8063_v20 = vpop.f32.mrb[1].mxu1 }
 0x2eb   :  { %v8064_v21 = vadd.f32 %v8063_v20, %v8062_v17  ;;  %v8065_v22 = vpop.f32.mrb[2].mxu1  ;;  %v7624_v17 = vcombine.high %v1453_v12, %v1457_v14  ;;  %v1465_v20 = vld [vmem:[%s11635_s8 + $0xa8] sm:$0xff] }
 0x2ec   :  { %v8066_v23 = vpop.f32.mrb[3].mxu1 }
 0x2ed   :  { %v1269_v24 = vadd.f32 %v8064_v21, %v7579_v19  ;;  %v1461_v19 = vld [vmem:[%s11635_s8 + $0x88] sm:$0xff]  ;;  %v7623_v21 = vcombine.low %v1453_v12, %v1457_v14  ;;  %v1447_v14 = vld [vmem:[%s11635_s8 + $0x18] sm:$0xff] }
 0x2ee   :  { %v7632_v22 = vcombine.high %v1461_v19, %v1465_v20  ;;  %v1469_v23 = vld [vmem:[%s11635_s8 + $0xc8] sm:$0xff]  ;;  %v7631_v25 = vcombine.low %v1461_v19, %v1465_v20  ;;  %v1455_v20 = vld [vmem:[%s11635_s8 + $0x58] sm:$0xff] }
 0x2ef   :  { %v1274_v27 = vmax.f32 %v1269_v24, 0.0  ;;  %v1473_v24 = vld [vmem:[%s11635_s8 + $0xe8] sm:$0xff] }
 0x2f0   :  { %v7640_v26 = vcombine.high %v1469_v23, %v1473_v24 }
 0x2f1   :  { %v1275_v28 = vpack.c.bf16 %v1274_v27, %v1274_v27  ;;  %v1477_v27 = vld [vmem:[%s11635_s8 + $0x108] sm:$0xff] }
 0x2f3   :  { %1417 = vmatmul.mubr.bf16.vlgmr.msra.gmra.mrb[4].mxu1 %v1275_v28  ;;  %v1481_v28 = vld [vmem:[%s11635_s8 + $0x128] sm:$0xff] }
 0x2f4   :  { %1871 = vmatpush1.bf16.msra.mxu1 %v7613_v15  ;;  %1902 = vmatprep.mubr.bf16.mxu1 %v9555_v11 }
 0x2f5   :  { %1872 = vmatprep.subr.bf16.mxu1 %v7622_v29  ;;  %v7639_v29 = vcombine.low %v1469_v23, %v1473_v24  ;;  %v1463_v24 = vld [vmem:[%s11635_s8 + $0x98] sm:$0xff] }
 0x2f8   :  { %1873 = vmatpush1.bf16.msra.mxu1 %v7621_v30  ;;  %v7648_v30 = vcombine.high %v1477_v27, %v1481_v28 }
 0x2f9   :  { %1874 = vmatprep.subr.bf16.mxu1 %v7630_v33  ;;  %v7647_v33 = vcombine.low %v1477_v27, %v1481_v28  ;;  %v1471_v28 = vld [vmem:[%s11635_s8 + $0xd8] sm:$0xff] }
 0x2fc   :  { %1875 = vmatpush1.bf16.msra.mxu1 %v7629_v34  ;;  %v7656_v34 = vcombine.high %v1485_v31, %v1489_v32 }
 0x2fd   :  { %1876 = vmatprep.subr.bf16.mxu1 %v7638_v37  ;;  %v7655_v37 = vcombine.low %v1485_v31, %v1489_v32  ;;  %v1479_v32 = vld [vmem:[%s11635_s8 + $0x118] sm:$0xff] }
 0x300   :  { %1877 = vmatpush1.bf16.msra.mxu1 %v7637_v38  ;;  %v7664_v38 = vcombine.high %v1493_v35, %v1497_v36 }
 0x301   :  { %1878 = vmatprep.subr.bf16.mxu1 %v7646_v41  ;;  %v7663_v41 = vcombine.low %v1493_v35, %v1497_v36  ;;  %v1487_v36 = vld [vmem:[%s11635_s8 + $0x158] sm:$0xff] }
 0x304   :  { %1879 = vmatpush1.bf16.msra.mxu1 %v7645_v42  ;;  %v7672_v42 = vcombine.high %v1501_v39, %v1505_v40  ;;  %v1495_v40 = vld [vmem:[%s11635_s8 + $0x198] sm:$0xff] }
 0x305   :  { %1880 = vmatprep.subr.bf16.mxu1 %v7654_v49  ;;  %v1454_v49 = vld [vmem:[%s11635_s8 + $0x50] sm:$0xff] }
 0x306   :  { %v7626_v52 = vcombine.high %v1454_v49, %v1458_v50  ;;  %v7625_v55 = vcombine.low %v1454_v49, %v1458_v50  ;;  %v9556_v50 = vmov 0.0  }
 0x307   :  { %2043 = vst.msk [vmem:[#allocation2] sm:$0xff] %vm2042_vm0, %v9556_v50  ;;  %2048 = vst.msk [vmem:[#allocation2 + $0x28] sm:$0xff] %vm2042_vm0, %v9556_v50 }
 0x308   :  { %1881 = vmatpush1.bf16.msra.mxu1 %v7653_v47  ;;  %v7618_v47 = vcombine.high %v1446_v43, %v1450_v44  ;;  %2044 = vst.msk [vmem:[#allocation2 + $0x8] sm:$0xff] %vm2042_vm0, %v9556_v50  ;;  %2045 = vst.msk [vmem:[#allocation2 + $0x10] sm:$0xff] %vm2042_vm0, %v9556_v50 }
 0x309   :  { %1882 = vmatprep.subr.bf16.mxu1 %v7662_v51  ;;  %v7617_v51 = vcombine.low %v1446_v43, %v1450_v44  ;;  %v1503_v44 = vld [vmem:[%s11635_s8 + $0x1d8] sm:$0xff]  ;;  %2046 = vst.msk [vmem:[#allocation2 + $0x18] sm:$0xff] %vm2042_vm0, %v9556_v50  ;;  %2047 = vst.msk [vmem:[#allocation2 + $0x20] sm:$0xff] %vm2042_vm0, %v9556_v50 }
 0x30a   :  { %2049 = vst.msk [vmem:[#allocation2 + $0x30] sm:$0xff] %vm2042_vm0, %v9556_v50  ;;  %2050 = vst.msk [vmem:[#allocation2 + $0x38] sm:$0xff] %vm2042_vm0, %v9556_v50 }
 0x30b   :  { %2051 = vst.msk [vmem:[#allocation2 + $0x40] sm:$0xff] %vm2042_vm0, %v9556_v50  ;;  %2052 = vst [vmem:[#allocation3] sm:$0xff] %v9556_v50 }
 0x30c   :  { %1883 = vmatpush1.bf16.msra.mxu1 %v7661_v57  ;;  %v1470_v57 = vld [vmem:[%s11635_s8 + $0xd0] sm:$0xff]  ;;  %2053 = vst [vmem:[#allocation3 + $0x8] sm:$0xff] %v9556_v50  ;;  %2054 = vst [vmem:[#allocation3 + $0x10] sm:$0xff] %v9556_v50 }
 0x30d   :  { %1884 = vmatprep.subr.bf16.mxu1 %v7670_v58  ;;  %v1474_v58 = vld [vmem:[%s11635_s8 + $0xf0] sm:$0xff]  ;;  %2055 = vst [vmem:[#allocation3 + $0x18] sm:$0xff] %v9556_v50  ;;  %2056 = vst [vmem:[#allocation3 + $0x20] sm:$0xff] %v9556_v50 }
 0x30e   :  { %2057 = vst [vmem:[#allocation3 + $0x28] sm:$0xff] %v9556_v50  ;;  %2058 = vst [vmem:[#allocation3 + $0x30] sm:$0xff] %v9556_v50 }
 0x30f   :  { %2059 = vst [vmem:[#allocation3 + $0x38] sm:$0xff] %v9556_v50  ;;  %2060 = vst [vmem:[#allocation3 + $0x40] sm:$0xff] %v9556_v50 }
 0x310   :  { %1885 = vmatpush1.bf16.msra.mxu1 %v7669_v59  ;;  %v7633_v59 = vcombine.low %v1462_v53, %v1466_v54  ;;  %2061 = vst [vmem:[#allocation4] sm:$0xff] %v9556_v50  ;;  %2062 = vst [vmem:[#allocation4 + $0x8] sm:$0xff] %v9556_v50 }
 0x311   :  { %1911 = vmatprep.subr.bf16.mxu1 %v7616_v60  ;;  %v7642_v60 = vcombine.high %v1470_v57, %v1474_v58  ;;  %2063 = vst [vmem:[#allocation4 + $0x10] sm:$0xff] %v9556_v50  ;;  %2064 = vst [vmem:[#allocation4 + $0x18] sm:$0xff] %v9556_v50 }
 0x312   :  { %2065 = vst [vmem:[#allocation4 + $0x20] sm:$0xff] %v9556_v50  ;;  %2066 = vst [vmem:[#allocation4 + $0x28] sm:$0xff] %v9556_v50 }
 0x313   :  { %2067 = vst [vmem:[#allocation4 + $0x30] sm:$0xff] %v9556_v50  ;;  %2068 = vst [vmem:[#allocation4 + $0x38] sm:$0xff] %v9556_v50 }
 0x314   :  { %2071 = vst [vmem:[#allocation4 + $0x50] sm:$0xff] %v9556_v50  ;;  %2072 = vst [vmem:[#allocation4 + $0x58] sm:$0xff] %v9556_v50 }
 0x315   :  { %2073 = vst [vmem:[#allocation4 + $0x60] sm:$0xff] %v9556_v50  ;;  %2074 = vst [vmem:[#allocation4 + $0x68] sm:$0xff] %v9556_v50 }
 0x316   :  { %2075 = vst [vmem:[#allocation4 + $0x70] sm:$0xff] %v9556_v50  ;;  %2076 = vst [vmem:[#allocation4 + $0x78] sm:$0xff] %v9556_v50 }
 0x317   :  { %2077 = vst [vmem:[#allocation4 + $0x80] sm:$0xff] %v9556_v50  ;;  %2078 = vst [vmem:[#allocation4 + $0x88] sm:$0xff] %v9556_v50 }
 0x3c6   :  { %v1418_v0 = vpop.f32.mrb[4].mxu1 }
 0x3c7   :  { %v1419_v1 = vadd.f32 %v1418_v0, %v1297_v62  ;;  %v1420_v2 = vpop.f32.mrb[5].mxu1  ;;  %v1482_v62 = vld [vmem:[%s11635_s8 + $0x130] sm:$0xff] }
 0x3c8   :  { %v1421_v3 = vadd.f32 %v1420_v2, %v1301_v63  ;;  %v1422_v4 = vpop.f32.mrb[6].mxu1  ;;  %v7641_v63 = vcombine.low %v1470_v57, %v1474_v58  ;;  %v7650_v0 = vcombine.high %v1478_v61, %v1482_v62  ;;  %v1490_v2 = vld [vmem:[%s11635_s8 + $0x170] sm:$0xff] }
 0x3c9   :  { %v1423_v5 = vpop.f32.mrb[7].mxu1 }
 0x3ca   :  { %v1427_v6 = vcombine.low %v1419_v1, %v1421_v3  ;;  %v1438_v7 = vmul.f32 0.5, %v1421_v3  ;;  %v7649_v3 = vcombine.low %v1478_v61, %v1482_v62  ;;  %v1494_v5 = vld [vmem:[%s11635_s8 + $0x190] sm:$0xff]  ;;  %v1520_v62 = vsub.s32 2, %v9692_v13 }
 0x3cc   :  { %7612 = vst.sshfl [vmem:[%s11643_s16] sm:$0x33 pattern:$0x76325410] %v1427_v6  ;;  %v1439_v8 = vmul.f32 1.442695, %v1438_v7  ;;  %v1498_v6 = vld [vmem:[%s11635_s8 + $0x1b0] sm:$0xff] }
 0x3ce   :  { %9442 = vpow2.f32 %v1439_v8  ;;  %v7666_v8 = vcombine.high %v1494_v5, %v1498_v6 }
 0x3d8   :  { %v9443_v10 = vpop.eup %9442 }
 0x3d9   :  { %v1441_v16 = vmul.f32 %v9443_v10, %v1437_v9  ;;  %v1502_v9 = vld [vmem:[%s11635_s8 + $0x1d0] sm:$0xff] }
 0x3da   :  { %v1506_v10 = vld [vmem:[%s11635_s8 + $0x1f0] sm:$0xff] }
 0x3db   :  { %v1442_v15 = vadd.f32 %v1441_v16, %v1419_v1  ;;  %v1486_v1 = vld [vmem:[%s11635_s8 + $0x150] sm:$0xff]  ;;  %v7665_v16 = vcombine.low %v1494_v5, %v1498_v6  ;;  %v7674_v12 = vcombine.high %v1502_v9, %v1506_v10 }
 0x3dc   :  { %v7658_v4 = vcombine.high %v1486_v1, %v1490_v2  ;;  %v7657_v7 = vcombine.low %v1486_v1, %v1490_v2 }
 0x3dd   :  { %v9866_v18 = vpack.c.bf16 %v1442_v15, %v1442_v15  ;;  %v1451_v15 = vld [vmem:[%s11635_s8 + $0x38] sm:$0xff] }
 0x3de   :  { %v7620_v19 = vcombine.high %v1447_v14, %v1451_v15 }
 0x3df   :  { %1903 = vmatmul.mubr.bf16.vlgmr.msra.gmra.mrb[8].mxu1 %v9866_v18 }
 0x3e0   :  { %1912 = vmatpush1.bf16.msra.mxu1 %v7615_v56  ;;  %1943 = vmatprep.mubr.bf16.mxu1 %v9555_v11  ;;  %v7634_v56 = vcombine.high %v1462_v53, %v1466_v54 }
 0x3e1   :  { %1913 = vmatprep.subr.bf16.mxu1 %v7624_v17  ;;  %v7673_v17 = vcombine.low %v1502_v9, %v1506_v10  ;;  %v1528_v10 = vsub.s32 4, %v9692_v13 }
 0x3e4   :  { %1914 = vmatpush1.bf16.msra.mxu1 %v7623_v21  ;;  %v1459_v21 = vld [vmem:[%s11635_s8 + $0x78] sm:$0xff] }
 0x3e5   :  { %1915 = vmatprep.subr.bf16.mxu1 %v7632_v22  ;;  %v7619_v22 = vcombine.low %v1447_v14, %v1451_v15  ;;  %v7628_v23 = vcombine.high %v1455_v20, %v1459_v21  ;;  %v1532_v14 = vsub.s32 5, %v9692_v13 }
 0x3e8   :  { %1916 = vmatpush1.bf16.msra.mxu1 %v7631_v25  ;;  %v1467_v25 = vld [vmem:[%s11635_s8 + $0xb8] sm:$0xff] }
 0x3e9   :  { %1917 = vmatprep.subr.bf16.mxu1 %v7640_v26  ;;  %v7627_v26 = vcombine.low %v1455_v20, %v1459_v21  ;;  %v7636_v27 = vcombine.high %v1463_v24, %v1467_v25 }
 0x3ec   :  { %1918 = vmatpush1.bf16.msra.mxu1 %v7639_v29  ;;  %v1475_v29 = vld [vmem:[%s11635_s8 + $0xf8] sm:$0xff] }
 0x3ed   :  { %1919 = vmatprep.subr.bf16.mxu1 %v7648_v30  ;;  %v7635_v30 = vcombine.low %v1463_v24, %v1467_v25  ;;  %v7644_v31 = vcombine.high %v1471_v28, %v1475_v29 }
 0x3f0   :  { %1920 = vmatpush1.bf16.msra.mxu1 %v7647_v33  ;;  %v1483_v33 = vld [vmem:[%s11635_s8 + $0x138] sm:$0xff] }
 0x3f1   :  { %1921 = vmatprep.subr.bf16.mxu1 %v7656_v34  ;;  %v7643_v34 = vcombine.low %v1471_v28, %v1475_v29  ;;  %v7652_v35 = vcombine.high %v1479_v32, %v1483_v33  ;;  %v9048_v28 = vld [vmem:[#allocation9 + $0x30] sm:$0xff]   ;;  %v9049_v29 = vld [vmem:[#allocation9 + $0x38] sm:$0xff]  }
 0x3f4   :  { %1922 = vmatpush1.bf16.msra.mxu1 %v7655_v37  ;;  %v1491_v37 = vld [vmem:[%s11635_s8 + $0x178] sm:$0xff] }
 0x3f5   :  { %1923 = vmatprep.subr.bf16.mxu1 %v7664_v38  ;;  %v7651_v38 = vcombine.low %v1479_v32, %v1483_v33  ;;  %v7660_v39 = vcombine.high %v1487_v36, %v1491_v37  ;;  %v9050_v32 = vld [vmem:[#allocation9] sm:$0xff]  }
 0x3f8   :  { %1924 = vmatpush1.bf16.msra.mxu1 %v7663_v41  ;;  %v1499_v41 = vld [vmem:[%s11635_s8 + $0x1b8] sm:$0xff] }
 0x3f9   :  { %1925 = vmatprep.subr.bf16.mxu1 %v7672_v42  ;;  %v7659_v42 = vcombine.low %v1487_v36, %v1491_v37  ;;  %v7668_v43 = vcombine.high %v1495_v40, %v1499_v41 }
 0x3fc   :  { %1926 = vmatpush1.bf16.msra.mxu1 %v7671_v45  ;;  %v1507_v45 = vld [vmem:[%s11635_s8 + $0x1f8] sm:$0xff] }
 0x3fd   :  { %1952 = vmatprep.subr.bf16.mxu1 %v7618_v47  ;;  %v7667_v47 = vcombine.low %v1495_v40, %v1499_v41  ;;  %v7676_v49 = vcombine.high %v1503_v44, %v1507_v45 }
 0x3ff   :  { %1944 = vmatmul.mubr.bf16.vlgmr.msra.gmra.mrb[12].mxu1 %v9866_v18 }
 0x400   :  { %1953 = vmatpush1.bf16.msra.mxu1 %v7617_v51  ;;  %1984 = vmatprep.mubr.bf16.mxu1 %v9555_v11  ;;  %v7675_v51 = vcombine.low %v1503_v44, %v1507_v45 }
 0x401   :  { %1954 = vmatprep.subr.bf16.mxu1 %v7626_v52  ;;  %v10019_v52 = vld [vmem:[%s11636_s9] sm:$0xff] }
 0x402   :  { %v1513_v53 = vrot.slane %v10019_v52, %v9779_v46  ;;  %v1517_v54 = vrot.slane %v10019_v52, %v9785_v48  ;;  %v1529_v15 = vrot.slane %v10019_v52, %v1528_v10  ;;  %v9054_v10 = vld [vmem:[#allocation9 + $0x40] sm:$0xff]  }
 0x404   :  { %1955 = vmatpush1.bf16.msra.mxu1 %v7625_v55 }
 0x405   :  { %1956 = vmatprep.subr.bf16.mxu1 %v7634_v56 }
 0x408   :  { %1957 = vmatpush1.bf16.msra.mxu1 %v7633_v59 }
 0x409   :  { %1958 = vmatprep.subr.bf16.mxu1 %v7642_v60 }
 0x40c   :  { %1959 = vmatpush1.bf16.msra.mxu1 %v7641_v63  ;;  %v1524_v63 = vsub.s32 3, %v9692_v13 }
 0x40d   :  { %1960 = vmatprep.subr.bf16.mxu1 %v7650_v0  ;;  %v1521_v0 = vrot.slane %v10019_v52, %v1520_v62 }
 0x40e   :  { %v1525_v1 = vrot.slane %v10019_v52, %v1524_v63 }
 0x410   :  { %1961 = vmatpush1.bf16.msra.mxu1 %v7649_v3 }
 0x411   :  { %1962 = vmatprep.subr.bf16.mxu1 %v7658_v4 }
 0x414   :  { %1963 = vmatpush1.bf16.msra.mxu1 %v7657_v7 }
 0x415   :  { %1964 = vmatprep.subr.bf16.mxu1 %v7666_v8 }
 0x418   :  { %1965 = vmatpush1.bf16.msra.mxu1 %v7665_v16  ;;  %v9046_v16 = vld [vmem:[#allocation9 + $0x20] sm:$0xff]  }
 0x419   :  { %1966 = vmatprep.subr.bf16.mxu1 %v7674_v12  ;;  %v9047_v12 = vld [vmem:[#allocation9 + $0x28] sm:$0xff]  }
 0x41c   :  { %1967 = vmatpush1.bf16.msra.mxu1 %v7673_v17  ;;  %v1533_v17 = vrot.slane %v10019_v52, %v1532_v14 }
 0x41d   :  { %1993 = vmatprep.subr.bf16.mxu1 %v7620_v19 }
 0x41f   :  { %1985 = vmatmul.mubr.bf16.vlgmr.msra.gmra.mrb[16].mxu1 %v9866_v18 }
 0x420   :  { %1994 = vmatpush1.bf16.msra.mxu1 %v7619_v22  ;;  %2025 = vmatprep.mubr.bf16.mxu1 %v9555_v11 }
 0x421   :  { %1995 = vmatprep.subr.bf16.mxu1 %v7628_v23 }
 0x424   :  { %1996 = vmatpush1.bf16.msra.mxu1 %v7627_v26 }
 0x425   :  { %1997 = vmatprep.subr.bf16.mxu1 %v7636_v27  ;;  %v1536_v27 = vsub.s32 6, %v9692_v13 }
 0x428   :  { %1998 = vmatpush1.bf16.msra.mxu1 %v7635_v30  ;;  %v1540_v30 = vsub.s32 7, %v9692_v13 }
 0x429   :  { %1999 = vmatprep.subr.bf16.mxu1 %v7644_v31  ;;  %v1537_v31 = vrot.slane %v10019_v52, %v1536_v27  ;;  %v9057_v27 = vld [vmem:[#allocation9 + $0x58] sm:$0xff]  }
 0x42a   :  { %v1541_v33 = vrot.slane %v10019_v52, %v1540_v30 }
 0x42c   :  { %2000 = vmatpush1.bf16.msra.mxu1 %v7643_v34 }
 0x42d   :  { %2001 = vmatprep.subr.bf16.mxu1 %v7652_v35 }
 0x430   :  { %2002 = vmatpush1.bf16.msra.mxu1 %v7651_v38 }
 0x431   :  { %2003 = vmatprep.subr.bf16.mxu1 %v7660_v39 }
 0x434   :  { %2004 = vmatpush1.bf16.msra.mxu1 %v7659_v42 }
 0x435   :  { %2005 = vmatprep.subr.bf16.mxu1 %v7668_v43 }
 0x438   :  { %2006 = vmatpush1.bf16.msra.mxu1 %v7667_v47 }
 0x439   :  { %2007 = vmatprep.subr.bf16.mxu1 %v7676_v49 }
 0x43c   :  { %2008 = vmatpush1.bf16.msra.mxu1 %v7675_v51 }
 0x43d   :  { %8500 = vmatprep.subr.bf16.mxu1 %v9046_v16 }
 0x43f   :  { %2026 = vmatmul.mubr.bf16.vlgmr.msra.gmra.mrb[20].mxu1 %v9866_v18 }
 0x440   :  { %8501 = vmatpush3.bf16.msra.mxu1 %v9046_v16 }
 0x441   :  { %8502 = vmatprep.subr.bf16.mxu1 %v9047_v12 }
 0x444   :  { %8503 = vmatpush3.bf16.msra.mxu1 %v9047_v12  ;;  %v10099_v12 = vld [vmem:[#allocation2 + $0x20] sm:$0xff] }
 0x445   :  { %8504 = vmatprep.subr.bf16.mxu1 %v9048_v28 }
 0x448   :  { %8505 = vmatpush3.bf16.msra.mxu1 %v9048_v28 }
 0x449   :  { %8506 = vmatprep.subr.bf16.mxu1 %v9049_v29 }
 0x44c   :  { %8507 = vmatpush3.bf16.msra.mxu1 %v9049_v29  ;;  %v9058_v29 = vld [vmem:[#allocation9 + $0x60] sm:$0xff]  }
 0x44d   :  { %8516 = vmatprep.subr.bf16.mxu1 %v9050_v32 }
 0x4b2   :  { %v1904_v55 = vpop.f32.mrb[8].mxu1 }
 0x4b3   :  { %v1905_v56 = vadd.f32 %v1904_v55, %v1513_v53  ;;  %v1906_v57 = vpop.f32.mrb[9].mxu1 }
 0x4b4   :  { %v1907_v58 = vadd.f32 %v1906_v57, %v1517_v54  ;;  %v1908_v59 = vpop.f32.mrb[10].mxu1  ;;  %v2169_v57 = vld [vmem:[#allocation2 + $0x21] sm:$0xff] }
 0x4b5   :  { %v2034_v60 = vmax.f32 %v1905_v56, 0.0  ;;  %v1909_v18 = vpop.f32.mrb[11].mxu1 }
 0x4b6   :  { %v2035_v61 = vmax.f32 %v1907_v58, 0.0 }
 0x4b7   :  { %2080 = vst.msk [vmem:[#allocation2 + $0x7] sm:$0x1] %vm2079_vm1, %v2034_v60  ;;  %2082 = vrot.lane.b32.xlu0 %v2034_v60, %s9552_s2 }
 0x4b8   :  { %2129 = vst.msk [vmem:[#allocation2 + $0x2a] sm:$0x2] %vm2128_vm2, %v2034_v60  ;;  %2131 = vst.msk [vmem:[#allocation2 + $0x2c] sm:$0x2] %vm2128_vm2, %v2035_v61 }
 0x4b9   :  { %2086 = vst.msk [vmem:[#allocation2 + $0x9] sm:$0x1] %vm2079_vm1, %v2035_v61 }
 0x4bb   :  { %2088 = vrot.lane.b32.xlu0 %v2035_v61, %s9552_s2  ;;  %v9051_v61 = vld [vmem:[#allocation9 + $0x8] sm:$0xff]  }
 0x4d2   :  { %v1945_v2 = vpop.f32.mrb[12].mxu1 }
 0x4d3   :  { %v1946_v3 = vadd.f32 %v1945_v2, %v1521_v0  ;;  %v1947_v4 = vpop.f32.mrb[13].mxu1  ;;  %v9052_v2 = vld [vmem:[#allocation9 + $0x10] sm:$0xff]  }
 0x4d4   :  { %v1948_v5 = vadd.f32 %v1947_v4, %v1525_v1  ;;  %v1949_v6 = vpop.f32.mrb[14].mxu1 }
 0x4d5   :  { %v2036_v7 = vmax.f32 %v1946_v3, 0.0  ;;  %v1950_v8 = vpop.f32.mrb[15].mxu1 }
 0x4d6   :  { %v2037_v9 = vmax.f32 %v1948_v5, 0.0  ;;  %v9053_v8 = vld [vmem:[#allocation9 + $0x18] sm:$0xff]  }
 0x4d7   :  { %2092 = vst.msk [vmem:[#allocation2 + $0xd] sm:$0x1] %vm2079_vm1, %v2036_v7  ;;  %2094 = vrot.lane.b32.xlu1 %v2036_v7, %s9552_s2 }
 0x4d8   :  { %2133 = vst.msk [vmem:[#allocation2 + $0x30] sm:$0x2] %vm2128_vm2, %v2036_v7  ;;  %2135 = vst.msk [vmem:[#allocation2 + $0x32] sm:$0x2] %vm2128_vm2, %v2037_v9  ;;  %v2145_v7 = vld [vmem:[#allocation2] sm:$0xff] }
 0x4d9   :  { %2098 = vst.msk [vmem:[#allocation2 + $0xf] sm:$0x1] %vm2079_vm1, %v2037_v9 }
 0x4db   :  { %2100 = vrot.lane.b32.xlu1 %v2037_v9, %s9552_s2 }
 0x4f2   :  { %v1986_v19 = vpop.f32.mrb[16].mxu1 }
 0x4f3   :  { %v1987_v20 = vadd.f32 %v1986_v19, %v1529_v15  ;;  %v1988_v21 = vpop.f32.mrb[17].mxu1  ;;  %v9055_v19 = vld [vmem:[#allocation9 + $0x48] sm:$0xff]  }
 0x4f4   :  { %v1989_v22 = vadd.f32 %v1988_v21, %v1533_v17  ;;  %v1990_v23 = vpop.f32.mrb[18].mxu1  ;;  %v9056_v21 = vld [vmem:[#allocation9 + $0x50] sm:$0xff]  }
 0x4f5   :  { %v2038_v24 = vmax.f32 %v1987_v20, 0.0  ;;  %v1991_v25 = vpop.f32.mrb[19].mxu1 }
 0x4f6   :  { %v2039_v26 = vmax.f32 %v1989_v22, 0.0 }
 0x4f7   :  { %2104 = vst.msk [vmem:[#allocation2 + $0x13] sm:$0x1] %vm2079_vm1, %v2038_v24  ;;  %2106 = vrot.lane.b32.xlu0 %v2038_v24, %s9552_s2 }
 0x4f8   :  { %2137 = vst.msk [vmem:[#allocation2 + $0x36] sm:$0x2] %vm2128_vm2, %v2038_v24  ;;  %2139 = vst.msk [vmem:[#allocation2 + $0x38] sm:$0x2] %vm2128_vm2, %v2039_v26  ;;  %2112 = vrot.lane.b32.xlu1 %v2039_v26, %s9552_s2 }
 0x4f9   :  { %2110 = vst.msk [vmem:[#allocation2 + $0x15] sm:$0x1] %vm2079_vm1, %v2039_v26 }
 0x512   :  { %v2027_v34 = vpop.f32.mrb[20].mxu1 }
 0x513   :  { %v2028_v35 = vadd.f32 %v2027_v34, %v1537_v31  ;;  %v2029_v36 = vpop.f32.mrb[21].mxu1  ;;  %v2389_v31 = vld [vmem:[#allocation2 + $0x22] sm:$0xff] }
 0x514   :  { %v2030_v37 = vadd.f32 %v2029_v36, %v1541_v33  ;;  %v2031_v38 = vpop.f32.mrb[22].mxu1 }
 0x515   :  { %v2040_v39 = vmax.f32 %v2028_v35, 0.0  ;;  %v2032_v40 = vpop.f32.mrb[23].mxu1  ;;  %v9059_v35 = vld [vmem:[#allocation9 + $0x68] sm:$0xff]  }
 0x516   :  { %v2041_v41 = vmax.f32 %v2030_v37, 0.0  ;;  %v9060_v37 = vld [vmem:[#allocation9 + $0x70] sm:$0xff]  }
 0x517   :  { %2116 = vst.msk [vmem:[#allocation2 + $0x19] sm:$0x1] %vm2079_vm1, %v2040_v39  ;;  %2118 = vrot.lane.b32.xlu0 %v2040_v39, %s9552_s2 }
 0x518   :  { %2141 = vst.msk [vmem:[#allocation2 + $0x3c] sm:$0x2] %vm2128_vm2, %v2040_v39  ;;  %2143 = vst.msk [vmem:[#allocation2 + $0x3e] sm:$0x2] %vm2128_vm2, %v2041_v41  ;;  %2124 = vrot.lane.b32.xlu1 %v2041_v41, %s9552_s2 }
 0x519   :  { %2122 = vst.msk [vmem:[#allocation2 + $0x1b] sm:$0x1] %vm2079_vm1, %v2041_v41 }
 0x529   :  { %v2083_v13 = vpop.permute.xlu0 %2082 }
 0x52a   :  { %2085 = vst.msk [vmem:[#allocation2 + $0x8] sm:$0x1] %vm2079_vm1, %v2083_v13 }
 0x52b   :  { %2130 = vst.msk [vmem:[#allocation2 + $0x2b] sm:$0x2] %vm2128_vm2, %v2083_v13  ;;  %v9061_v13 = vld [vmem:[#allocation9 + $0x78] sm:$0xff]  }
 0x52d   :  { %v2089_v42 = vpop.permute.xlu0 %2088 }
 0x52e   :  { %2091 = vst.msk [vmem:[#allocation2 + $0xa] sm:$0x1] %vm2079_vm1, %v2089_v42 }
 0x52f   :  { %2132 = vst.msk [vmem:[#allocation2 + $0x2d] sm:$0x2] %vm2128_vm2, %v2089_v42 }
 0x531   :  { %v2165_v45 = vld [vmem:[#allocation2 + $0x1] sm:$0xff] }
 0x532   :  { %v2385_v26 = vld [vmem:[#allocation2 + $0x2] sm:$0xff] }
 0x535   :  { %v2512_v41 = vld [vmem:[#allocation2 + $0x6] sm:$0xff] }
 0x536   :  { %v2170_v58 = vld [vmem:[#allocation2 + $0x29] sm:$0xff] }
 0x537   :  { %v2175_v0 = vpack.c.bf16 %v2170_v58, %v2169_v57  ;;  %v10101_v14 = vld [vmem:[#allocation2 + $0x28] sm:$0xff] }
 0x538   :  { %v2155_v20 = vpack.c.bf16 %v10101_v14, %v10099_v12 }
 0x549   :  { %v2095_v43 = vpop.permute.xlu1 %2094 }
 0x54a   :  { %2097 = vst.msk [vmem:[#allocation2 + $0xe] sm:$0x1] %vm2079_vm1, %v2095_v43 }
 0x54b   :  { %2134 = vst.msk [vmem:[#allocation2 + $0x31] sm:$0x2] %vm2128_vm2, %v2095_v43  ;;  %v9062_v43 = vld [vmem:[#allocation9 + $0x80] sm:$0xff]  }
 0x54d   :  { %v2101_v44 = vpop.permute.xlu1 %2100 }
 0x54e   :  { %2103 = vst.msk [vmem:[#allocation2 + $0x10] sm:$0x1] %vm2079_vm1, %v2101_v44 }
 0x54f   :  { %2136 = vst.msk [vmem:[#allocation2 + $0x33] sm:$0x2] %vm2128_vm2, %v2101_v44  ;;  %v10121_v44 = vld [vmem:[#allocation2 + $0x1e] sm:$0xff] }
 0x551   :  { %v10092_v5 = vld [vmem:[#allocation2 + $0x8] sm:$0xff] }
 0x552   :  { %v2153_v9 = vpack.c.bf16 %v10092_v5, %v2145_v7  ;;  %v2639_v58 = vld [vmem:[#allocation2 + $0x7] sm:$0xff] }
 0x555   :  { %v2166_v47 = vld [vmem:[#allocation2 + $0x9] sm:$0xff] }
 0x556   :  { %v2173_v49 = vpack.c.bf16 %v2166_v47, %v2165_v45  ;;  %v10074_v52 = vld [vmem:[#allocation2 + $0x2e] sm:$0xff]  ;;  %v10125_v47 = vld [vmem:[#allocation2 + $0x26] sm:$0xff] }
 0x557   :  { %v2386_v23 = vld [vmem:[#allocation2 + $0xa] sm:$0xff] }
 0x558   :  { %8508 = vmatprep.mubr.msk.bf16.mxu1 %vm2042_vm0, %v2173_v49  ;;  %v10111_v24 = vld [vmem:[#allocation2 + $0x30] sm:$0xff]  ;;  %v2393_v28 = vpack.c.bf16 %v2386_v23, %v2385_v26  ;;  %v9063_v49 = vld [vmem:[#allocation9 + $0x88] sm:$0xff]  }
 0x559   :  { %v9071_v23 = vld [vmem:[#allocation9 + $0xc8] sm:$0xff]  }
 0x569   :  { %v2107_v50 = vpop.permute.xlu0 %2106 }
 0x56a   :  { %2109 = vst.msk [vmem:[#allocation2 + $0x14] sm:$0x1] %vm2079_vm1, %v2107_v50  ;;  %v2113_v51 = vpop.permute.xlu1 %2112 }
 0x56b   :  { %2138 = vst.msk [vmem:[#allocation2 + $0x37] sm:$0x2] %vm2128_vm2, %v2107_v50  ;;  %2140 = vst.msk [vmem:[#allocation2 + $0x39] sm:$0x2] %vm2128_vm2, %v2113_v51  ;;  %v2522_v50 = vpack.c.bf16 %v10074_v52, %v10125_v47 }
 0x56c   :  { %2115 = vst.msk [vmem:[#allocation2 + $0x16] sm:$0x1] %vm2079_vm1, %v2113_v51  ;;  %v9064_v51 = vld [vmem:[#allocation9 + $0x90] sm:$0xff]  }
 0x571   :  { %v10084_v62 = vld [vmem:[#allocation2 + $0xe] sm:$0xff] }
 0x572   :  { %v10076_v53 = vld [vmem:[#allocation2 + $0x36] sm:$0xff]  ;;  %v2520_v42 = vpack.c.bf16 %v10084_v62, %v2512_v41  ;;  %v3020_v41 = vld [vmem:[#allocation2 + $0xd] sm:$0xff] }
 0x573   :  { %v3157_v54 = vpack.c.bf16 %v10076_v53, %v10074_v52  ;;  %v2167_v59 = vld [vmem:[#allocation2 + $0x11] sm:$0xff]  ;;  %v2172_v4 = vld [vmem:[#allocation2 + $0x39] sm:$0x3] }
 0x574   :  { %v2171_v3 = vld [vmem:[#allocation2 + $0x31] sm:$0xff]  ;;  %v2392_v39 = vld [vmem:[#allocation2 + $0x3a] sm:$0x3] }
 0x575   :  { %v2176_v6 = vpack.c.bf16 %v2172_v4, %v2171_v3  ;;  %v10103_v15 = vld [vmem:[#allocation2 + $0x10] sm:$0xff]  ;;  %v2152_v22 = vld [vmem:[#allocation2 + $0x38] sm:$0x3]  ;;  %v2643_v4 = vld [vmem:[#allocation2 + $0x27] sm:$0xff] }
 0x576   :  { %v2156_v25 = vpack.c.bf16 %v2152_v22, %v10111_v24  ;;  %v2387_v33 = vld [vmem:[#allocation2 + $0x12] sm:$0xff] }
 0x577   :  { %v2391_v38 = vld [vmem:[#allocation2 + $0x32] sm:$0xff] }
 0x578   :  { %v2396_v40 = vpack.c.bf16 %v2392_v39, %v2391_v38  ;;  %v2900_v38 = vld [vmem:[#allocation2 + $0x44] sm:$0x3]  ;;  %v9085_v52 = vld [vmem:[%s11639_s12 + $0x90] ss:$8 sps:$4 sm:$0xff]  }
 0x589   :  { %v2119_v55 = vpop.permute.xlu0 %2118 }
 0x58a   :  { %2121 = vst.msk [vmem:[#allocation2 + $0x1a] sm:$0x1] %vm2079_vm1, %v2119_v55  ;;  %v2125_v56 = vpop.permute.xlu1 %2124 }
 0x58b   :  { %2142 = vst.msk [vmem:[#allocation2 + $0x3d] sm:$0x2] %vm2128_vm2, %v2119_v55  ;;  %2144 = vst.msk [vmem:[#allocation2 + $0x3f] sm:$0x2] %vm2128_vm2, %v2125_v56 }
 0x58c   :  { %2127 = vst.msk [vmem:[#allocation2 + $0x1c] sm:$0x1] %vm2079_vm1, %v2125_v56  ;;  %v2640_v56 = vld [vmem:[#allocation2 + $0xf] sm:$0xff] }
 0x592   :  { %v2519_v55 = vld [vmem:[#allocation2 + $0x3e] sm:$0x3]  ;;  %v2773_v26 = vld [vmem:[#allocation2 + $0x40] sm:$0x3] }
 0x593   :  { %v2168_v60 = vld [vmem:[#allocation2 + $0x19] sm:$0xff]  ;;  %v2523_v57 = vpack.c.bf16 %v2519_v55, %v10076_v53  ;;  %v3024_v55 = vld [vmem:[#allocation2 + $0x2d] sm:$0xff] }
 0x594   :  { %v2174_v18 = vpack.c.bf16 %v2168_v60, %v2167_v59  ;;  %v10086_v63 = vld [vmem:[#allocation2 + $0x16] sm:$0xff]  ;;  %v2647_v60 = vpack.c.bf16 %v2640_v56, %v2639_v58  ;;  %v9079_v56 = vld [vmem:[#allocation9 + $0x108] sm:$0xff]  }
 0x595   :  { %v3155_v1 = vpack.c.bf16 %v10086_v63, %v10084_v62  ;;  %v10097_v16 = vld [vmem:[#allocation2 + $0x18] sm:$0xff]  ;;  %v2521_v45 = vpack.c.bf16 %v10121_v44, %v10086_v63  ;;  %v9080_v58 = vld [vmem:[#allocation9 + $0x110] sm:$0xff]   ;;  %v9082_v62 = vld [vmem:[%s11639_s12 + $0x80] ss:$8 sps:$4 sm:$0xff]  }
 0x596   :  { %8509 = vmatmul.mubr.msk.bf16.vlgmr.msra.gmra.mrb[24].mxu1 %vm2042_vm0, %v2174_v18  ;;  %v2154_v17 = vpack.c.bf16 %v10097_v16, %v10103_v15  ;;  %v2388_v30 = vld [vmem:[#allocation2 + $0x1a] sm:$0xff]  ;;  %v2775_v22 = vpack.c.bf16 %v10099_v12, %v10097_v16  ;;  %v9084_v63 = vld [vmem:[%s11639_s12 + $0x84] ss:$8 sps:$4 sm:$0xff]  }
 0x597   :  { %8517 = vmatpush3.bf16.msra.mxu1 %v9050_v32  ;;  %8512 = vmatprep.mubr.msk.bf16.mxu1 %vm2042_vm0, %v2175_v0  ;;  %v2390_v32 = vld [vmem:[#allocation2 + $0x2a] sm:$0xff]  ;;  %v2394_v34 = vpack.c.bf16 %v2388_v30, %v2387_v33  ;;  %v9065_v59 = vld [vmem:[#allocation9 + $0x98] sm:$0xff]   ;;  %v9066_v18 = vld [vmem:[#allocation9 + $0xa0] sm:$0xff]  }
 0x598   :  { %8518 = vmatprep.subr.bf16.mxu1 %v9051_v61  ;;  %v2395_v36 = vpack.c.bf16 %v2390_v32, %v2389_v31  ;;  %v2642_v0 = vld [vmem:[#allocation2 + $0x1f] sm:$0xff]  ;;  %v2897_v33 = vld [vmem:[#allocation2 + $0x2c] sm:$0xff]  ;;  %v3021_v39 = vld [vmem:[#allocation2 + $0x15] sm:$0xff]  ;;  %3441 = vmatprep.subr.bf16.mxu0 %v9084_v63 }
 0x599   :  { %v9073_v30 = vld [vmem:[#allocation9 + $0xd8] sm:$0xff]   ;;  %v9074_v12 = vld [vmem:[#allocation9 + $0xe0] sm:$0xff]   ;;  %3442 = vmatpush1.bf16.msra.mxu0 %v9082_v62 }
 0x59a   :  { %v2896_v31 = vld [vmem:[#allocation2 + $0x24] sm:$0xff] }
 0x59b   :  { %8519 = vmatpush3.bf16.msra.mxu1 %v9051_v61  ;;  %v2641_v61 = vld [vmem:[#allocation2 + $0x17] sm:$0xff]  ;;  %v9090_v53 = vld [vmem:[%s11639_s12 + $0xa4] ss:$8 sps:$4 sm:$0xff]  }
 0x59c   :  { %8520 = vmatprep.subr.bf16.mxu1 %v9052_v2  ;;  %v2648_v3 = vpack.c.bf16 %v2642_v0, %v2641_v61  ;;  %v9081_v61 = vld [vmem:[#allocation9 + $0x118] sm:$0xff]   ;;  %v3156_v0 = vpack.c.bf16 %v10125_v47, %v10121_v44 }
 0x59d   :  { %v9093_v44 = vld [vmem:[%s11639_s12 + $0xb4] ss:$8 sps:$4 sm:$0xff]   ;;  %v9091_v47 = vld [vmem:[%s11639_s12 + $0xb0] ss:$8 sps:$4 sm:$0xff]  }
 0x59e   :  { %8513 = vmatmul.mubr.msk.bf16.gmra.mrb[28].mxu1 %vm2042_vm0, %v2176_v6  ;;  %v9067_v6 = vld [vmem:[#allocation9 + $0xa8] sm:$0xff]  }
 0x59f   :  { %8521 = vmatpush3.bf16.msra.mxu1 %v9052_v2  ;;  %8524 = vmatprep.mubr.msk.bf16.mxu1 %vm2042_vm0, %v2153_v9  ;;  %v2644_v2 = vld [vmem:[#allocation2 + $0x2f] sm:$0xff]  ;;  %v2645_v9 = vld [vmem:[#allocation2 + $0x37] sm:$0xff] }
 0x5a0   :  { %8522 = vmatprep.subr.bf16.mxu1 %v9053_v8  ;;  %v2649_v7 = vpack.c.bf16 %v2644_v2, %v2643_v4  ;;  %v3153_v2 = vld [vmem:[#allocation2 + $0x3e] sm:$0xff] }
 0x5a3   :  { %8523 = vmatpush3.bf16.msra.mxu1 %v9053_v8  ;;  %v9068_v8 = vld [vmem:[#allocation9 + $0xb0] sm:$0xff]  }
 0x5a4   :  { %8532 = vmatprep.subr.bf16.mxu1 %v9054_v10 }
 0x5a6   :  { %8525 = vmatmul.mubr.msk.bf16.vlgmr.msra.gmra.mrb[32].mxu1 %vm2042_vm0, %v2154_v17 }
 0x5a7   :  { %8533 = vmatpush3.bf16.msra.mxu1 %v9054_v10  ;;  %8528 = vmatprep.mubr.msk.bf16.mxu1 %vm2042_vm0, %v2155_v20  ;;  %v2646_v10 = vld [vmem:[#allocation2 + $0x3f] sm:$0x3]  ;;  %v2774_v20 = vpack.c.bf16 %v10103_v15, %v10092_v5  ;;  %v9072_v5 = vld [vmem:[#allocation9 + $0xd0] sm:$0xff]  }
 0x5a8   :  { %8534 = vmatprep.subr.bf16.mxu1 %v9055_v19  ;;  %v2650_v17 = vpack.c.bf16 %v2646_v10, %v2645_v9  ;;  %v2772_v15 = vld [vmem:[#allocation2 + $0x38] sm:$0xff]  ;;  %v9096_v10 = vld [vmem:[%s11639_s12 + $0xc4] ss:$8 sps:$4 sm:$0xff]  }
 0x5ab   :  { %8535 = vmatpush3.bf16.msra.mxu1 %v9055_v19  ;;  %v9069_v19 = vld [vmem:[#allocation9 + $0xb8] sm:$0xff]  }
 0x5ac   :  { %8536 = vmatprep.subr.bf16.mxu1 %v9056_v21 }
 0x5ae   :  { %8529 = vmatmul.mubr.msk.bf16.gmra.mrb[28].mxu1 %vm2042_vm0, %v2156_v25  ;;  %v2776_v25 = vpack.c.bf16 %v10111_v24, %v10101_v14  ;;  %v2895_v14 = vld [vmem:[#allocation2 + $0x1c] sm:$0xff]  ;;  %v2898_v24 = vld [vmem:[#allocation2 + $0x34] sm:$0xff] }
 0x5af   :  { %8537 = vmatpush3.bf16.msra.mxu1 %v9056_v21  ;;  %8540 = vmatprep.mubr.msk.bf16.mxu1 %vm2042_vm0, %v2393_v28  ;;  %v9070_v21 = vld [vmem:[#allocation9 + $0xc0] sm:$0xff]   ;;  %v2777_v28 = vpack.c.bf16 %v2773_v26, %v2772_v15  ;;  %v2902_v32 = vpack.c.bf16 %v2896_v31, %v2895_v14  ;;  %v9103_v26 = vld [vmem:[%s11639_s12 + $0xf0] ss:$8 sps:$4 sm:$0xff]  }
 0x5b0   :  { %8538 = vmatprep.subr.bf16.mxu1 %v9057_v27 }
 0x5b3   :  { %8539 = vmatpush3.bf16.msra.mxu1 %v9057_v27  ;;  %v2894_v27 = vld [vmem:[#allocation2 + $0x14] sm:$0xff] }
 0x5b4   :  { %8548 = vmatprep.subr.bf16.mxu1 %v9058_v29 }
 0x5b6   :  { %8541 = vmatmul.mubr.msk.bf16.vlgmr.msra.gmra.mrb[36].mxu1 %vm2042_vm0, %v2394_v34  ;;  %v9075_v34 = vld [vmem:[#allocation9 + $0xe8] sm:$0xff]  }
 0x5b7   :  { %8549 = vmatpush3.bf16.msra.mxu1 %v9058_v29  ;;  %8544 = vmatprep.mubr.msk.bf16.mxu1 %vm2042_vm0, %v2395_v36  ;;  %v2893_v29 = vld [vmem:[#allocation2 + $0xc] sm:$0xff] }
 0x5b8   :  { %8550 = vmatprep.subr.bf16.mxu1 %v9059_v35  ;;  %v2901_v16 = vpack.c.bf16 %v2894_v27, %v2893_v29  ;;  %v9076_v36 = vld [vmem:[#allocation9 + $0xf0] sm:$0xff]   ;;  %v9108_v29 = vld [vmem:[%s11639_s12 + $0x4] ss:$8 sps:$4 sm:$0xff]  }
 0x5bb   :  { %8551 = vmatpush3.bf16.msra.mxu1 %v9059_v35  ;;  %v2903_v35 = vpack.c.bf16 %v2898_v24, %v2897_v33 }
 0x5bc   :  { %8552 = vmatprep.subr.bf16.mxu1 %v9060_v37 }
 0x5be   :  { %8545 = vmatmul.mubr.msk.bf16.gmra.mrb[28].mxu1 %vm2042_vm0, %v2396_v40 }
 0x5bf   :  { %8553 = vmatpush3.bf16.msra.mxu1 %v9060_v37  ;;  %8556 = vmatprep.mubr.msk.bf16.mxu1 %vm2042_vm0, %v2520_v42  ;;  %v2899_v37 = vld [vmem:[#allocation2 + $0x3c] sm:$0xff]  ;;  %v3028_v42 = vpack.c.bf16 %v3021_v39, %v3020_v41 }
 0x5c0   :  { %8554 = vmatprep.subr.bf16.mxu1 %v9061_v13  ;;  %v2904_v40 = vpack.c.bf16 %v2900_v38, %v2899_v37 }
 0x5c3   :  { %8555 = vmatpush3.bf16.msra.mxu1 %v9061_v13  ;;  %v9077_v13 = vld [vmem:[#allocation9 + $0xf8] sm:$0xff]  }
 0x5c4   :  { %8564 = vmatprep.subr.bf16.mxu1 %v9062_v43 }
 0x5c6   :  { %8557 = vmatmul.mubr.msk.bf16.vlgmr.msra.gmra.mrb[40].mxu1 %vm2042_vm0, %v2521_v45  ;;  %v3022_v45 = vld [vmem:[#allocation2 + $0x1d] sm:$0xff] }
 0x5c7   :  { %8565 = vmatpush3.bf16.msra.mxu1 %v9062_v43  ;;  %8560 = vmatprep.mubr.msk.bf16.mxu1 %vm2042_vm0, %v2522_v50  ;;  %v9078_v43 = vld [vmem:[#allocation9 + $0x100] sm:$0xff]   ;;  %v3025_v50 = vld [vmem:[#allocation2 + $0x35] sm:$0xff] }
 0x5c8   :  { %8566 = vmatprep.subr.bf16.mxu1 %v9063_v49 }
 0x5cb   :  { %8567 = vmatpush3.bf16.msra.mxu1 %v9063_v49  ;;  %v3023_v49 = vld [vmem:[#allocation2 + $0x25] sm:$0xff] }
 0x5cc   :  { %8568 = vmatprep.subr.bf16.mxu1 %v9064_v51 }
 0x5ce   :  { %8561 = vmatmul.mubr.msk.bf16.gmra.mrb[28].mxu1 %vm2042_vm0, %v2523_v57  ;;  %v3030_v57 = vpack.c.bf16 %v3025_v50, %v3024_v55 }
 0x5cf   :  { %8569 = vmatpush3.bf16.msra.mxu1 %v9064_v51  ;;  %8572 = vmatprep.mubr.msk.bf16.mxu1 %vm2042_vm0, %v2647_v60  ;;  %v3029_v51 = vpack.c.bf16 %v3023_v49, %v3022_v45  ;;  %v3027_v60 = vld [vmem:[#allocation2 + $0x45] sm:$0x3] }
 0x5d0   :  { %8570 = vmatprep.subr.bf16.mxu1 %v9065_v59 }
 0x5d3   :  { %8571 = vmatpush3.bf16.msra.mxu1 %v9065_v59  ;;  %v3026_v59 = vld [vmem:[#allocation2 + $0x3d] sm:$0xff] }
 0x5d4   :  { %8580 = vmatprep.subr.bf16.mxu1 %v9066_v18 }
 0x5d6   :  { %8573 = vmatmul.mubr.msk.bf16.vlgmr.msra.gmra.mrb[44].mxu1 %vm2042_vm0, %v2648_v3  ;;  %v3154_v3 = vld [vmem:[#allocation2 + $0x46] sm:$0x3] }
 0x5d7   :  { %8581 = vmatpush3.bf16.msra.mxu1 %v9066_v18  ;;  %8576 = vmatprep.mubr.msk.bf16.mxu1 %vm2042_vm0, %v2649_v7  ;;  %v3031_v18 = vpack.c.bf16 %v3027_v60, %v3026_v59  ;;  %v3158_v4 = vpack.c.bf16 %v3154_v3, %v3153_v2 }
 0x5d8   :  { %8582 = vmatprep.subr.bf16.mxu1 %v9067_v6 }
 0x5db   :  { %8583 = vmatpush3.bf16.msra.mxu1 %v9067_v6 }
 0x5dc   :  { %8584 = vmatprep.subr.bf16.mxu1 %v9068_v8 }
 0x5de   :  { %8577 = vmatmul.mubr.msk.bf16.gmra.mrb[28].mxu1 %vm2042_vm0, %v2650_v17  ;;  %v9094_v17 = vld [vmem:[%s11639_s12 + $0xc0] ss:$8 sps:$4 sm:$0xff]  }
 0x5df   :  { %8585 = vmatpush3.bf16.msra.mxu1 %v9068_v8  ;;  %8588 = vmatprep.mubr.msk.bf16.mxu1 %vm2042_vm0, %v2774_v20  ;;  %v9099_v20 = vld [vmem:[%s11639_s12 + $0xd4] ss:$8 sps:$4 sm:$0xff]  }
 0x5e0   :  { %8586 = vmatprep.subr.bf16.mxu1 %v9069_v19 }
 0x5e3   :  { %8587 = vmatpush3.bf16.msra.mxu1 %v9069_v19  ;;  %v9097_v19 = vld [vmem:[%s11639_s12 + $0xd0] ss:$8 sps:$4 sm:$0xff]  }
 0x5e4   :  { %8596 = vmatprep.subr.bf16.mxu1 %v9070_v21 }
 0x5e6   :  { %8589 = vmatmul.mubr.msk.bf16.vlgmr.msra.gmra.mrb[48].mxu1 %vm2042_vm0, %v2775_v22  ;;  %v9100_v22 = vld [vmem:[%s11639_s12 + $0xe0] ss:$8 sps:$4 sm:$0xff]  }
 0x5e7   :  { %8597 = vmatpush3.bf16.msra.mxu1 %v9070_v21  ;;  %8592 = vmatprep.mubr.msk.bf16.mxu1 %vm2042_vm0, %v2776_v25  ;;  %v9102_v21 = vld [vmem:[%s11639_s12 + $0xe4] ss:$8 sps:$4 sm:$0xff]   ;;  %v9105_v25 = vld [vmem:[%s11639_s12 + $0xf4] ss:$8 sps:$4 sm:$0xff]  }
 0x5e8   :  { %8598 = vmatprep.subr.bf16.mxu1 %v9071_v23 }
 0x5eb   :  { %8599 = vmatpush3.bf16.msra.mxu1 %v9071_v23 }
 0x5ec   :  { %8600 = vmatprep.subr.bf16.mxu1 %v9072_v5 }
 0x5ee   :  { %8593 = vmatmul.mubr.msk.bf16.gmra.mrb[28].mxu1 %vm2042_vm0, %v2777_v28 }
 0x5ef   :  { %8601 = vmatpush3.bf16.msra.mxu1 %v9072_v5  ;;  %8604 = vmatprep.mubr.msk.bf16.mxu1 %vm2042_vm0, %v2901_v16 }
 0x5f0   :  { %8602 = vmatprep.subr.bf16.mxu1 %v9073_v30 }
 0x5f3   :  { %8603 = vmatpush3.bf16.msra.mxu1 %v9073_v30 }
 0x5f4   :  { %8612 = vmatprep.subr.bf16.mxu1 %v9074_v12 }
 0x5f6   :  { %8605 = vmatmul.mubr.msk.bf16.vlgmr.msra.gmra.mrb[52].mxu1 %vm2042_vm0, %v2902_v32 }
 0x5f7   :  { %8613 = vmatpush3.bf16.msra.mxu1 %v9074_v12  ;;  %8608 = vmatprep.mubr.msk.bf16.mxu1 %vm2042_vm0, %v2903_v35 }
 0x5f8   :  { %8614 = vmatprep.subr.bf16.mxu1 %v9075_v34 }
 0x5fb   :  { %8615 = vmatpush3.bf16.msra.mxu1 %v9075_v34 }
 0x5fc   :  { %8616 = vmatprep.subr.bf16.mxu1 %v9076_v36 }
 0x5fe   :  { %8609 = vmatmul.mubr.msk.bf16.gmra.mrb[28].mxu1 %vm2042_vm0, %v2904_v40 }
 0x5ff   :  { %8617 = vmatpush3.bf16.msra.mxu1 %v9076_v36  ;;  %8620 = vmatprep.mubr.msk.bf16.mxu1 %vm2042_vm0, %v3028_v42 }
 0x600   :  { %8618 = vmatprep.subr.bf16.mxu1 %v9077_v13 }
 0x603   :  { %8619 = vmatpush3.bf16.msra.mxu1 %v9077_v13 }
 0x604   :  { %8628 = vmatprep.subr.bf16.mxu1 %v9078_v43 }
 0x606   :  { %8621 = vmatmul.mubr.msk.bf16.vlgmr.msra.gmra.mrb[56].mxu1 %vm2042_vm0, %v3029_v51 }
 0x607   :  { %8629 = vmatpush3.bf16.msra.mxu1 %v9078_v43  ;;  %8624 = vmatprep.mubr.msk.bf16.mxu1 %vm2042_vm0, %v3030_v57 }
 0x608   :  { %8630 = vmatprep.subr.bf16.mxu1 %v9079_v56 }
 0x60b   :  { %8631 = vmatpush3.bf16.msra.mxu1 %v9079_v56 }
 0x60c   :  { %8632 = vmatprep.subr.bf16.mxu1 %v9080_v58 }
 0x60e   :  { %8625 = vmatmul.mubr.msk.bf16.gmra.mrb[28].mxu1 %vm2042_vm0, %v3031_v18 }
 0x60f   :  { %8633 = vmatpush3.bf16.msra.mxu1 %v9080_v58  ;;  %8636 = vmatprep.mubr.msk.bf16.mxu1 %vm2042_vm0, %v3155_v1  ;;  %v9087_v1 = vld [vmem:[%s11639_s12 + $0x94] ss:$8 sps:$4 sm:$0xff]  }
 0x610   :  { %8634 = vmatprep.subr.bf16.mxu1 %v9081_v61  ;;  %3443 = vmatprep.subr.bf16.mxu0 %v9087_v1 }
 0x611   :  { %3444 = vmatpush1.bf16.msra.mxu0 %v9085_v52 }
 0x612   :  { %3445 = vmatprep.subr.bf16.mxu0 %v9090_v53 }
 0x613   :  { %8635 = vmatpush3.bf16.msra.mxu1 %v9081_v61 }
 0x616   :  { %8637 = vmatmul.mubr.msk.bf16.vlgmr.msra.gmra.mrb[60].mxu1 %vm2042_vm0, %v3156_v0 }
 0x617   :  { %8640 = vmatprep.mubr.msk.bf16.mxu1 %vm2042_vm0, %v3157_v54  ;;  %v9088_v54 = vld [vmem:[%s11639_s12 + $0xa0] ss:$8 sps:$4 sm:$0xff]  }
 0x618   :  { %3446 = vmatpush1.bf16.msra.mxu0 %v9088_v54 }
 0x619   :  { %3447 = vmatprep.subr.bf16.mxu0 %v9093_v44 }
 0x61c   :  { %3448 = vmatpush1.bf16.msra.mxu0 %v9091_v47 }
 0x61d   :  { %3449 = vmatprep.subr.bf16.mxu0 %v9096_v10 }
 0x61e   :  { %8641 = vmatmul.mubr.msk.bf16.gmra.mrb[28].mxu1 %vm2042_vm0, %v3158_v4 }
 0x620   :  { %3450 = vmatpush1.bf16.msra.mxu0 %v9094_v17 }
 0x621   :  { %3451 = vmatprep.subr.bf16.mxu0 %v9099_v20 }
 0x624   :  { %3452 = vmatpush1.bf16.msra.mxu0 %v9097_v19 }
 0x625   :  { %3453 = vmatprep.subr.bf16.mxu0 %v9102_v21 }
 0x628   :  { %3454 = vmatpush1.bf16.msra.mxu0 %v9100_v22 }
 0x629   :  { %3455 = vmatprep.subr.bf16.mxu0 %v9105_v25 }
 0x62c   :  { %3456 = vmatpush1.bf16.msra.mxu0 %v9103_v26 }
 0x62d   :  { %3592 = vmatprep.subr.bf16.mxu0 %v9108_v29 }
 0x669   :  { %v8510_v6 = vpop.f32.mrb[24].mxu1 }
 0x66a   :  { %v2255_v7 = vpop.f32.mrb[25].mxu1 }
 0x66b   :  { %v8511_v8 = vpop.f32.mrb[26].mxu1 }
 0x66c   :  { %v2258_v9 = vpop.f32.mrb[27].mxu1  ;;  %v7749_v8 = vld [vmem:[%s11638_s11] ss:$0 sm:$0xff] }
 0x679   :  { %v8526_v23 = vpop.f32.mrb[32].mxu1 }
 0x67a   :  { %v2364_v5 = vadd.f32 %v8526_v23, %v8510_v6  ;;  %v2355_v15 = vpop.f32.mrb[33].mxu1 }
 0x67b   :  { %v2356_v27 = vadd.f32 %v2355_v15, %v2255_v7  ;;  %v8527_v28 = vpop.f32.mrb[34].mxu1 }
 0x67c   :  { %v2358_v30 = vpop.f32.mrb[35].mxu1 }
 0x67d   :  { %v2359_v16 = vadd.f32 %v2358_v30, %v2258_v9 }
 0x689   :  { %v8542_v12 = vpop.f32.mrb[36].mxu1 }
 0x68a   :  { %v2507_v14 = vadd.f32 %v8542_v12, %v2364_v5  ;;  %v2475_v24 = vpop.f32.mrb[37].mxu1 }
 0x68b   :  { %v2505_v31 = vadd.f32 %v2475_v24, %v2356_v27  ;;  %v8543_v32 = vpop.f32.mrb[38].mxu1 }
 0x68c   :  { %v2478_v33 = vpop.f32.mrb[39].mxu1 }
 0x68d   :  { %v2506_v34 = vadd.f32 %v2478_v33, %v2359_v16 }
 0x699   :  { %v8558_v35 = vpop.f32.mrb[40].mxu1 }
 0x69a   :  { %v2634_v36 = vadd.f32 %v8558_v35, %v2507_v14  ;;  %v2602_v37 = vpop.f32.mrb[41].mxu1  ;;  %v9106_v35 = vld [vmem:[%s11639_s12] ss:$8 sps:$4 sm:$0xff]  }
 0x69b   :  { %v2632_v38 = vadd.f32 %v2602_v37, %v2505_v31  ;;  %v8559_v39 = vpop.f32.mrb[42].mxu1 }
 0x69c   :  { %v2605_v40 = vpop.f32.mrb[43].mxu1 }
 0x69d   :  { %v2633_v41 = vadd.f32 %v2605_v40, %v2506_v34  ;;  %v9111_v40 = vld [vmem:[%s11639_s12 + $0x14] ss:$8 sps:$4 sm:$0xff]  }
 0x6a9   :  { %v8574_v13 = vpop.f32.mrb[44].mxu1 }
 0x6aa   :  { %v2761_v42 = vadd.f32 %v8574_v13, %v2634_v36  ;;  %v2729_v43 = vpop.f32.mrb[45].mxu1 }
 0x6ab   :  { %v2759_v45 = vadd.f32 %v2729_v43, %v2632_v38  ;;  %v8575_v49 = vpop.f32.mrb[46].mxu1 }
 0x6ac   :  { %v2732_v50 = vpop.f32.mrb[47].mxu1  ;;  %v9109_v49 = vld [vmem:[%s11639_s12 + $0x10] ss:$8 sps:$4 sm:$0xff]  }
 0x6ad   :  { %v2760_v51 = vadd.f32 %v2732_v50, %v2633_v41  ;;  %v10243_v50 = vld [vmem:[#allocation3 + $0x1e] sm:$0xff] }
 0x6b9   :  { %v8590_v55 = vpop.f32.mrb[48].mxu1 }
 0x6ba   :  { %v2888_v56 = vadd.f32 %v8590_v55, %v2761_v42  ;;  %v2856_v57 = vpop.f32.mrb[49].mxu1  ;;  %v9114_v55 = vld [vmem:[%s11639_s12 + $0x24] ss:$8 sps:$4 sm:$0xff]  }
 0x6bb   :  { %v2886_v58 = vadd.f32 %v2856_v57, %v2759_v45  ;;  %v8591_v59 = vpop.f32.mrb[50].mxu1 }
 0x6bc   :  { %v2859_v60 = vpop.f32.mrb[51].mxu1 }
 0x6bd   :  { %v2887_v18 = vadd.f32 %v2859_v60, %v2760_v51 }
 0x6c9   :  { %v8606_v61 = vpop.f32.mrb[52].mxu1 }
 0x6ca   :  { %v3015_v0 = vadd.f32 %v8606_v61, %v2888_v56  ;;  %v2983_v2 = vpop.f32.mrb[53].mxu1 }
 0x6cb   :  { %v3013_v3 = vadd.f32 %v2983_v2, %v2886_v58  ;;  %v8607_v4 = vpop.f32.mrb[54].mxu1 }
 0x6cc   :  { %v2986_v62 = vpop.f32.mrb[55].mxu1 }
 0x6cd   :  { %v3014_v63 = vadd.f32 %v2986_v62, %v2887_v18  ;;  %v9117_v62 = vld [vmem:[%s11639_s12 + $0x34] ss:$8 sps:$4 sm:$0xff]  }
 0x6d9   :  { %v8622_v1 = vpop.f32.mrb[56].mxu1 }
 0x6da   :  { %v3142_v52 = vadd.f32 %v8622_v1, %v3015_v0  ;;  %v3110_v53 = vpop.f32.mrb[57].mxu1  ;;  %v9112_v0 = vld [vmem:[%s11639_s12 + $0x20] ss:$8 sps:$4 sm:$0xff]   ;;  %v9120_v1 = vld [vmem:[%s11639_s12 + $0x44] ss:$8 sps:$4 sm:$0xff]  }
 0x6db   :  { %v3140_v54 = vadd.f32 %v3110_v53, %v3013_v3  ;;  %v8623_v44 = vpop.f32.mrb[58].mxu1 }
 0x6dc   :  { %v3113_v47 = vpop.f32.mrb[59].mxu1 }
 0x6dd   :  { %v3141_v6 = vadd.f32 %v3113_v47, %v3014_v63  ;;  %v9115_v63 = vld [vmem:[%s11639_s12 + $0x30] ss:$8 sps:$4 sm:$0xff]   ;;  %v9123_v47 = vld [vmem:[%s11639_s12 + $0x54] ss:$8 sps:$4 sm:$0xff]  }
 0x6e9   :  { %v8638_v7 = vpop.f32.mrb[60].mxu1 }
 0x6ea   :  { %v3269_v9 = vadd.f32 %v8638_v7, %v3142_v52  ;;  %v3237_v10 = vpop.f32.mrb[61].mxu1  ;;  %v3337_v52 = vld [vmem:[#allocation3 + $0x21] sm:$0xff] }
 0x6eb   :  { %v3267_v17 = vadd.f32 %v3237_v10, %v3140_v54  ;;  %v8639_v19 = vpop.f32.mrb[62].mxu1  ;;  %v9118_v54 = vld [vmem:[%s11639_s12 + $0x40] ss:$8 sps:$4 sm:$0xff]   ;;  %v9126_v7 = vld [vmem:[%s11639_s12 + $0x64] ss:$8 sps:$4 sm:$0xff]  }
 0x6ec   :  { %v3283_v20 = vadd.f32 %v7749_v8, %v3269_v9  ;;  %v3240_v21 = vpop.f32.mrb[63].mxu1  ;;  %v9124_v9 = vld [vmem:[%s11639_s12 + $0x60] ss:$8 sps:$4 sm:$0xff]   ;;  %v9129_v19 = vld [vmem:[%s11639_s12 + $0x74] ss:$8 sps:$4 sm:$0xff]  }
 0x6ed   :  { %v3281_v22 = vadd.f32 %v7749_v8, %v3267_v17  ;;  %v3268_v23 = vadd.f32 %v3240_v21, %v3141_v6  ;;  %v9121_v6 = vld [vmem:[%s11639_s12 + $0x50] ss:$8 sps:$4 sm:$0xff]   ;;  %v9132_v21 = vld [vmem:[%s11639_s12 + $0x104] ss:$8 sps:$4 sm:$0xff]  }
 0x6ee   :  { %v3290_v25 = vmax.f32 %v3283_v20, 0.0  ;;  %v9127_v20 = vld [vmem:[%s11639_s12 + $0x70] ss:$8 sps:$4 sm:$0xff]  }
 0x6ef   :  { %v3288_v5 = vmax.f32 %v3281_v22, 0.0  ;;  %v3282_v15 = vadd.f32 %v7749_v8, %v3268_v23  ;;  %v9130_v22 = vld [vmem:[%s11639_s12 + $0x100] ss:$8 sps:$4 sm:$0xff]  }
 0x6f0   :  { %3299 = vst [vmem:[#allocation3 + $0x17] sm:$0x3c] %v3290_v25 }
 0x6f1   :  { %3295 = vst [vmem:[#allocation3 + $0x7] sm:$0xcf] %v3288_v5   ;;  %v3289_v26 = vmax.f32 %v3282_v15, 0.0  ;;  %v8642_v27 = vpop.f32.mrb[28].mxu1  ;;  %v9135_v5 = vld [vmem:[%s11639_s12 + $0x114] ss:$8 sps:$4 sm:$0xff]  }
 0x6f2   :  { %v3286_v28 = vadd.f32 %v8642_v27, %v7749_v8  ;;  %v3252_v29 = vpop.f32.mrb[29].mxu1  ;;  %v9133_v15 = vld [vmem:[%s11639_s12 + $0x110] ss:$8 sps:$4 sm:$0xff]   ;;  %v9136_v27 = vld [vmem:[%s11639_s12 + $0x120] ss:$8 sps:$4 sm:$0xff]  }
 0x6f3   :  { %3297 = vst [vmem:[#allocation3 + $0xf] sm:$0xf3] %v3289_v26   ;;  %v3284_v30 = vadd.f32 %v7749_v8, %v3252_v29  ;;  %v8643_v16 = vpop.f32.mrb[30].mxu1  ;;  %v9138_v26 = vld [vmem:[%s11639_s12 + $0x124] ss:$8 sps:$4 sm:$0xff]  }
 0x6f4   :  { %v3293_v12 = vmax.f32 %v3286_v28, 0.0  ;;  %v3287_v14 = vadd.f32 %v8643_v16, %v7749_v8  ;;  %v3255_v24 = vpop.f32.mrb[31].mxu1  ;;  %v9139_v16 = vld [vmem:[%s11639_s12 + $0x130] ss:$8 sps:$4 sm:$0xff]  }
 0x6f5   :  { %v3291_v31 = vmax.f32 %v3284_v30, 0.0  ;;  %v3285_v32 = vadd.f32 %v7749_v8, %v3255_v24  ;;  %v9141_v30 = vld [vmem:[%s11639_s12 + $0x134] ss:$8 sps:$4 sm:$0xff]   ;;  %v10337_v24 = vld [vmem:[#allocation3 + $0x20] sm:$0xff] }
 0x6f6   :  { %3302 = vst [vmem:[#allocation3 + $0x37] sm:$0xcf] %v3293_v12   ;;  %v3294_v33 = vmax.f32 %v3287_v14, 0.0  ;;  %v9144_v12 = vld [vmem:[%s11639_s12 + $0x144] ss:$8 sps:$4 sm:$0xff]  }
 0x6f7   :  { %3300 = vst [vmem:[#allocation3 + $0x27] sm:$0xf0] %v3291_v31  ;;  %v3292_v34 = vmax.f32 %v3285_v32, 0.0  ;;  %v3336_v2 = vld [vmem:[#allocation3 + $0x19] sm:$0xff]  ;;  %v9147_v32 = vld [vmem:[%s11639_s12 + $0x154] ss:$8 sps:$4 sm:$0xff]  }
 0x6f8   :  { %3304 = vst [vmem:[#allocation3 + $0x3f] sm:$0x3] %v3294_v33  ;;  %v3333_v36 = vld [vmem:[#allocation3 + $0x1] sm:$0xff]  ;;  %v10320_v28 = vld [vmem:[#allocation3 + $0x18] sm:$0xff] }
 0x6f9   :  { %3301 = vst [vmem:[#allocation3 + $0x2f] sm:$0x3c] %v3292_v34  ;;  %v3305_v23 = vld [vmem:[#allocation3] sm:$0xff]  ;;  %v9145_v33 = vld [vmem:[%s11639_s12 + $0x150] ss:$8 sps:$4 sm:$0xff]  }
 0x6fa   :  { %v3334_v37 = vld [vmem:[#allocation3 + $0x9] sm:$0xff]  ;;  %v10233_v42 = vld [vmem:[#allocation3 + $0x16] sm:$0xff] }
 0x6fb   :  { %v10224_v38 = vld [vmem:[#allocation3 + $0x8] sm:$0xff]  ;;  %v3341_v39 = vpack.c.bf16 %v3334_v37, %v3333_v36  ;;  %v10229_v41 = vld [vmem:[#allocation3 + $0x10] sm:$0xff]  ;;  %v9142_v14 = vld [vmem:[%s11639_s12 + $0x140] ss:$8 sps:$4 sm:$0xff]  }
 0x6fc   :  { %v10231_v13 = vld [vmem:[#allocation3 + $0xe] sm:$0xff]  ;;  %v4250_v43 = vpack.c.bf16 %v10229_v41, %v10224_v38  ;;  %v3313_v25 = vpack.c.bf16 %v10224_v38, %v3305_v23  ;;  %v3314_v29 = vpack.c.bf16 %v10320_v28, %v10229_v41  ;;  %v9150_v34 = vld [vmem:[%s11639_s12 + $0x164] ss:$8 sps:$4 sm:$0xff]   ;;  %v4251_v38 = vpack.c.bf16 %v10337_v24, %v10320_v28  ;;  %v9238_v28 = vld [vmem:[%s11639_s12 + $0x340] ss:$8 sps:$4 sm:$0xff]  }
 0x6fd   :  { %3474 = vmatmul.mubr.bf16.vlgmr.msra.gmra.mrb[4].mxu0 %v3341_v39  ;;  %v4829_v45 = vpack.c.bf16 %v10233_v42, %v10231_v13  ;;  %v3335_v57 = vld [vmem:[#allocation3 + $0x11] sm:$0xff]  ;;  %v3340_v10 = vld [vmem:[#allocation3 + $0x39] sm:$0x3] }
 0x6fe   :  { %3593 = vmatpush1.bf16.msra.mxu0 %v9106_v35  ;;  %3483 = vmatprep.mubr.bf16.mxu0 %v9555_v11  ;;  %v10245_v51 = vld [vmem:[#allocation3 + $0x26] sm:$0xff]  ;;  %v10258_v18 = vld [vmem:[#allocation3 + $0x36] sm:$0xff]  ;;  %v3342_v4 = vpack.c.bf16 %v3336_v2, %v3335_v57 }
 0x6ff   :  { %3594 = vmatprep.subr.bf16.mxu0 %v9111_v40  ;;  %v4830_v56 = vpack.c.bf16 %v10245_v51, %v10243_v50  ;;  %v10252_v58 = vld [vmem:[#allocation3 + $0x28] sm:$0xff]  ;;  %v9148_v35 = vld [vmem:[%s11639_s12 + $0x160] ss:$8 sps:$4 sm:$0xff]  }
 0x700   :  { %v10254_v59 = vld [vmem:[#allocation3 + $0x30] sm:$0xff]  ;;  %v3315_v31 = vpack.c.bf16 %v10252_v58, %v10337_v24  ;;  %v3312_v36 = vld [vmem:[#allocation3 + $0x38] sm:$0x3]  ;;  %v3670_v23 = vld [vmem:[#allocation3 + $0x3a] sm:$0x3] }
 0x701   :  { %v10256_v60 = vld [vmem:[#allocation3 + $0x2e] sm:$0xff]  ;;  %v4252_v61 = vpack.c.bf16 %v10254_v59, %v10252_v58  ;;  %v3316_v37 = vpack.c.bf16 %v3312_v36, %v10254_v59  ;;  %v9154_v57 = vld [vmem:[%s11639_s12 + $0x180] ss:$8 sps:$4 sm:$0xff]  }
 0x702   :  { %3595 = vmatpush1.bf16.msra.mxu0 %v9109_v49  ;;  %v4831_v3 = vpack.c.bf16 %v10258_v18, %v10256_v60  ;;  %v3338_v53 = vld [vmem:[#allocation3 + $0x29] sm:$0xff]  ;;  %v3339_v8 = vld [vmem:[#allocation3 + $0x31] sm:$0xff]  ;;  %v9156_v49 = vld [vmem:[%s11639_s12 + $0x184] ss:$8 sps:$4 sm:$0xff]  }
 0x703   :  { %3596 = vmatprep.subr.bf16.mxu0 %v9114_v55  ;;  %v3343_v44 = vpack.c.bf16 %v3338_v53, %v3337_v52  ;;  %v3344_v17 = vpack.c.bf16 %v3340_v10, %v3339_v8  ;;  %v9153_v39 = vld [vmem:[%s11639_s12 + $0x174] ss:$8 sps:$4 sm:$0xff]   ;;  %v9151_v40 = vld [vmem:[%s11639_s12 + $0x170] ss:$8 sps:$4 sm:$0xff]   ;;  %v9160_v52 = vld [vmem:[%s11639_s12 + $0x1a0] ss:$8 sps:$4 sm:$0xff]  }
 0x704   :  { %v3664_v55 = vld [vmem:[#allocation3 + $0xa] sm:$0xff]  ;;  %v3666_v53 = vld [vmem:[#allocation3 + $0x1a] sm:$0xff] }
 0x705   :  { %3484 = vmatmul.mubr.bf16.gmra.mrb[8].mxu0 %v3342_v4  ;;  %v9159_v4 = vld [vmem:[%s11639_s12 + $0x194] ss:$8 sps:$4 sm:$0xff]   ;;  %v9190_v36 = vld [vmem:[%s11639_s12 + $0x240] ss:$8 sps:$4 sm:$0xff]  }
 0x706   :  { %3597 = vmatpush1.bf16.msra.mxu0 %v9112_v0  ;;  %3491 = vmatprep.mubr.bf16.mxu0 %v9555_v11  ;;  %v3663_v0 = vld [vmem:[#allocation3 + $0x2] sm:$0xff]  ;;  %v3668_v8 = vld [vmem:[#allocation3 + $0x2a] sm:$0xff] }
 0x707   :  { %3598 = vmatprep.subr.bf16.mxu0 %v9117_v62  ;;  %v3671_v2 = vpack.c.bf16 %v3664_v55, %v3663_v0  ;;  %v9157_v62 = vld [vmem:[%s11639_s12 + $0x190] ss:$8 sps:$4 sm:$0xff]   ;;  %v3863_v55 = vld [vmem:[#allocation3 + $0x3e] sm:$0x3]  ;;  %v9237_v41 = vld [vmem:[%s11639_s12 + $0x334] ss:$8 sps:$4 sm:$0xff]  }
 0x708   :  { %v3867_v0 = vpack.c.bf16 %v3863_v55, %v10258_v18  ;;  %v9243_v24 = vld [vmem:[%s11639_s12 + $0x354] ss:$8 sps:$4 sm:$0xff]   ;;  %v9244_v58 = vld [vmem:[%s11639_s12 + $0x360] ss:$8 sps:$4 sm:$0xff]   ;;  %v9247_v55 = vld [vmem:[%s11639_s12 + $0x370] ss:$8 sps:$4 sm:$0xff]  }
 0x70a   :  { %3599 = vmatpush1.bf16.msra.mxu0 %v9115_v63  ;;  %v9162_v63 = vld [vmem:[%s11639_s12 + $0x1a4] ss:$8 sps:$4 sm:$0xff]  }
 0x70b   :  { %3600 = vmatprep.subr.bf16.mxu0 %v9120_v1  ;;  %v3665_v1 = vld [vmem:[#allocation3 + $0x12] sm:$0xff] }
 0x70d   :  { %3492 = vmatmul.mubr.bf16.gmra.mrb[12].mxu0 %v3343_v44  ;;  %v9165_v44 = vld [vmem:[%s11639_s12 + $0x1b4] ss:$8 sps:$4 sm:$0xff]  }
 0x70e   :  { %3601 = vmatpush1.bf16.msra.mxu0 %v9118_v54  ;;  %3501 = vmatprep.mubr.bf16.mxu0 %v9555_v11  ;;  %v3672_v54 = vpack.c.bf16 %v3666_v53, %v3665_v1  ;;  %v9202_v1 = vld [vmem:[%s11639_s12 + $0x280] ss:$8 sps:$4 sm:$0xff]  }
 0x70f   :  { %3602 = vmatprep.subr.bf16.mxu0 %v9123_v47  ;;  %v9163_v47 = vld [vmem:[%s11639_s12 + $0x1b0] ss:$8 sps:$4 sm:$0xff]  }
 0x712   :  { %3603 = vmatpush1.bf16.msra.mxu0 %v9121_v6  ;;  %v9168_v6 = vld [vmem:[%s11639_s12 + $0x1c4] ss:$8 sps:$4 sm:$0xff]  }
 0x713   :  { %3604 = vmatprep.subr.bf16.mxu0 %v9126_v7  ;;  %v3667_v7 = vld [vmem:[#allocation3 + $0x22] sm:$0xff] }
 0x714   :  { %v3673_v10 = vpack.c.bf16 %v3668_v8, %v3667_v7  ;;  %v4052_v7 = vld [vmem:[#allocation3 + $0x1f] sm:$0xff] }
 0x715   :  { %3502 = vmatmul.mubr.bf16.gmra.mrb[16].mxu0 %v3344_v17  ;;  %v9171_v17 = vld [vmem:[%s11639_s12 + $0x1d4] ss:$8 sps:$4 sm:$0xff]   ;;  %v9208_v8 = vld [vmem:[%s11639_s12 + $0x2a0] ss:$8 sps:$4 sm:$0xff]  }
 0x716   :  { %3605 = vmatpush1.bf16.msra.mxu0 %v9124_v9  ;;  %3624 = vmatprep.mubr.bf16.mxu0 %v9555_v11  ;;  %v9166_v9 = vld [vmem:[%s11639_s12 + $0x1c0] ss:$8 sps:$4 sm:$0xff]  }
 0x717   :  { %3606 = vmatprep.subr.bf16.mxu0 %v9129_v19  ;;  %v9169_v19 = vld [vmem:[%s11639_s12 + $0x1d0] ss:$8 sps:$4 sm:$0xff]  }
 0x71a   :  { %3607 = vmatpush1.bf16.msra.mxu0 %v9127_v20  ;;  %v9174_v20 = vld [vmem:[%s11639_s12 + $0x1e4] ss:$8 sps:$4 sm:$0xff]  }
 0x71b   :  { %3771 = vmatprep.subr.bf16.mxu0 %v9132_v21  ;;  %v3669_v21 = vld [vmem:[#allocation3 + $0x32] sm:$0xff] }
 0x71d   :  { %3625 = vmatmul.mubr.bf16.vlgmr.msra.gmra.mrb[4].mxu0 %v3313_v25  ;;  %v3674_v25 = vpack.c.bf16 %v3670_v23, %v3669_v21  ;;  %v9214_v21 = vld [vmem:[%s11639_s12 + $0x2c0] ss:$8 sps:$4 sm:$0xff]  }
 0x71e   :  { %3772 = vmatpush1.bf16.msra.mxu0 %v9130_v22  ;;  %3634 = vmatprep.mubr.bf16.mxu0 %v9555_v11  ;;  %v9172_v22 = vld [vmem:[%s11639_s12 + $0x1e0] ss:$8 sps:$4 sm:$0xff]  }
 0x71f   :  { %3773 = vmatprep.subr.bf16.mxu0 %v9135_v5  ;;  %v9177_v5 = vld [vmem:[%s11639_s12 + $0x1f4] ss:$8 sps:$4 sm:$0xff]  }
 0x722   :  { %3774 = vmatpush1.bf16.msra.mxu0 %v9133_v15  ;;  %v9175_v15 = vld [vmem:[%s11639_s12 + $0x1f0] ss:$8 sps:$4 sm:$0xff]  }
 0x723   :  { %3775 = vmatprep.subr.bf16.mxu0 %v9138_v26  ;;  %v9180_v26 = vld [vmem:[%s11639_s12 + $0x204] ss:$8 sps:$4 sm:$0xff]  }
 0x725   :  { %3635 = vmatmul.mubr.bf16.gmra.mrb[20].mxu0 %v3314_v29  ;;  %v3856_v29 = vld [vmem:[#allocation3 + $0x6] sm:$0xff] }
 0x726   :  { %3776 = vmatpush1.bf16.msra.mxu0 %v9136_v27  ;;  %3642 = vmatprep.mubr.bf16.mxu0 %v9555_v11  ;;  %v9178_v27 = vld [vmem:[%s11639_s12 + $0x200] ss:$8 sps:$4 sm:$0xff]  }
 0x727   :  { %3777 = vmatprep.subr.bf16.mxu0 %v9141_v30  ;;  %v3864_v30 = vpack.c.bf16 %v10231_v13, %v3856_v29  ;;  %v4055_v29 = vld [vmem:[#allocation3 + $0x37] sm:$0xff] }
 0x72a   :  { %3778 = vmatpush1.bf16.msra.mxu0 %v9139_v16  ;;  %v9183_v16 = vld [vmem:[%s11639_s12 + $0x214] ss:$8 sps:$4 sm:$0xff]  }
 0x72b   :  { %3779 = vmatprep.subr.bf16.mxu0 %v9144_v12  ;;  %v9181_v12 = vld [vmem:[%s11639_s12 + $0x210] ss:$8 sps:$4 sm:$0xff]  }
 0x72d   :  { %3643 = vmatmul.mubr.bf16.gmra.mrb[12].mxu0 %v3315_v31  ;;  %v9184_v31 = vld [vmem:[%s11639_s12 + $0x220] ss:$8 sps:$4 sm:$0xff]  }
 0x72e   :  { %3780 = vmatpush1.bf16.msra.mxu0 %v9142_v14  ;;  %3652 = vmatprep.mubr.bf16.mxu0 %v9555_v11  ;;  %v9186_v14 = vld [vmem:[%s11639_s12 + $0x224] ss:$8 sps:$4 sm:$0xff]  }
 0x72f   :  { %3781 = vmatprep.subr.bf16.mxu0 %v9147_v32  ;;  %v3865_v32 = vpack.c.bf16 %v10243_v50, %v10233_v42 }
 0x732   :  { %3782 = vmatpush1.bf16.msra.mxu0 %v9145_v33  ;;  %v9189_v33 = vld [vmem:[%s11639_s12 + $0x234] ss:$8 sps:$4 sm:$0xff]  }
 0x733   :  { %3783 = vmatprep.subr.bf16.mxu0 %v9150_v34  ;;  %v9187_v34 = vld [vmem:[%s11639_s12 + $0x230] ss:$8 sps:$4 sm:$0xff]  }
 0x735   :  { %3653 = vmatmul.mubr.bf16.gmra.mrb[16].mxu0 %v3316_v37  ;;  %v3866_v37 = vpack.c.bf16 %v10256_v60, %v10245_v51 }
 0x736   :  { %3784 = vmatpush1.bf16.msra.mxu0 %v9148_v35  ;;  %3803 = vmatprep.mubr.bf16.mxu0 %v9555_v11  ;;  %v9192_v35 = vld [vmem:[%s11639_s12 + $0x244] ss:$8 sps:$4 sm:$0xff]  }
 0x737   :  { %3785 = vmatprep.subr.bf16.mxu0 %v9153_v39  ;;  %v9195_v39 = vld [vmem:[%s11639_s12 + $0x254] ss:$8 sps:$4 sm:$0xff]  }
 0x73a   :  { %3786 = vmatpush1.bf16.msra.mxu0 %v9151_v40  ;;  %v9193_v40 = vld [vmem:[%s11639_s12 + $0x250] ss:$8 sps:$4 sm:$0xff]  }
 0x73b   :  { %3964 = vmatprep.subr.bf16.mxu0 %v9156_v49  ;;  %v9198_v49 = vld [vmem:[%s11639_s12 + $0x264] ss:$8 sps:$4 sm:$0xff]  }
 0x73d   :  { %3804 = vmatmul.mubr.bf16.vlgmr.msra.gmra.mrb[4].mxu0 %v3671_v2  ;;  %v9201_v2 = vld [vmem:[%s11639_s12 + $0x274] ss:$8 sps:$4 sm:$0xff]  }
 0x73e   :  { %3965 = vmatpush1.bf16.msra.mxu0 %v9154_v57  ;;  %3813 = vmatprep.mubr.bf16.mxu0 %v9555_v11  ;;  %v9196_v57 = vld [vmem:[%s11639_s12 + $0x260] ss:$8 sps:$4 sm:$0xff]  }
 0x73f   :  { %3966 = vmatprep.subr.bf16.mxu0 %v9159_v4  ;;  %v9199_v4 = vld [vmem:[%s11639_s12 + $0x270] ss:$8 sps:$4 sm:$0xff]  }
 0x742   :  { %3967 = vmatpush1.bf16.msra.mxu0 %v9157_v62  ;;  %v9204_v62 = vld [vmem:[%s11639_s12 + $0x284] ss:$8 sps:$4 sm:$0xff]  }
 0x743   :  { %3968 = vmatprep.subr.bf16.mxu0 %v9162_v63  ;;  %v4050_v63 = vld [vmem:[#allocation3 + $0xf] sm:$0xff] }
 0x745   :  { %3814 = vmatmul.mubr.bf16.gmra.mrb[24].mxu0 %v3672_v54  ;;  %v9207_v54 = vld [vmem:[%s11639_s12 + $0x294] ss:$8 sps:$4 sm:$0xff]  }
 0x746   :  { %3969 = vmatpush1.bf16.msra.mxu0 %v9160_v52  ;;  %3821 = vmatprep.mubr.bf16.mxu0 %v9555_v11  ;;  %v4049_v52 = vld [vmem:[#allocation3 + $0x7] sm:$0xff] }
 0x747   :  { %3970 = vmatprep.subr.bf16.mxu0 %v9165_v44  ;;  %v4057_v53 = vpack.c.bf16 %v4050_v63, %v4049_v52  ;;  %v9205_v44 = vld [vmem:[%s11639_s12 + $0x290] ss:$8 sps:$4 sm:$0xff]   ;;  %v9255_v63 = vld [vmem:[%s11639_s12 + $0x394] ss:$8 sps:$4 sm:$0xff]   ;;  %v9258_v52 = vld [vmem:[%s11639_s12 + $0x3a4] ss:$8 sps:$4 sm:$0xff]  }
 0x74a   :  { %3971 = vmatpush1.bf16.msra.mxu0 %v9163_v47  ;;  %v9210_v47 = vld [vmem:[%s11639_s12 + $0x2a4] ss:$8 sps:$4 sm:$0xff]  }
 0x74b   :  { %3972 = vmatprep.subr.bf16.mxu0 %v9168_v6  ;;  %v4051_v6 = vld [vmem:[#allocation3 + $0x17] sm:$0xff] }
 0x74d   :  { %3822 = vmatmul.mubr.bf16.gmra.mrb[12].mxu0 %v3673_v10  ;;  %v9213_v10 = vld [vmem:[%s11639_s12 + $0x2b4] ss:$8 sps:$4 sm:$0xff]  }
 0x74e   :  { %3973 = vmatpush1.bf16.msra.mxu0 %v9166_v9  ;;  %3831 = vmatprep.mubr.bf16.mxu0 %v9555_v11  ;;  %v4058_v9 = vpack.c.bf16 %v4052_v7, %v4051_v6  ;;  %v9261_v6 = vld [vmem:[%s11639_s12 + $0x3b4] ss:$8 sps:$4 sm:$0xff]   ;;  %v9259_v7 = vld [vmem:[%s11639_s12 + $0x3b0] ss:$8 sps:$4 sm:$0xff]  }
 0x74f   :  { %3974 = vmatprep.subr.bf16.mxu0 %v9171_v17  ;;  %v9211_v17 = vld [vmem:[%s11639_s12 + $0x2b0] ss:$8 sps:$4 sm:$0xff]  }
 0x752   :  { %3975 = vmatpush1.bf16.msra.mxu0 %v9169_v19  ;;  %v9216_v19 = vld [vmem:[%s11639_s12 + $0x2c4] ss:$8 sps:$4 sm:$0xff]  }
 0x753   :  { %3976 = vmatprep.subr.bf16.mxu0 %v9174_v20  ;;  %v4054_v20 = vld [vmem:[#allocation3 + $0x2f] sm:$0xff] }
 0x755   :  { %3832 = vmatmul.mubr.bf16.gmra.mrb[16].mxu0 %v3674_v25  ;;  %v9219_v25 = vld [vmem:[%s11639_s12 + $0x2d4] ss:$8 sps:$4 sm:$0xff]  }
 0x756   :  { %3977 = vmatpush1.bf16.msra.mxu0 %v9172_v22  ;;  %3996 = vmatprep.mubr.bf16.mxu0 %v9555_v11  ;;  %v4053_v22 = vld [vmem:[#allocation3 + $0x27] sm:$0xff] }
 0x757   :  { %3978 = vmatprep.subr.bf16.mxu0 %v9177_v5  ;;  %v4059_v23 = vpack.c.bf16 %v4054_v20, %v4053_v22  ;;  %v9217_v5 = vld [vmem:[%s11639_s12 + $0x2d0] ss:$8 sps:$4 sm:$0xff]   ;;  %v9267_v20 = vld [vmem:[%s11639_s12 + $0x3d4] ss:$8 sps:$4 sm:$0xff]   ;;  %v9270_v22 = vld [vmem:[%s11639_s12 + $0x3e4] ss:$8 sps:$4 sm:$0xff]  }
 0x75a   :  { %3979 = vmatpush1.bf16.msra.mxu0 %v9175_v15  ;;  %v9222_v15 = vld [vmem:[%s11639_s12 + $0x2e4] ss:$8 sps:$4 sm:$0xff]  }
 0x75b   :  { %4157 = vmatprep.subr.bf16.mxu0 %v9180_v26  ;;  %v4056_v26 = vld [vmem:[#allocation3 + $0x3f] sm:$0x3] }
 0x75d   :  { %3997 = vmatmul.mubr.bf16.vlgmr.msra.gmra.mrb[4].mxu0 %v3864_v30  ;;  %v4060_v30 = vpack.c.bf16 %v4056_v26, %v4055_v29  ;;  %v9273_v26 = vld [vmem:[%s11639_s12 + $0x3f4] ss:$8 sps:$4 sm:$0xff]   ;;  %v9276_v29 = vld [vmem:[%s11639_s12 + $0x404] ss:$8 sps:$4 sm:$0xff]  }
 0x75e   :  { %4158 = vmatpush1.bf16.msra.mxu0 %v9178_v27  ;;  %4006 = vmatprep.mubr.bf16.mxu0 %v9555_v11  ;;  %v9220_v27 = vld [vmem:[%s11639_s12 + $0x2e0] ss:$8 sps:$4 sm:$0xff]  }
 0x75f   :  { %4159 = vmatprep.subr.bf16.mxu0 %v9183_v16  ;;  %v9225_v16 = vld [vmem:[%s11639_s12 + $0x2f4] ss:$8 sps:$4 sm:$0xff]  }
 0x762   :  { %4160 = vmatpush1.bf16.msra.mxu0 %v9181_v12  ;;  %v9223_v12 = vld [vmem:[%s11639_s12 + $0x2f0] ss:$8 sps:$4 sm:$0xff]  }
 0x763   :  { %4161 = vmatprep.subr.bf16.mxu0 %v9186_v14  ;;  %v9228_v14 = vld [vmem:[%s11639_s12 + $0x304] ss:$8 sps:$4 sm:$0xff]  }
 0x765   :  { %4007 = vmatmul.mubr.bf16.gmra.mrb[28].mxu0 %v3865_v32  ;;  %v9231_v32 = vld [vmem:[%s11639_s12 + $0x314] ss:$8 sps:$4 sm:$0xff]  }
 0x766   :  { %4162 = vmatpush1.bf16.msra.mxu0 %v9184_v31  ;;  %4014 = vmatprep.mubr.bf16.mxu0 %v9555_v11  ;;  %v9226_v31 = vld [vmem:[%s11639_s12 + $0x300] ss:$8 sps:$4 sm:$0xff]  }
 0x767   :  { %4163 = vmatprep.subr.bf16.mxu0 %v9189_v33  ;;  %v9229_v33 = vld [vmem:[%s11639_s12 + $0x310] ss:$8 sps:$4 sm:$0xff]  }
 0x76a   :  { %4164 = vmatpush1.bf16.msra.mxu0 %v9187_v34  ;;  %v9234_v34 = vld [vmem:[%s11639_s12 + $0x324] ss:$8 sps:$4 sm:$0xff]  }
 0x76b   :  { %4165 = vmatprep.subr.bf16.mxu0 %v9192_v35  ;;  %v9232_v35 = vld [vmem:[%s11639_s12 + $0x320] ss:$8 sps:$4 sm:$0xff]  }
 0x76d   :  { %4015 = vmatmul.mubr.bf16.gmra.mrb[12].mxu0 %v3866_v37  ;;  %v9241_v37 = vld [vmem:[%s11639_s12 + $0x350] ss:$8 sps:$4 sm:$0xff]  }
 0x76e   :  { %4166 = vmatpush1.bf16.msra.mxu0 %v9190_v36  ;;  %4024 = vmatprep.mubr.bf16.mxu0 %v9555_v11  ;;  %v9240_v36 = vld [vmem:[%s11639_s12 + $0x344] ss:$8 sps:$4 sm:$0xff]  }
 0x76f   :  { %4167 = vmatprep.subr.bf16.mxu0 %v9195_v39  ;;  %v9246_v39 = vld [vmem:[%s11639_s12 + $0x364] ss:$8 sps:$4 sm:$0xff]  }
 0x772   :  { %4168 = vmatpush1.bf16.msra.mxu0 %v9193_v40  ;;  %v4248_v40 = vld [vmem:[#allocation3 + $0x38] sm:$0xff] }
 0x773   :  { %4169 = vmatprep.subr.bf16.mxu0 %v9198_v49  ;;  %v4249_v49 = vld [vmem:[#allocation3 + $0x40] sm:$0x3] }
 0x774   :  { %v4253_v59 = vpack.c.bf16 %v4249_v49, %v4248_v40  ;;  %v9288_v40 = vld [vmem:[%s11639_s12 + $0x444] ss:$8 sps:$4 sm:$0xff]   ;;  %v4632_v49 = vld [vmem:[#allocation3 + $0x2d] sm:$0xff] }
 0x775   :  { %4025 = vmatmul.mubr.bf16.gmra.mrb[16].mxu0 %v3867_v0  ;;  %v4435_v0 = vld [vmem:[#allocation3 + $0xc] sm:$0xff] }
 0x776   :  { %4170 = vmatpush1.bf16.msra.mxu0 %v9196_v57  ;;  %4189 = vmatprep.mubr.bf16.mxu0 %v9555_v11  ;;  %v9252_v57 = vld [vmem:[%s11639_s12 + $0x384] ss:$8 sps:$4 sm:$0xff]  }
 0x777   :  { %4171 = vmatprep.subr.bf16.mxu0 %v9201_v2  ;;  %v4436_v2 = vld [vmem:[#allocation3 + $0x14] sm:$0xff] }
 0x77a   :  { %4172 = vmatpush1.bf16.msra.mxu0 %v9199_v4  ;;  %v9250_v4 = vld [vmem:[%s11639_s12 + $0x380] ss:$8 sps:$4 sm:$0xff]  }
 0x77b   :  { %4350 = vmatprep.subr.bf16.mxu0 %v9204_v62  ;;  %v4443_v62 = vpack.c.bf16 %v4436_v2, %v4435_v0  ;;  %v9294_v0 = vld [vmem:[%s11639_s12 + $0x464] ss:$8 sps:$4 sm:$0xff]  }
 0x77c   :  { %v4634_v2 = vld [vmem:[#allocation3 + $0x3d] sm:$0xff] }
 0x77d   :  { %4190 = vmatmul.mubr.bf16.vlgmr.msra.gmra.mrb[4].mxu0 %v4057_v53  ;;  %v4438_v53 = vld [vmem:[#allocation3 + $0x24] sm:$0xff] }
 0x77e   :  { %4351 = vmatpush1.bf16.msra.mxu0 %v9202_v1  ;;  %4199 = vmatprep.mubr.bf16.mxu0 %v9555_v11  ;;  %v9253_v1 = vld [vmem:[%s11639_s12 + $0x390] ss:$8 sps:$4 sm:$0xff]  }
 0x77f   :  { %4352 = vmatprep.subr.bf16.mxu0 %v9207_v54  ;;  %v9256_v54 = vld [vmem:[%s11639_s12 + $0x3a0] ss:$8 sps:$4 sm:$0xff]  }
 0x782   :  { %4353 = vmatpush1.bf16.msra.mxu0 %v9205_v44  ;;  %v4437_v44 = vld [vmem:[#allocation3 + $0x1c] sm:$0xff] }
 0x783   :  { %4354 = vmatprep.subr.bf16.mxu0 %v9210_v47  ;;  %v4444_v47 = vpack.c.bf16 %v4438_v53, %v4437_v44 }
 0x785   :  { %4200 = vmatmul.mubr.bf16.gmra.mrb[32].mxu0 %v4058_v9  ;;  %v4439_v9 = vld [vmem:[#allocation3 + $0x2c] sm:$0xff] }
 0x786   :  { %4355 = vmatpush1.bf16.msra.mxu0 %v9208_v8  ;;  %4207 = vmatprep.mubr.bf16.mxu0 %v9555_v11  ;;  %v9264_v8 = vld [vmem:[%s11639_s12 + $0x3c4] ss:$8 sps:$4 sm:$0xff]  }
 0x787   :  { %4356 = vmatprep.subr.bf16.mxu0 %v9213_v10  ;;  %v4440_v10 = vld [vmem:[#allocation3 + $0x34] sm:$0xff] }
 0x78a   :  { %4357 = vmatpush1.bf16.msra.mxu0 %v9211_v17  ;;  %v9262_v17 = vld [vmem:[%s11639_s12 + $0x3c0] ss:$8 sps:$4 sm:$0xff]  }
 0x78b   :  { %4358 = vmatprep.subr.bf16.mxu0 %v9216_v19  ;;  %v4445_v19 = vpack.c.bf16 %v4440_v10, %v4439_v9  ;;  %v4828_v9 = vld [vmem:[#allocation3 + $0x46] sm:$0x3] }
 0x78d   :  { %4208 = vmatmul.mubr.bf16.gmra.mrb[12].mxu0 %v4059_v23  ;;  %v4441_v23 = vld [vmem:[#allocation3 + $0x3c] sm:$0xff] }
 0x78e   :  { %4359 = vmatpush1.bf16.msra.mxu0 %v9214_v21  ;;  %4217 = vmatprep.mubr.bf16.mxu0 %v9555_v11  ;;  %v9265_v21 = vld [vmem:[%s11639_s12 + $0x3d0] ss:$8 sps:$4 sm:$0xff]  }
 0x78f   :  { %4360 = vmatprep.subr.bf16.mxu0 %v9219_v25  ;;  %v4442_v25 = vld [vmem:[#allocation3 + $0x44] sm:$0x3] }
 0x792   :  { %4361 = vmatpush1.bf16.msra.mxu0 %v9217_v5  ;;  %v9268_v5 = vld [vmem:[%s11639_s12 + $0x3e0] ss:$8 sps:$4 sm:$0xff]  }
 0x793   :  { %4362 = vmatprep.subr.bf16.mxu0 %v9222_v15  ;;  %v4446_v15 = vpack.c.bf16 %v4442_v25, %v4441_v23 }
 0x795   :  { %4218 = vmatmul.mubr.bf16.gmra.mrb[16].mxu0 %v4060_v30 }
 0x796   :  { %4363 = vmatpush1.bf16.msra.mxu0 %v9220_v27  ;;  %4382 = vmatprep.mubr.bf16.mxu0 %v9555_v11  ;;  %v9271_v27 = vld [vmem:[%s11639_s12 + $0x3f0] ss:$8 sps:$4 sm:$0xff]  }
 0x797   :  { %4364 = vmatprep.subr.bf16.mxu0 %v9225_v16  ;;  %v4628_v16 = vld [vmem:[#allocation3 + $0xd] sm:$0xff] }
 0x79a   :  { %4365 = vmatpush1.bf16.msra.mxu0 %v9223_v12  ;;  %v4629_v12 = vld [vmem:[#allocation3 + $0x15] sm:$0xff] }
 0x79b   :  { %4543 = vmatprep.subr.bf16.mxu0 %v9228_v14 }
 0x79d   :  { %4383 = vmatmul.mubr.bf16.vlgmr.msra.gmra.mrb[4].mxu0 %v4250_v43  ;;  %v9235_v43 = vld [vmem:[%s11639_s12 + $0x330] ss:$8 sps:$4 sm:$0xff]  }
 0x79e   :  { %4544 = vmatpush1.bf16.msra.mxu0 %v9226_v31  ;;  %4392 = vmatprep.mubr.bf16.mxu0 %v9555_v11 }
 0x79f   :  { %4545 = vmatprep.subr.bf16.mxu0 %v9231_v32  ;;  %v9274_v32 = vld [vmem:[%s11639_s12 + $0x400] ss:$8 sps:$4 sm:$0xff]  }
 0x7a2   :  { %4546 = vmatpush1.bf16.msra.mxu0 %v9229_v33 }
 0x7a3   :  { %4547 = vmatprep.subr.bf16.mxu0 %v9234_v34  ;;  %v4636_v34 = vpack.c.bf16 %v4629_v12, %v4628_v16  ;;  %v9303_v16 = vld [vmem:[%s11641_s14 + $0x88] sm:$0xff]  }
 0x7a4   :  { %v9304_v12 = vld [vmem:[%s11641_s14 + $0x3c8] sm:$0xff]  }
 0x7a5   :  { %4393 = vmatmul.mubr.bf16.gmra.mrb[36].mxu0 %v4251_v38  ;;  %v9277_v38 = vld [vmem:[%s11639_s12 + $0x410] ss:$8 sps:$4 sm:$0xff]  }
 0x7a6   :  { %4548 = vmatpush1.bf16.msra.mxu0 %v9232_v35  ;;  %4400 = vmatprep.mubr.bf16.mxu0 %v9555_v11  ;;  %v9279_v35 = vld [vmem:[%s11639_s12 + $0x414] ss:$8 sps:$4 sm:$0xff]  }
 0x7a7   :  { %4549 = vmatprep.subr.bf16.mxu0 %v9237_v41  ;;  %v9282_v41 = vld [vmem:[%s11639_s12 + $0x424] ss:$8 sps:$4 sm:$0xff]  }
 0x7aa   :  { %4550 = vmatpush1.bf16.msra.mxu0 %v9235_v43  ;;  %v4630_v43 = vld [vmem:[#allocation3 + $0x1d] sm:$0xff] }
 0x7ab   :  { %4551 = vmatprep.subr.bf16.mxu0 %v9240_v36  ;;  %v4631_v36 = vld [vmem:[#allocation3 + $0x25] sm:$0xff] }
 0x7ad   :  { %4401 = vmatmul.mubr.bf16.gmra.mrb[12].mxu0 %v4252_v61  ;;  %v9249_v61 = vld [vmem:[%s11639_s12 + $0x374] ss:$8 sps:$4 sm:$0xff]  }
 0x7ae   :  { %4552 = vmatpush1.bf16.msra.mxu0 %v9238_v28  ;;  %4410 = vmatprep.mubr.bf16.mxu0 %v9555_v11  ;;  %v9280_v28 = vld [vmem:[%s11639_s12 + $0x420] ss:$8 sps:$4 sm:$0xff]  }
 0x7af   :  { %4553 = vmatprep.subr.bf16.mxu0 %v9243_v24  ;;  %v4637_v24 = vpack.c.bf16 %v4631_v36, %v4630_v43  ;;  %v9313_v43 = vld [vmem:[%s11641_s14 + $0xe0] sm:$0xff]   ;;  %v9314_v36 = vld [vmem:[%s11641_s14 + $0x398] sm:$0xff]  }
 0x7b2   :  { %4554 = vmatpush1.bf16.msra.mxu0 %v9241_v37  ;;  %v9285_v37 = vld [vmem:[%s11639_s12 + $0x434] ss:$8 sps:$4 sm:$0xff]  }
 0x7b3   :  { %4555 = vmatprep.subr.bf16.mxu0 %v9246_v39  ;;  %v9283_v39 = vld [vmem:[%s11639_s12 + $0x430] ss:$8 sps:$4 sm:$0xff]  }
 0x7b5   :  { %4411 = vmatmul.mubr.bf16.gmra.mrb[16].mxu0 %v4253_v59  ;;  %v4633_v59 = vld [vmem:[#allocation3 + $0x35] sm:$0xff] }
 0x7b6   :  { %4556 = vmatpush1.bf16.msra.mxu0 %v9244_v58  ;;  %4575 = vmatprep.mubr.bf16.mxu0 %v9555_v11  ;;  %v9286_v58 = vld [vmem:[%s11639_s12 + $0x440] ss:$8 sps:$4 sm:$0xff]  }
 0x7b7   :  { %4557 = vmatprep.subr.bf16.mxu0 %v9249_v61  ;;  %v4638_v61 = vpack.c.bf16 %v4633_v59, %v4632_v49  ;;  %v9320_v49 = vld [vmem:[%s11641_s14 + $0x3e8] sm:$0xff]  }
 0x7b8   :  { %v9322_v59 = vld [vmem:[%s11641_s14 + $0x3a8] sm:$0xff]  }
 0x7ba   :  { %4558 = vmatpush1.bf16.msra.mxu0 %v9247_v55  ;;  %v9291_v55 = vld [vmem:[%s11639_s12 + $0x454] ss:$8 sps:$4 sm:$0xff]  }
 0x7bb   :  { %4736 = vmatprep.subr.bf16.mxu0 %v9252_v57  ;;  %v9289_v57 = vld [vmem:[%s11639_s12 + $0x450] ss:$8 sps:$4 sm:$0xff]  }
 0x7bd   :  { %4576 = vmatmul.mubr.bf16.vlgmr.msra.gmra.mrb[4].mxu0 %v4443_v62  ;;  %v9292_v62 = vld [vmem:[%s11639_s12 + $0x460] ss:$8 sps:$4 sm:$0xff]  }
 0x7be   :  { %4737 = vmatpush1.bf16.msra.mxu0 %v9250_v4  ;;  %4585 = vmatprep.mubr.bf16.mxu0 %v9555_v11  ;;  %v4635_v4 = vld [vmem:[#allocation3 + $0x45] sm:$0x3] }
 0x7bf   :  { %4738 = vmatprep.subr.bf16.mxu0 %v9255_v63  ;;  %v4639_v63 = vpack.c.bf16 %v4635_v4, %v4634_v2  ;;  %v9327_v2 = vld [vmem:[%s11641_s14 + $0xb8] sm:$0xff]  }
 0x7c0   :  { %v9328_v4 = vld [vmem:[%s11641_s14 + $0x3f8] sm:$0xff]  }
 0x7c2   :  { %4739 = vmatpush1.bf16.msra.mxu0 %v9253_v1  ;;  %v9297_v1 = vld [vmem:[%s11639_s12 + $0x474] ss:$8 sps:$4 sm:$0xff]  }
 0x7c3   :  { %4740 = vmatprep.subr.bf16.mxu0 %v9258_v52  ;;  %v9295_v52 = vld [vmem:[%s11639_s12 + $0x470] ss:$8 sps:$4 sm:$0xff]  }
 0x7c5   :  { %4586 = vmatmul.mubr.bf16.gmra.mrb[40].mxu0 %v4444_v47 }
 0x7c6   :  { %4741 = vmatpush1.bf16.msra.mxu0 %v9256_v54  ;;  %4593 = vmatprep.mubr.bf16.mxu0 %v9555_v11 }
 0x7c7   :  { %4742 = vmatprep.subr.bf16.mxu0 %v9261_v6 }
 0x7ca   :  { %4743 = vmatpush1.bf16.msra.mxu0 %v9259_v7 }
 0x7cb   :  { %4744 = vmatprep.subr.bf16.mxu0 %v9264_v8  ;;  %v4827_v8 = vld [vmem:[#allocation3 + $0x3e] sm:$0xff] }
 0x7cc   :  { %v4832_v10 = vpack.c.bf16 %v4828_v9, %v4827_v8 }
 0x7cd   :  { %4594 = vmatmul.mubr.bf16.gmra.mrb[12].mxu0 %v4445_v19 }
 0x7ce   :  { %4745 = vmatpush1.bf16.msra.mxu0 %v9262_v17  ;;  %4603 = vmatprep.mubr.bf16.mxu0 %v9555_v11 }
 0x7cf   :  { %4746 = vmatprep.subr.bf16.mxu0 %v9267_v20 }
 0x7d2   :  { %4747 = vmatpush1.bf16.msra.mxu0 %v9265_v21 }
 0x7d3   :  { %4748 = vmatprep.subr.bf16.mxu0 %v9270_v22 }
 0x7d5   :  { %4604 = vmatmul.mubr.bf16.gmra.mrb[16].mxu0 %v4446_v15  ;;  %v9299_v15 = vld [vmem:[%s11641_s14 + $0x80] sm:$0xff]  }
 0x7d6   :  { %4749 = vmatpush1.bf16.msra.mxu0 %v9268_v5  ;;  %4768 = vmatprep.mubr.bf16.mxu0 %v9555_v11 }
 0x7d7   :  { %4750 = vmatprep.subr.bf16.mxu0 %v9273_v26 }
 0x7d8   :  { %v3485_v30 = vpop.f32.mrb[8].mxu0 }
 0x7d9   :  { %v3487_v14 = vpop.f32.mrb[9].mxu0 }
 0x7da   :  { %4751 = vmatpush1.bf16.msra.mxu0 %v9271_v27  ;;  %v3489_v31 = vpop.f32.mrb[10].mxu0  ;;  %v9300_v27 = vld [vmem:[%s11641_s14 + $0x3c0] sm:$0xff]  }
 0x7db   :  { %v3490_v33 = vpop.f32.mrb[11].mxu0  ;;  %4929 = vmatprep.subr.bf16.mxu0 %v9276_v29  ;;  %v9301_v29 = vld [vmem:[%s11641_s14 + $0xc8] sm:$0xff]  }
 0x7dc   :  { %v9306_v31 = vld [vmem:[%s11641_s14 + $0x388] sm:$0xff]   ;;  %v9308_v33 = vld [vmem:[%s11641_s14 + $0x3d0] sm:$0xff]  }
 0x7dd   :  { %4769 = vmatmul.mubr.bf16.vlgmr.msra.gmra.mrb[4].mxu0 %v4636_v34  ;;  %v9309_v34 = vld [vmem:[%s11641_s14 + $0xd8] sm:$0xff]  }
 0x7de   :  { %4930 = vmatpush1.bf16.msra.mxu0 %v9274_v32  ;;  %4778 = vmatprep.mubr.bf16.mxu0 %v9555_v11  ;;  %v9307_v32 = vld [vmem:[%s11641_s14 + $0x90] sm:$0xff]  }
 0x7df   :  { %4931 = vmatprep.subr.bf16.mxu0 %v9279_v35  ;;  %v9310_v35 = vld [vmem:[%s11641_s14 + $0x390] sm:$0xff]  }
 0x7e2   :  { %4932 = vmatpush1.bf16.msra.mxu0 %v9277_v38  ;;  %v9311_v38 = vld [vmem:[%s11641_s14 + $0x98] sm:$0xff]  }
 0x7e3   :  { %4933 = vmatprep.subr.bf16.mxu0 %v9282_v41  ;;  %v9312_v41 = vld [vmem:[%s11641_s14 + $0x3d8] sm:$0xff]  }
 0x7e5   :  { %4779 = vmatmul.mubr.bf16.gmra.mrb[44].mxu0 %v4637_v24  ;;  %v9316_v24 = vld [vmem:[%s11641_s14 + $0x3e0] sm:$0xff]  }
 0x7e6   :  { %4934 = vmatpush1.bf16.msra.mxu0 %v9280_v28  ;;  %4786 = vmatprep.mubr.bf16.mxu0 %v9555_v11  ;;  %v9315_v28 = vld [vmem:[%s11641_s14 + $0xa0] sm:$0xff]  }
 0x7e7   :  { %4935 = vmatprep.subr.bf16.mxu0 %v9285_v37  ;;  %v9317_v37 = vld [vmem:[%s11641_s14 + $0xe8] sm:$0xff]  }
 0x7ea   :  { %4936 = vmatpush1.bf16.msra.mxu0 %v9283_v39  ;;  %v9318_v39 = vld [vmem:[%s11641_s14 + $0x3a0] sm:$0xff]  }
 0x7eb   :  { %4937 = vmatprep.subr.bf16.mxu0 %v9288_v40  ;;  %v9319_v40 = vld [vmem:[%s11641_s14 + $0xa8] sm:$0xff]  }
 0x7ed   :  { %4787 = vmatmul.mubr.bf16.gmra.mrb[12].mxu0 %v4638_v61  ;;  %v9323_v61 = vld [vmem:[%s11641_s14 + $0xb0] sm:$0xff]  }
 0x7ee   :  { %4938 = vmatpush1.bf16.msra.mxu0 %v9286_v58  ;;  %4796 = vmatprep.mubr.bf16.mxu0 %v9555_v11  ;;  %v9321_v58 = vld [vmem:[%s11641_s14 + $0xf0] sm:$0xff]  }
 0x7ef   :  { %4939 = vmatprep.subr.bf16.mxu0 %v9291_v55  ;;  %v9324_v55 = vld [vmem:[%s11641_s14 + $0x3f0] sm:$0xff]  }
 0x7f2   :  { %4940 = vmatpush1.bf16.msra.mxu0 %v9289_v57  ;;  %v9325_v57 = vld [vmem:[%s11641_s14 + $0xf8] sm:$0xff]  }
 0x7f3   :  { %4941 = vmatprep.subr.bf16.mxu0 %v9294_v0  ;;  %v9326_v0 = vld [vmem:[%s11641_s14 + $0x3b0] sm:$0xff]  }
 0x7f5   :  { %4797 = vmatmul.mubr.bf16.gmra.mrb[16].mxu0 %v4639_v63 }
 0x7f6   :  { %4942 = vmatpush1.bf16.msra.mxu0 %v9292_v62  ;;  %4961 = vmatprep.mubr.bf16.mxu0 %v9555_v11  ;;  %v9329_v62 = vld [vmem:[%s11641_s14 + $0x40] sm:$0xff]  }
 0x7f7   :  { %4943 = vmatprep.subr.bf16.mxu0 %v9297_v1  ;;  %v9330_v1 = vld [vmem:[%s11641_s14 + $0x3b8] sm:$0xff]  }
 0x7f8   :  { %v3636_v53 = vpop.f32.mrb[20].mxu0 }
 0x7f9   :  { %v3637_v54 = vadd.f32 %v3636_v53, %v3485_v30  ;;  %v3638_v44 = vpop.f32.mrb[21].mxu0  ;;  %v9302_v30 = vld [vmem:[%s11641_s14 + $0x380] sm:$0xff]  }
 0x7fa   :  { %v3639_v47 = vadd.f32 %v3638_v44, %v3487_v14  ;;  %4944 = vmatpush1.bf16.msra.mxu0 %v9295_v52  ;;  %v3640_v6 = vpop.f32.mrb[22].mxu0  ;;  %v9305_v14 = vld [vmem:[%s11641_s14 + $0xd0] sm:$0xff]  }
 0x7fb   :  { %v3641_v7 = vpop.f32.mrb[23].mxu0  ;;  %8420 = vmatprep.subr.bf16.mxu0 %v9300_v27  ;;  %v9336_v6 = vld [vmem:[%s11641_s14 + $0x440] sm:$0xff]  }
 0x7fd   :  { %4962 = vmatmul.mubr.bf16.vlgmr.msra.gmra.mrb[4].mxu0 %v4829_v45 }
 0x7fe   :  { %4971 = vmatprep.mubr.bf16.mxu0 %v9555_v11  ;;  %8421 = vmatpush3.bf16.msra.mxu0 %v9302_v30 }
 0x7ff   :  { %8422 = vmatprep.subr.bf16.mxu0 %v9304_v12 }
 0x802   :  { %8423 = vmatpush3.bf16.msra.mxu0 %v9306_v31 }
 0x803   :  { %8424 = vmatprep.subr.bf16.mxu0 %v9308_v33 }
 0x805   :  { %4972 = vmatmul.mubr.bf16.gmra.mrb[48].mxu0 %v4830_v56 }
 0x806   :  { %4979 = vmatprep.mubr.bf16.mxu0 %v9555_v11  ;;  %8425 = vmatpush3.bf16.msra.mxu0 %v9310_v35 }
 0x807   :  { %8426 = vmatprep.subr.bf16.mxu0 %v9312_v41 }
 0x80a   :  { %8427 = vmatpush3.bf16.msra.mxu0 %v9314_v36 }
 0x80b   :  { %8428 = vmatprep.subr.bf16.mxu0 %v9316_v24 }
 0x80d   :  { %4980 = vmatmul.mubr.bf16.gmra.mrb[12].mxu0 %v4831_v3 }
 0x80e   :  { %4989 = vmatprep.mubr.bf16.mxu0 %v9555_v11  ;;  %v9298_v11 = vld [vmem:[%s11641_s14 + $0xc0] sm:$0xff]   ;;  %8429 = vmatpush3.bf16.msra.mxu0 %v9318_v39 }
 0x80f   :  { %8140 = vmatprep.subr.bf16.mxu1 %v9298_v11  ;;  %8430 = vmatprep.subr.bf16.mxu0 %v9320_v49 }
 0x810   :  { %8141 = vmatpush3.bf16.msra.mxu1 %v9299_v15 }
 0x811   :  { %8142 = vmatprep.subr.bf16.mxu1 %v9301_v29 }
 0x812   :  { %8431 = vmatpush3.bf16.msra.mxu0 %v9322_v59 }
 0x813   :  { %8432 = vmatprep.subr.bf16.mxu0 %v9324_v55 }
 0x814   :  { %8143 = vmatpush3.bf16.msra.mxu1 %v9303_v16 }
 0x815   :  { %4990 = vmatmul.mubr.bf16.gmra.mrb[16].mxu0 %v4832_v10  ;;  %8144 = vmatprep.subr.bf16.mxu1 %v9305_v14 }
 0x816   :  { %8433 = vmatpush3.bf16.msra.mxu0 %v9326_v0 }
 0x817   :  { %8434 = vmatprep.subr.bf16.mxu0 %v9328_v4 }
 0x818   :  { %v3815_v13 = vpop.f32.mrb[24].mxu0  ;;  %8145 = vmatpush3.bf16.msra.mxu1 %v9307_v32 }
 0x819   :  { %v3846_v42 = vadd.f32 %v3815_v13, %v3637_v54  ;;  %v3817_v45 = vpop.f32.mrb[25].mxu0  ;;  %8146 = vmatprep.subr.bf16.mxu1 %v9309_v34 }
 0x81a   :  { %v3847_v17 = vadd.f32 %v3817_v45, %v3639_v47  ;;  %v3819_v19 = vpop.f32.mrb[26].mxu0  ;;  %8435 = vmatpush3.bf16.msra.mxu0 %v9330_v1 }
 0x81b   :  { %v3820_v20 = vpop.f32.mrb[27].mxu0  ;;  %8460 = vmatprep.subr.bf16.mxu0 %v9336_v6 }
 0x81c   :  { %8147 = vmatpush3.bf16.msra.mxu1 %v9311_v38 }
 0x81d   :  { %8148 = vmatprep.subr.bf16.mxu1 %v9313_v43 }
 0x820   :  { %8149 = vmatpush3.bf16.msra.mxu1 %v9315_v28 }
 0x821   :  { %8150 = vmatprep.subr.bf16.mxu1 %v9317_v37 }
 0x824   :  { %8151 = vmatpush3.bf16.msra.mxu1 %v9319_v40 }
 0x825   :  { %8152 = vmatprep.subr.bf16.mxu1 %v9321_v58 }
 0x828   :  { %8153 = vmatpush3.bf16.msra.mxu1 %v9323_v61 }
 0x829   :  { %8154 = vmatprep.subr.bf16.mxu1 %v9325_v57 }
 0x82c   :  { %8155 = vmatpush3.bf16.msra.mxu1 %v9327_v2 }
 0x82d   :  { %8180 = vmatprep.subr.bf16.mxu1 %v9329_v62 }
 0x838   :  { %v4008_v50 = vpop.f32.mrb[28].mxu0 }
 0x839   :  { %v4039_v51 = vadd.f32 %v4008_v50, %v3846_v42  ;;  %v4010_v56 = vpop.f32.mrb[29].mxu0 }
 0x83a   :  { %v4040_v21 = vadd.f32 %v4010_v56, %v3847_v17  ;;  %v4012_v22 = vpop.f32.mrb[30].mxu0  ;;  %v5014_v56 = vld [vmem:[%s11640_s13] sm:$0x3] }
 0x83b   :  { %v4013_v23 = vpop.f32.mrb[31].mxu0  ;;  %v10815_v22 = vrot.slane %v5014_v56, %v9785_v48 }
 0x858   :  { %v4201_v60 = vpop.f32.mrb[32].mxu0 }
 0x859   :  { %v10703_v18 = vadd.f32 %v4201_v60, %v4039_v51  ;;  %v4203_v3 = vpop.f32.mrb[33].mxu0 }
 0x85a   :  { %v10705_v25 = vadd.f32 %v4203_v3, %v4040_v21  ;;  %v4205_v5 = vpop.f32.mrb[34].mxu0  ;;  %v10812_v21 = vrot.slane %v5014_v56, %v9779_v46 }
 0x85b   :  { %v4206_v26 = vpop.f32.mrb[35].mxu0 }
 0x878   :  { %v4394_v63 = vpop.f32.mrb[36].mxu0 }
 0x879   :  { %v4425_v52 = vadd.f32 %v4394_v63, %v10703_v18  ;;  %v4396_v53 = vpop.f32.mrb[37].mxu0 }
 0x87a   :  { %v4426_v54 = vadd.f32 %v4396_v53, %v10705_v25  ;;  %v4398_v44 = vpop.f32.mrb[38].mxu0 }
 0x87b   :  { %v4399_v47 = vpop.f32.mrb[39].mxu0 }
 0x898   :  { %v4587_v7 = vpop.f32.mrb[40].mxu0 }
 0x899   :  { %v4618_v8 = vadd.f32 %v4587_v7, %v4425_v52  ;;  %v4589_v9 = vpop.f32.mrb[41].mxu0 }
 0x89a   :  { %v4619_v10 = vadd.f32 %v4589_v9, %v4426_v54  ;;  %v4591_v13 = vpop.f32.mrb[42].mxu0 }
 0x89b   :  { %v4592_v42 = vpop.f32.mrb[43].mxu0 }
 0x8b8   :  { %v4780_v45 = vpop.f32.mrb[44].mxu0 }
 0x8b9   :  { %v4811_v17 = vadd.f32 %v4780_v45, %v4618_v8  ;;  %v4782_v19 = vpop.f32.mrb[45].mxu0 }
 0x8ba   :  { %v4812_v20 = vadd.f32 %v4782_v19, %v4619_v10  ;;  %v4784_v50 = vpop.f32.mrb[46].mxu0 }
 0x8bb   :  { %v4785_v51 = vpop.f32.mrb[47].mxu0 }
 0x8d0   :  { %v4963_v23 = vpop.f32.mrb[4].mxu0 }
 0x8d1   :  { %v5026_v60 = vadd.f32 %v10812_v21, %v4963_v23  ;;  %v4965_v11 = vpop.f32.mrb[5].mxu0 }
 0x8d2   :  { %v5027_v18 = vadd.f32 %v10815_v22, %v4965_v11  ;;  %v4967_v3 = vpop.f32.mrb[6].mxu0 }
 0x8d3   :  { %v5040_v25 = vmax.f32 %v5026_v60, 0.0  ;;  %v5028_v5 = vadd.f32 %v10812_v21, %v4967_v3  ;;  %v4969_v15 = vpop.f32.mrb[7].mxu0 }
 0x8d4   :  { %v5041_v26 = vmax.f32 %v5027_v18, 0.0  ;;  %v5029_v27 = vadd.f32 %v10815_v22, %v4969_v15 }
 0x8d5   :  { %v5056_v29 = vrot.slane %v5040_v25, 1  ;;  %v5042_v46 = vmax.f32 %v5028_v5, 0.0 }
 0x8d6   :  { %v5057_v30 = vrot.slane %v5041_v26, 1  ;;  %v5043_v48 = vmax.f32 %v5029_v27, 0.0 }
 0x8d7   :  { %5060 = vst [vmem:[#allocation4 + $0x10] ss:$-12 sps:$4 sm:$0x87] %v5056_v29   ;;  %v5067_v16 = vrot.slane %v5042_v46, 1 }
 0x8d8   :  { %5061 = vst [vmem:[#allocation4 + $0x18] ss:$-12 sps:$4 sm:$0x87] %v5057_v30   ;;  %v5069_v12 = vrot.slane %v5043_v48, 1  ;;  %v4973_v14 = vpop.f32.mrb[48].mxu0 }
 0x8d9   :  { %v5068_v31 = vsel %vm5066_vm3, %v5056_v29, %v5067_v16  ;;  %5077 = vst [vmem:[#allocation4 + $0x20] sm:$0x79] %v5067_v16   ;;  %v5004_v32 = vadd.f32 %v4973_v14, %v4811_v17  ;;  %v4975_v33 = vpop.f32.mrb[49].mxu0 }
 0x8da   :  { %5075 = vst [vmem:[#allocation4 + $0x10] sm:$0xe0] %v5068_v31  ;;  %v5070_v34 = vsel %vm5066_vm3, %v5057_v30, %v5069_v12  ;;  %5078 = vst [vmem:[#allocation4 + $0x28] sm:$0x79] %v5069_v12   ;;  %v5005_v35 = vadd.f32 %v4975_v33, %v4812_v20  ;;  %v4977_v38 = vpop.f32.mrb[50].mxu0  ;;  %v9473_v33 = vld [vmem:[#allocation3 + $0x20] sm:$0xff] }
 0x8db   :  { %5076 = vst [vmem:[#allocation4 + $0x18] sm:$0xe0] %v5070_v34  ;;  %v5030_v41 = vadd.f32 %v10812_v21, %v5004_v32  ;;  %v4978_v43 = vpop.f32.mrb[51].mxu0 }
 0x8dc   :  { %v5031_v36 = vadd.f32 %v10815_v22, %v5005_v35 }
 0x8dd   :  { %v5044_v28 = vmax.f32 %v5030_v41, 0.0 }
 0x8de   :  { %v5045_v24 = vmax.f32 %v5031_v36, 0.0  ;;  %v5185_v58 = vld [vmem:[#allocation4] sm:$0xfe] }
 0x8df   :  { %v5083_v37 = vrot.slane %v5044_v28, 1  ;;  %v5186_v63 = vld [vmem:[#allocation4 + $0x8] sm:$0xfe] }
 0x8e0   :  { %v5084_v39 = vrot.slane %v5045_v24, 1  ;;  %v4981_v40 = vpop.f32.mrb[12].mxu0  ;;  %v10825_v49 = vld [vmem:[#allocation4 + $0x20] sm:$0xff] }
 0x8e1   :  { %5087 = vst [vmem:[#allocation4 + $0x30] sm:$0x1e] %v5083_v37  ;;  %v5032_v59 = vadd.f32 %v10812_v21, %v4981_v40  ;;  %v4983_v61 = vpop.f32.mrb[13].mxu0  ;;  %v10828_v55 = vld [vmem:[#allocation4 + $0x28] sm:$0xff]  ;;  %v10830_v57 = vld [vmem:[#allocation4 + $0x10] sm:$0xff] }
 0x8e2   :  { %v6851_v0 = vld [vmem:[#allocation4 + $0x10] sm:$0xe0]  ;;  %5088 = vst [vmem:[#allocation4 + $0x38] sm:$0x1e] %v5084_v39  ;;  %v5033_v2 = vadd.f32 %v10815_v22, %v4983_v61  ;;  %v4985_v4 = vpop.f32.mrb[14].mxu0  ;;  %v10833_v62 = vld [vmem:[#allocation4 + $0x18] sm:$0xff]  ;;  %v5189_v1 = vpack.c.bf16 %v10830_v57, %v5185_v58 }
 0x8e3   :  { %v6852_v52 = vld [vmem:[#allocation4 + $0x18] sm:$0xe0]  ;;  %v10837_v53 = vpack.c.bf16 %v10825_v49, %v6851_v0  ;;  %v5046_v54 = vmax.f32 %v5032_v59, 0.0  ;;  %v5034_v44 = vadd.f32 %v10812_v21, %v4985_v4  ;;  %v4987_v47 = vpop.f32.mrb[15].mxu0  ;;  %v5190_v6 = vpack.c.bf16 %v10833_v62, %v5186_v63 }
 0x8e4   :  { %v6856_v7 = vpack.c.bf16 %v10828_v55, %v6852_v52  ;;  %v5047_v8 = vmax.f32 %v5033_v2, 0.0  ;;  %v5035_v9 = vadd.f32 %v10815_v22, %v4987_v47  ;;  %v5227_v10 = vshrl.u32 %v5189_v1, 16  ;;  %v9331_v52 = vld [vmem:[%s11641_s14] sm:$0xff]  }
 0x8e5   :  { %v5229_v13 = vshll.u32 %v5189_v1, 16  ;;  %v5091_v42 = vrot.slane %v5046_v54, 1  ;;  %v5048_v45 = vmax.f32 %v5034_v44, 0.0  ;;  %v5239_v17 = vshrl.u32 %v5190_v6, 16 }
 0x8e6   :  { %v5241_v19 = vshll.u32 %v5190_v6, 16  ;;  %v5092_v20 = vrot.slane %v5047_v8, 1  ;;  %v5049_v50 = vmax.f32 %v5035_v9, 0.0  ;;  %v6910_v56 = vshrl.u32 %v6856_v7, 16  ;;  %v9332_v9 = vld [vmem:[%s11641_s14 + $0x48] sm:$0xff]  }
 0x8e7   :  { %v5231_v51 = vrot.slane %v5229_v13, 1  ;;  %5095 = vst [vmem:[#allocation4 + $0x50] sm:$0x78] %v5091_v42  ;;  %v5099_v23 = vrot.slane %v5048_v45, 1  ;;  %v6913_v11 = vshll.u32 %v6856_v7, 16  ;;  %v6893_v18 = vshrl.u32 %v10837_v53, 16 }
 0x8e8   :  { %v5243_v60 = vrot.slane %v5241_v19, 1  ;;  %5096 = vst [vmem:[#allocation4 + $0x58] sm:$0x78] %v5092_v20  ;;  %v5100_v3 = vrot.slane %v5049_v50, 1  ;;  %v4991_v25 = vpop.f32.mrb[16].mxu0  ;;  %v5135_v5 = vld [vmem:[#allocation4 + $0x30] sm:$0xff] }
 0x8e9   :  { %v5232_v15 = vor.u32 %v5231_v51, %v5227_v10  ;;  %v10844_v26 = vrot.slane %v6910_v56, 2  ;;  %v6896_v27 = vshll.u32 %v10837_v53, 16  ;;  %5103 = vst [vmem:[#allocation4 + $0x60] sm:$0x1e] %v5099_v23  ;;  %v5036_v29 = vadd.f32 %v10812_v21, %v4991_v25  ;;  %v4993_v46 = vpop.f32.mrb[17].mxu0  ;;  %v5136_v30 = vld [vmem:[#allocation4 + $0x38] sm:$0xff] }
 0x8ea   :  { %v5244_v48 = vor.u32 %v5243_v60, %v5239_v17  ;;  %v10849_v16 = vpack.c.bf16 %v5135_v5, %v10825_v49  ;;  %v6915_v12 = vrot.slane %v6913_v11, 3  ;;  %5104 = vst [vmem:[#allocation4 + $0x68] sm:$0x1e] %v5100_v3  ;;  %v5037_v14 = vadd.f32 %v10815_v22, %v4993_v46  ;;  %v4995_v31 = vpop.f32.mrb[18].mxu0  ;;  %v9333_v23 = vld [vmem:[%s11641_s14 + $0x8] sm:$0xff]  }
 0x8eb   :  { %v10853_v32 = vpack.c.bf16 %v5136_v30, %v10828_v55  ;;  %v10855_v34 = vpack.c.bf16 %v9473_v33, %v5136_v30  ;;  %v10857_v35 = vpack.c.bf16 %v9473_v33, %v5135_v5  ;;  %v5050_v38 = vmax.f32 %v5036_v29, 0.0  ;;  %v4997_v43 = vpop.f32.mrb[19].mxu0  ;;  %v10909_v29 = vld [vmem:[%s11641_s14 + $0x400] sm:$0xff]   ;;  %v10914_v46 = vld [vmem:[%s11641_s14 + $0x448] sm:$0xff]  }
 0x8ec   :  { %v5038_v41 = vadd.f32 %v10812_v21, %v4995_v31  ;;  %v5234_v36 = vshll.u32 %v10849_v16, 16  ;;  %v6916_v28 = vor.u32 %v6915_v12, %v10844_v26  ;;  %v5051_v24 = vmax.f32 %v5037_v14, 0.0 }
 0x8ed   :  { %v5039_v37 = vadd.f32 %v10815_v22, %v4997_v43  ;;  %v5246_v39 = vshll.u32 %v10853_v32, 16  ;;  %v6918_v40 = vshrl.u32 %v10855_v34, 16  ;;  %v5107_v58 = vrot.slane %v5050_v38, 1  ;;  %v9335_v38 = vld [vmem:[%s11641_s14 + $0x10] sm:$0xff]  }
 0x8ee   :  { %v5052_v59 = vmax.f32 %v5038_v41, 0.0  ;;  %v5236_v61 = vrot.slane %v5234_v36, 1  ;;  %v6921_v0 = vshll.u32 %v10855_v34, 16  ;;  %v5108_v21 = vrot.slane %v5051_v24, 1  ;;  %v5139_v10 = vld [vmem:[#allocation4 + $0x50] sm:$0xff] }
 0x8ef   :  { %v5053_v2 = vmax.f32 %v5039_v37, 0.0  ;;  %v5248_v4 = vrot.slane %v5246_v39, 1  ;;  %v6920_v63 = vrot.slane %v6918_v40, 2  ;;  %5111 = vst [vmem:[#allocation4 + $0x70] ss:$-12 sps:$4 sm:$0x87] %v5107_v58   ;;  %v10893_v11 = vpack.c.bf16 %v5139_v10, %v9473_v33 }
 0x8f0   :  { %v5117_v1 = vrot.slane %v5052_v59, 1  ;;  %v5237_v22 = vsel %vm5225_vm4, %v5232_v15, %v5236_v61  ;;  %v6923_v53 = vrot.slane %v6921_v0, 3  ;;  %v6895_v54 = vrot.slane %v6893_v18, 2  ;;  %v5140_v44 = vld [vmem:[#allocation4 + $0x58] sm:$0xff]  ;;  %v9334_v15 = vld [vmem:[%s11641_s14 + $0x50] sm:$0xff]  }
 0x8f1   :  { %5112 = vst [vmem:[#allocation4 + $0x78] ss:$-12 sps:$4 sm:$0x87] %v5108_v21   ;;  %v5119_v47 = vrot.slane %v5053_v2, 1  ;;  %v5249_v6 = vsel %vm5225_vm4, %v5244_v48, %v5248_v4  ;;  %v6898_v7 = vrot.slane %v6896_v27, 3  ;;  %v6901_v8 = vshrl.u32 %v10857_v35, 16 }
 0x8f2   :  { %v5118_v13 = vsel %vm5066_vm3, %v5107_v58, %v5117_v1  ;;  %5127 = vst [vmem:[#allocation4 + $0x80] sm:$0x1] %v5117_v1  ;;  %5424 = vmatprep.mubr.bf16.mxu1 %v5249_v6  ;;  %v10880_v42 = vor.u32 %v6923_v53, %v6920_v63  ;;  %v6904_v45 = vshll.u32 %v10857_v35, 16  ;;  %v10883_v17 = vpack.c.bf16 %v5140_v44, %v9473_v33 }
 0x8f3   :  { %5125 = vst [vmem:[#allocation4 + $0x70] sm:$0xe0] %v5118_v13  ;;  %v5120_v19 = vsel %vm5066_vm3, %v5108_v21, %v5119_v47  ;;  %5128 = vst [vmem:[#allocation4 + $0x88] sm:$0x1] %v5119_v47  ;;  %5425 = vmatmul.mubr.bf16.vlgmr.msra.gmra.mrb[64].mxu1 %v5237_v22  ;;  %v6903_v20 = vrot.slane %v6901_v8, 2  ;;  %v5258_v50 = vshrl.u32 %v10853_v32, 16  ;;  %v6899_v18 = vor.u32 %v6898_v7, %v6895_v54 }
 0x8f4   :  { %5126 = vst [vmem:[#allocation4 + $0x78] sm:$0xe0] %v5120_v19  ;;  %8181 = vmatpush3.bf16.msra.mxu1 %v9331_v52  ;;  %v6925_v51 = vsel %vm6891_vm5, %v6916_v28, %v10880_v42  ;;  %v6906_v56 = vrot.slane %v6904_v45, 3  ;;  %v5262_v60 = vshll.u32 %v10883_v17, 16  ;;  %v5250_v26 = vshrl.u32 %v10849_v16, 16  ;;  %v9338_v28 = vld [vmem:[%s11641_s14 + $0x58] sm:$0xff]  }
 0x8f5   :  { %7098 = vmatprep.mubr.bf16.mxu0 %v6925_v51  ;;  %8182 = vmatprep.subr.bf16.mxu1 %v9332_v9  ;;  %v5260_v3 = vor.u32 %v5258_v50, %v5248_v4  ;;  %v5254_v27 = vshll.u32 %v10893_v11, 16  ;;  %v5274_v59 = vshrl.u32 %v10883_v17, 16  ;;  %v5266_v0 = vshrl.u32 %v10893_v11, 16  ;;  %v10959_v52 = vld [vmem:[%s11641_s14 + $0x450] sm:$0xff]   ;;  %v9339_v54 = vld [vmem:[%s11641_s14 + $0x18] sm:$0xff]   ;;  %v9342_v47 = vld [vmem:[%s11641_s14 + $0x60] sm:$0xff]  }
 0x8f6   :  { %v10897_v25 = vor.u32 %v6906_v56, %v6903_v20  ;;  %v5264_v5 = vrot.slane %v5262_v60, 1  ;;  %v10916_v30 = vld [vmem:[#allocation4 + $0x60] sm:$0xff]  ;;  %v5187_v48 = vld [vmem:[#allocation4 + $0x70] sm:$0x7]  ;;  %v5252_v31 = vor.u32 %v5250_v26, %v5236_v61  ;;  %v10946_v61 = vld [vmem:[%s11641_s14 + $0x408] sm:$0xff]  }
 0x8f7   :  { %v5256_v33 = vrot.slane %v5254_v27, 1  ;;  %v10938_v40 = vpack.c.bf16 %v5187_v48, %v10916_v30  ;;  %v10950_v21 = vpack.c.bf16 %v10916_v30, %v5139_v10  ;;  %v10980_v56 = vld [vmem:[%s11641_s14 + $0x410] sm:$0xff]  }
 0x8f8   :  { %v6908_v12 = vsel %vm6891_vm5, %v6899_v18, %v10897_v25  ;;  %8183 = vmatpush3.bf16.msra.mxu1 %v9333_v23  ;;  %v5265_v14 = vsel %vm5225_vm4, %v5260_v3, %v5264_v5  ;;  %v10928_v41 = vld [vmem:[#allocation4 + $0x68] sm:$0xff]  ;;  %v5188_v43 = vld [vmem:[#allocation4 + $0x78] sm:$0x7] }
 0x8f9   :  { %7099 = vmatmul.mubr.bf16.vlgmr.msra.gmra.mrb[52].mxu0 %v6908_v12  ;;  %5432 = vmatprep.mubr.bf16.mxu1 %v5265_v14  ;;  %v5192_v24 = vpack.c.bf16 %v5188_v43, %v10928_v41  ;;  %v10935_v37 = vpack.c.bf16 %v10928_v41, %v5140_v44  ;;  %v5257_v58 = vsel %vm5225_vm4, %v5252_v31, %v5256_v33  ;;  %v5270_v22 = vshll.u32 %v10938_v40, 16  ;;  %v6853_v19 = vld [vmem:[#allocation4 + $0x80] sm:$0x7f]  ;;  %v9343_v12 = vld [vmem:[%s11641_s14 + $0x20] sm:$0xff]  }
 0x8fa   :  { %8184 = vmatprep.subr.bf16.mxu1 %v9334_v15  ;;  %8461 = vmatpush3.bf16.msra.mxu0 %v10909_v29  ;;  %v6854_v2 = vld [vmem:[#allocation4 + $0x88] sm:$0x7f]  ;;  %v5276_v44 = vor.u32 %v5274_v59, %v5264_v5  ;;  %v6927_v6 = vshrl.u32 %v10950_v21, 16  ;;  %v6930_v7 = vshll.u32 %v10950_v21, 16  ;;  %v10982_v3 = vld [vmem:[#allocation4 + $0x70] sm:$0xff]  ;;  %v5268_v48 = vor.u32 %v5266_v0, %v5256_v33  ;;  %v9346_v33 = vld [vmem:[%s11641_s14 + $0x68] sm:$0xff]  }
 0x8fb   :  { %5433 = vmatmul.mubr.bf16.gmra.mrb[68].mxu1 %v5257_v58  ;;  %8462 = vmatprep.subr.bf16.mxu0 %v10914_v46  ;;  %v5278_v4 = vshll.u32 %v5192_v24, 16  ;;  %v6936_v63 = vshrl.u32 %v10935_v37, 16  ;;  %v6939_v1 = vshll.u32 %v10935_v37, 16  ;;  %v10961_v53 = vld [vmem:[#allocation4 + $0x78] sm:$0xff]  ;;  %v10974_v45 = vrot.slane %v5270_v22, 1 }
 0x8fc   :  { %8185 = vmatpush3.bf16.msra.mxu1 %v9335_v38  ;;  %v6858_v8 = vpack.c.bf16 %v6854_v2, %v10961_v53  ;;  %v6929_v20 = vrot.slane %v6927_v6, 2  ;;  %v6932_v51 = vrot.slane %v6930_v7, 3  ;;  %v5285_v31 = vshrl.u32 %v5192_v24, 16  ;;  %v11022_v6 = vld [vmem:[%s11641_s14 + $0x460] sm:$0xff]   ;;  %v5616_v7 = vld [vmem:[#allocation4] sm:$0xfc] }
 0x8fd   :  { %8186 = vmatprep.subr.bf16.mxu1 %v9338_v28  ;;  %v5280_v9 = vrot.slane %v5278_v4, 1  ;;  %v6938_v10 = vrot.slane %v6936_v63, 2  ;;  %v6941_v13 = vrot.slane %v6939_v1, 3  ;;  %v5273_v58 = vsel %vm5225_vm4, %v5268_v48, %v10974_v45  ;;  %v11012_v1 = vld [vmem:[%s11641_s14 + $0x418] sm:$0xff]  }
 0x8fe   :  { %8463 = vmatpush3.bf16.msra.mxu0 %v10946_v61  ;;  %v6954_v23 = vshrl.u32 %v6858_v8, 16  ;;  %v6957_v18 = vshll.u32 %v6858_v8, 16  ;;  %v6933_v14 = vor.u32 %v6932_v51, %v6929_v20  ;;  %v6857_v2 = vpack.c.bf16 %v6853_v19, %v10982_v3  ;;  %v9350_v8 = vld [vmem:[%s11641_s14 + $0x70] sm:$0xff]  }
 0x8ff   :  { %v5281_v5 = vsel %vm5225_vm4, %v5276_v44, %v5280_v9  ;;  %v6942_v15 = vor.u32 %v6941_v13, %v6938_v10  ;;  %8464 = vmatprep.subr.bf16.mxu0 %v10959_v52  ;;  %v5287_v24 = vor.u32 %v5285_v31, %v5280_v9  ;;  %v5620_v13 = vpack.c.bf16 %v10830_v57, %v5616_v7  ;;  %v9351_v31 = vld [vmem:[%s11641_s14 + $0x30] sm:$0xff]  }
 0x900   :  { %8187 = vmatpush3.bf16.msra.mxu1 %v9339_v54  ;;  %5439 = vmatprep.mubr.bf16.mxu1 %v5281_v5  ;;  %v6956_v38 = vrot.slane %v6954_v23, 2  ;;  %v6959_v43 = vrot.slane %v6957_v18, 3  ;;  %v6934_v4 = vsel %vm6891_vm5, %v10897_v25, %v6933_v14  ;;  %v6945_v22 = vshrl.u32 %v6857_v2, 16  ;;  %v5618_v25 = vld [vmem:[#allocation4 + $0x70] sm:$0xf] }
 0x901   :  { %8188 = vmatprep.subr.bf16.mxu1 %v9342_v47  ;;  %v6943_v28 = vsel %vm6891_vm5, %v10880_v42, %v6942_v15  ;;  %v11007_v42 = vld [vmem:[%s11641_s14 + $0x458] sm:$0xff]   ;;  %v6948_v54 = vshll.u32 %v6857_v2, 16  ;;  %v9347_v47 = vld [vmem:[%s11641_s14 + $0x28] sm:$0xff]   ;;  %v5666_v19 = vrot.slane %v10849_v16, 1  ;;  %v5671_v20 = vrot.slane %v10893_v11, 1 }
 0x902   :  { %7106 = vmatprep.mubr.bf16.mxu0 %v6943_v28  ;;  %8465 = vmatpush3.bf16.msra.mxu0 %v10980_v56  ;;  %v11002_v63 = vor.u32 %v6959_v43, %v6956_v38  ;;  %v6947_v9 = vrot.slane %v6945_v22, 2  ;;  %v5622_v51 = vpack.c.bf16 %v5618_v25, %v10916_v30  ;;  %v5855_v23 = vld [vmem:[#allocation4 + $0x8] sm:$0xc0]  ;;  %v5282_v18 = vshrl.u32 %v10938_v40, 16  ;;  %v7138_v25 = vld [vmem:[#allocation4 + $0x18] sm:$0xc0] }
 0x903   :  { %5440 = vmatmul.mubr.bf16.gmra.mrb[72].mxu1 %v5273_v58  ;;  %7107 = vmatmul.mubr.bf16.gmra.mrb[56].mxu0 %v6934_v4  ;;  %v6950_v10 = vrot.slane %v6948_v54, 3  ;;  %v5665_v48 = vrot.slane %v5620_v13, 1  ;;  %v11043_v43 = vsel %vm5066_vm3, %v5666_v19, %v5671_v20  ;;  %v11051_v58 = vld [vmem:[%s11641_s14 + $0x420] sm:$0xff]   ;;  %v5903_v4 = vrot.slane %v10853_v32, 3  ;;  %v9354_v54 = vld [vmem:[%s11641_s14 + $0x78] sm:$0xff]  }
 0x904   :  { %8189 = vmatpush3.bf16.msra.mxu1 %v9343_v12  ;;  %5447 = vmatprep.mubr.bf16.mxu1 %v5287_v24  ;;  %v6961_v44 = vsel %vm6891_vm5, %v6942_v15, %v11002_v63  ;;  %v5130_v15 = vld [vmem:[#allocation4 + $0x8] sm:$0xff]  ;;  %v5859_v12 = vpack.c.bf16 %v10833_v62, %v5855_v23  ;;  %v11045_v40 = vrot.slane %v5622_v51, 1  ;;  %v5284_v28 = vor.u32 %v5282_v18, %v10974_v45  ;;  %v5854_v24 = vld [vmem:[#allocation4] sm:$0xc0]  ;;  %v11065_v45 = vld [vmem:[%s11641_s14 + $0x468] sm:$0xff]  }
 0x905   :  { %7113 = vmatprep.mubr.bf16.mxu0 %v6961_v44  ;;  %8190 = vmatprep.subr.bf16.mxu1 %v9346_v33  ;;  %v11034_v5 = vor.u32 %v6950_v10, %v6947_v9  ;;  %v5146_v38 = vpack.c.bf16 %v10833_v62, %v5130_v15  ;;  %v11054_v33 = vsel %vm5066_vm3, %v5665_v48, %v5666_v19  ;;  %v5900_v7 = vrot.slane %v10849_v16, 3  ;;  %v9355_v13 = vld [vmem:[%s11641_s14 + $0x38] sm:$0xff]   ;;  %v11094_v51 = vld [vmem:[%s11641_s14 + $0x428] sm:$0xff]   ;;  %v9358_v23 = vld [vmem:[%s11641_s14 + $0x140] sm:$0xff]  }
 0x906   :  { %8466 = vmatprep.subr.bf16.mxu0 %v11007_v42  ;;  %v5902_v2 = vrot.slane %v5859_v12, 3  ;;  %v11069_v44 = vsel %vm5066_vm3, %v5671_v20, %v11045_v40  ;;  %v5905_v9 = vrot.slane %v10893_v11, 3  ;;  %v11080_v10 = vpack.c.bf16 %v10961_v53, %v10928_v41  ;;  %v11111_v12 = vld [vmem:[%s11641_s14 + $0x470] sm:$0xff]  }
 0x907   :  { %8467 = vmatpush3.bf16.msra.mxu0 %v11012_v1  ;;  %v6952_v22 = vsel %vm6891_vm5, %v6933_v14, %v11034_v5  ;;  %v11087_v20 = vpack.c.bf16 %v10982_v3, %v10916_v30  ;;  %v7142_v18 = vpack.c.bf16 %v10828_v55, %v7138_v25  ;;  %v11136_v25 = vld [vmem:[%s11641_s14 + $0x430] sm:$0xff]  }
 0x908   :  { %8191 = vmatpush3.bf16.msra.mxu1 %v9347_v47  ;;  %8468 = vmatprep.subr.bf16.mxu0 %v11022_v6  ;;  %v5858_v47 = vpack.c.bf16 %v10830_v57, %v5854_v24  ;;  %v11074_v14 = vsel %vm5898_vm6, %v5902_v2, %v5903_v4  ;;  %v11104_v48 = vsel %vm5898_vm6, %v5900_v7, %v5905_v9  ;;  %v5129_v2 = vld [vmem:[#allocation4] sm:$0xff]  ;;  %v7137_v24 = vld [vmem:[#allocation4 + $0x10] sm:$0xc0] }
 0x909   :  { %8192 = vmatprep.subr.bf16.mxu1 %v9350_v8  ;;  %v5907_v8 = vrot.slane %v10883_v17, 3  ;;  %v11646_v55 = vrot.slane %v11087_v20, 3 }
 0x90a   :  { %v5899_v19 = vrot.slane %v5858_v47, 3  ;;  %v7184_v47 = vrot.slane %v7142_v18, 3  ;;  %v6160_v18 = vrot.slane %v5250_v26, 3  ;;  %v6189_v26 = vrot.slane %v5254_v27, 4  ;;  %v9368_v27 = vld [vmem:[%s11641_s14 + $0x158] sm:$0xff]  }
 0x90b   :  { %5448 = vmatmul.mubr.bf16.gmra.mrb[76].mxu1 %v5284_v28  ;;  %7114 = vmatmul.mubr.bf16.gmra.mrb[60].mxu0 %v6952_v22  ;;  %v11101_v15 = vsel %vm5898_vm6, %v5903_v4, %v5907_v8  ;;  %v9359_v4 = vld [vmem:[%s11641_s14 + $0x100] sm:$0xff]   ;;  %v11129_v22 = vsel %vm5898_vm6, %v5905_v9, %v11646_v55  ;;  %v7141_v9 = vpack.c.bf16 %v10825_v49, %v7137_v24  ;;  %v11165_v49 = vld [vmem:[%s11641_s14 + $0x438] sm:$0xff]   ;;  %v6198_v24 = vrot.slane %v5262_v60, 4 }
 0x90c   :  { %8193 = vmatpush3.bf16.msra.mxu1 %v9351_v31  ;;  %5584 = vmatprep.mubr.bf16.mxu1 %v5146_v38  ;;  %v11114_v31 = vsel %vm5898_vm6, %v5899_v19, %v5900_v7  ;;  %v11648_v38 = vrot.slane %v10855_v34, 3  ;;  %v9362_v7 = vld [vmem:[%s11641_s14 + $0x148] sm:$0xff]  }
 0x90d   :  { %7121 = vmatprep.mubr.bf16.mxu0 %v11002_v63  ;;  %8469 = vmatpush3.bf16.msra.mxu0 %v11051_v58  ;;  %v11647_v63 = vrot.slane %v11080_v10, 3  ;;  %v9363_v19 = vld [vmem:[%s11641_s14 + $0x108] sm:$0xff]  }
 0x90e   :  { %8194 = vmatprep.subr.bf16.mxu1 %v9354_v54  ;;  %8470 = vmatprep.subr.bf16.mxu0 %v11065_v45  ;;  %v5145_v54 = vpack.c.bf16 %v10830_v57, %v5129_v2  ;;  %v7186_v57 = vsel %vm5898_vm6, %v7184_v47, %v11648_v38  ;;  %v7182_v2 = vrot.slane %v10857_v35, 3  ;;  %v6186_v47 = vrot.slane %v5266_v0, 3 }
 0x90f   :  { %v11121_v28 = vsel %vm5898_vm6, %v5907_v8, %v11647_v63  ;;  %v11145_v8 = vld [vmem:[%s11641_s14 + $0x478] sm:$0xff]  }
 0x910   :  { %8195 = vmatpush3.bf16.msra.mxu1 %v9355_v13  ;;  %v6177_v13 = vrot.slane %v5258_v50, 3  ;;  %v9366_v50 = vld [vmem:[%s11641_s14 + $0x150] sm:$0xff]  }
 0x911   :  { %8471 = vmatpush3.bf16.msra.mxu0 %v11094_v51  ;;  %8220 = vmatprep.subr.bf16.mxu1 %v9358_v23  ;;  %v6180_v23 = vrot.slane %v5246_v39, 4  ;;  %v6163_v39 = vrot.slane %v5234_v36, 4  ;;  %v6214_v36 = vshll.u32 %v11080_v10, 16 }
 0x912   :  { %8472 = vmatprep.subr.bf16.mxu0 %v11111_v12 }
 0x913   :  { %5585 = vmatmul.mubr.bf16.vlgmr.msra.gmra.mrb[80].mxu1 %v5145_v54  ;;  %7122 = vmatmul.mubr.bf16.gmra.mrb[64].mxu0 %v11034_v5  ;;  %v6211_v5 = vshrl.u32 %v11080_v10, 16  ;;  %v11189_v55 = vor.u32 %v6180_v23, %v6177_v13  ;;  %v11196_v0 = vor.u32 %v6163_v39, %v6160_v18  ;;  %v6216_v63 = vrot.slane %v6214_v36, 4  ;;  %v9369_v18 = vld [vmem:[%s11641_s14 + $0x118] sm:$0xff]   ;;  %v7139_v36 = vld [vmem:[#allocation4 + $0x80] sm:$0xff] }
 0x914   :  { %8221 = vmatpush3.bf16.msra.mxu1 %v9359_v4  ;;  %5592 = vmatprep.mubr.bf16.mxu1 %v10853_v32  ;;  %v6195_v4 = vrot.slane %v5274_v59, 3  ;;  %v7181_v59 = vrot.slane %v7141_v9, 3 }
 0x915   :  { %8473 = vmatpush3.bf16.msra.mxu0 %v11136_v25  ;;  %7331 = vmatprep.mubr.bf16.mxu0 %v7186_v57  ;;  %v6213_v54 = vrot.slane %v6211_v5, 3  ;;  %v9367_v57 = vld [vmem:[%s11641_s14 + $0x110] sm:$0xff]   ;;  %v6205_v5 = vshll.u32 %v11087_v20, 16 }
 0x916   :  { %8222 = vmatprep.subr.bf16.mxu1 %v9362_v7  ;;  %8474 = vmatprep.subr.bf16.mxu0 %v11145_v8  ;;  %v6202_v7 = vshrl.u32 %v11087_v20, 16  ;;  %v6199_v60 = vor.u32 %v6198_v24, %v6195_v4  ;;  %v7183_v23 = vsel %vm5898_vm6, %v7181_v59, %v7182_v2 }
 0x917   :  { %v6207_v13 = vrot.slane %v6205_v5, 4  ;;  %v11208_v4 = vor.u32 %v6216_v63, %v6213_v54  ;;  %v5144_v54 = vld [vmem:[#allocation4 + $0x78] sm:$0x3] }
 0x918   :  { %8223 = vmatpush3.bf16.msra.mxu1 %v9363_v19  ;;  %v6190_v19 = vor.u32 %v6189_v26, %v6186_v47  ;;  %v6204_v38 = vrot.slane %v6202_v7, 3  ;;  %v11200_v9 = vsel %vm6148_vm7, %v11189_v55, %v6199_v60  ;;  %v7189_v47 = vrot.slane %v10935_v37, 3  ;;  %v7140_v26 = vld [vmem:[#allocation4 + $0x88] sm:$0xff]  ;;  %v9372_v7 = vld [vmem:[%s11641_s14 + $0x168] sm:$0xff]  }
 0x919   :  { %8475 = vmatpush3.bf16.msra.mxu0 %v11165_v49  ;;  %8224 = vmatprep.subr.bf16.mxu1 %v9366_v50  ;;  %v11221_v24 = vsel %vm6148_vm7, %v6199_v60, %v11208_v4  ;;  %v5152_v59 = vpack.c.bf16 %v5144_v54, %v10928_v41  ;;  %v11653_v60 = vrot.slane %v10855_v34, 3 }
 0x91a   :  { %v11206_v50 = vsel %vm6148_vm7, %v11196_v0, %v6190_v19  ;;  %v11213_v39 = vor.u32 %v6207_v13, %v6204_v38  ;;  %v9371_v38 = vld [vmem:[%s11641_s14 + $0x120] sm:$0xff]   ;;  %v7143_v13 = vpack.c.bf16 %v7139_v36, %v10982_v3 }
 0x91b   :  { %5593 = vmatmul.mubr.bf16.gmra.mrb[84].mxu1 %v10849_v16  ;;  %v9370_v16 = vld [vmem:[%s11641_s14 + $0x160] sm:$0xff]   ;;  %v11239_v5 = vsel %vm5898_vm6, %v11653_v60, %v7189_v47 }
 0x91c   :  { %8225 = vmatpush3.bf16.msra.mxu1 %v9367_v57  ;;  %7332 = vmatmul.mubr.bf16.vlgmr.msra.gmra.mrb[68].mxu0 %v7183_v23  ;;  %v11225_v63 = vsel %vm6148_vm7, %v6190_v19, %v11213_v39  ;;  %v7187_v57 = vrot.slane %v10950_v21, 3  ;;  %v7144_v19 = vpack.c.bf16 %v7140_v26, %v10961_v53  ;;  %v9373_v23 = vld [vmem:[%s11641_s14 + $0x128] sm:$0xff]   ;;  %v11256_v54 = vrot.slane %v7143_v13, 3  ;;  %v5143_v26 = vld [vmem:[#allocation4 + $0x70] sm:$0x3] }
 0x91d   :  { %5599 = vmatprep.mubr.bf16.mxu1 %v10883_v17  ;;  %8226 = vmatprep.subr.bf16.mxu1 %v9368_v27  ;;  %v9379_v13 = vld [vmem:[%s11641_s14 + $0x180] sm:$0xff]  }
 0x91e   :  { %v11243_v27 = vsel %vm5898_vm6, %v7182_v2, %v7187_v57  ;;  %v11254_v2 = vrot.slane %v7144_v19, 3  ;;  %v9378_v19 = vld [vmem:[%s11641_s14 + $0x1c0] sm:$0xff]  }
 0x920   :  { %8227 = vmatpush3.bf16.msra.mxu1 %v9369_v18  ;;  %v5617_v18 = vld [vmem:[#allocation4 + $0x8] sm:$0xfc]  ;;  %v11261_v36 = vsel %vm5898_vm6, %v7189_v47, %v11254_v2 }
 0x921   :  { %8228 = vmatprep.subr.bf16.mxu1 %v9370_v16  ;;  %v9374_v16 = vld [vmem:[%s11641_s14 + $0x170] sm:$0xff]  }
 0x923   :  { %5600 = vmatmul.mubr.bf16.gmra.mrb[88].mxu1 %v10893_v11  ;;  %v5621_v11 = vpack.c.bf16 %v10833_v62, %v5617_v18  ;;  %v9375_v62 = vld [vmem:[%s11641_s14 + $0x130] sm:$0xff]   ;;  %v9380_v18 = vld [vmem:[%s11641_s14 + $0x1c8] sm:$0xff]  }
 0x924   :  { %8229 = vmatpush3.bf16.msra.mxu1 %v9371_v38  ;;  %5607 = vmatprep.mubr.bf16.mxu1 %v5152_v59  ;;  %v5669_v38 = vrot.slane %v10853_v32, 1  ;;  %v5151_v59 = vpack.c.bf16 %v5143_v26, %v10916_v30  ;;  %v9376_v32 = vld [vmem:[%s11641_s14 + $0x178] sm:$0xff]   ;;  %v5673_v30 = vrot.slane %v10883_v17, 1  ;;  %v9381_v17 = vld [vmem:[%s11641_s14 + $0x188] sm:$0xff]   ;;  %v9382_v26 = vld [vmem:[%s11641_s14 + $0x1d0] sm:$0xff]  }
 0x925   :  { %8230 = vmatprep.subr.bf16.mxu1 %v9372_v7  ;;  %v11265_v7 = vsel %vm5898_vm6, %v7187_v57, %v11256_v54  ;;  %v5668_v60 = vrot.slane %v5621_v11, 1  ;;  %v9377_v57 = vld [vmem:[%s11641_s14 + $0x138] sm:$0xff]  }
 0x927   :  { %v5670_v47 = vsel %vm5066_vm3, %v5668_v60, %v5669_v38  ;;  %v9386_v60 = vld [vmem:[%s11641_s14 + $0x1e0] sm:$0xff]  }
 0x928   :  { %8231 = vmatpush3.bf16.msra.mxu1 %v9373_v23  ;;  %v5619_v23 = vld [vmem:[#allocation4 + $0x78] sm:$0xf] }
 0x929   :  { %8232 = vmatprep.subr.bf16.mxu1 %v9374_v16  ;;  %v5674_v16 = vsel %vm5066_vm3, %v5669_v38, %v5673_v30  ;;  %v5623_v11 = vpack.c.bf16 %v5619_v23, %v10928_v41  ;;  %v9384_v41 = vld [vmem:[%s11641_s14 + $0x1d8] sm:$0xff]   ;;  %v9395_v23 = vld [vmem:[%s11641_s14 + $0x200] sm:$0xff]  }
 0x92b   :  { %5608 = vmatmul.mubr.bf16.gmra.mrb[92].mxu1 %v5151_v59  ;;  %v9385_v59 = vld [vmem:[%s11641_s14 + $0x198] sm:$0xff]  }
 0x92c   :  { %8233 = vmatpush3.bf16.msra.mxu1 %v9375_v62  ;;  %5815 = vmatprep.mubr.bf16.mxu1 %v5670_v47  ;;  %v5677_v62 = vrot.slane %v5623_v11, 1  ;;  %v9389_v47 = vld [vmem:[%s11641_s14 + $0x1a8] sm:$0xff]   ;;  %v9401_v11 = vld [vmem:[%s11641_s14 + $0x218] sm:$0xff]  }
 0x92d   :  { %8234 = vmatprep.subr.bf16.mxu1 %v9376_v32  ;;  %v9387_v32 = vld [vmem:[%s11641_s14 + $0x1a0] sm:$0xff]  }
 0x92e   :  { %v5678_v38 = vsel %vm5066_vm3, %v5673_v30, %v5677_v62  ;;  %v9393_v30 = vld [vmem:[%s11641_s14 + $0x1b8] sm:$0xff]  }
 0x930   :  { %8235 = vmatpush3.bf16.msra.mxu1 %v9377_v57  ;;  %v9390_v57 = vld [vmem:[%s11641_s14 + $0x1f0] sm:$0xff]  }
 0x931   :  { %8260 = vmatprep.subr.bf16.mxu1 %v9378_v19  ;;  %v9391_v19 = vld [vmem:[%s11641_s14 + $0x1b0] sm:$0xff]  }
 0x933   :  { %5816 = vmatmul.mubr.bf16.vlgmr.msra.gmra.mrb[96].mxu1 %v11054_v33  ;;  %v9383_v33 = vld [vmem:[%s11641_s14 + $0x190] sm:$0xff]  }
 0x934   :  { %8261 = vmatpush3.bf16.msra.mxu1 %v9379_v13  ;;  %5823 = vmatprep.mubr.bf16.mxu1 %v5674_v16  ;;  %v9394_v13 = vld [vmem:[%s11641_s14 + $0x240] sm:$0xff]   ;;  %v9399_v16 = vld [vmem:[%s11641_s14 + $0x210] sm:$0xff]  }
 0x935   :  { %8262 = vmatprep.subr.bf16.mxu1 %v9380_v18  ;;  %v9398_v18 = vld [vmem:[%s11641_s14 + $0x250] sm:$0xff]  }
 0x938   :  { %8263 = vmatpush3.bf16.msra.mxu1 %v9381_v17  ;;  %v6089_v17 = vld [vmem:[#allocation4 + $0x8] sm:$0x80] }
 0x939   :  { %8264 = vmatprep.subr.bf16.mxu1 %v9382_v26  ;;  %v9402_v26 = vld [vmem:[%s11641_s14 + $0x260] sm:$0xff]  }
 0x93b   :  { %5824 = vmatmul.mubr.bf16.gmra.mrb[100].mxu1 %v11043_v43  ;;  %v9388_v43 = vld [vmem:[%s11641_s14 + $0x1e8] sm:$0xff]  }
 0x93c   :  { %8265 = vmatpush3.bf16.msra.mxu1 %v9383_v33  ;;  %5830 = vmatprep.mubr.bf16.mxu1 %v5678_v38  ;;  %v11375_v38 = vld [vmem:[#allocation4 + $0x10] sm:$0xff] }
 0x93d   :  { %8266 = vmatprep.subr.bf16.mxu1 %v9384_v41 }
 0x940   :  { %8267 = vmatpush3.bf16.msra.mxu1 %v9385_v59  ;;  %v6088_v59 = vld [vmem:[#allocation4] sm:$0x80] }
 0x941   :  { %8268 = vmatprep.subr.bf16.mxu1 %v9386_v60  ;;  %v11654_v60 = vrot.slane %v11080_v10, 3 }
 0x943   :  { %5831 = vmatmul.mubr.bf16.gmra.mrb[104].mxu1 %v11069_v44  ;;  %v9392_v44 = vld [vmem:[%s11641_s14 + $0x1f8] sm:$0xff]  }
 0x944   :  { %8269 = vmatpush3.bf16.msra.mxu1 %v9387_v32  ;;  %5838 = vmatprep.mubr.bf16.mxu1 %v5677_v62  ;;  %v9405_v32 = vld [vmem:[%s11641_s14 + $0x228] sm:$0xff]  }
 0x945   :  { %8270 = vmatprep.subr.bf16.mxu1 %v9388_v43  ;;  %v6106_v43 = vpack.c.bf16 %v11375_v38, %v6088_v59 }
 0x947   :  { %v6150_v10 = vshrl.u32 %v6106_v43, 16 }
 0x948   :  { %8271 = vmatpush3.bf16.msra.mxu1 %v9389_v47  ;;  %v9406_v47 = vld [vmem:[%s11641_s14 + $0x270] sm:$0xff]  }
 0x949   :  { %8272 = vmatprep.subr.bf16.mxu1 %v9390_v57 }
 0x94b   :  { %5839 = vmatmul.mubr.bf16.gmra.mrb[108].mxu1 %v11045_v40  ;;  %v9396_v40 = vld [vmem:[%s11641_s14 + $0x248] sm:$0xff]  }
 0x94c   :  { %8273 = vmatpush3.bf16.msra.mxu1 %v9391_v19  ;;  %6049 = vmatprep.mubr.bf16.mxu1 %v11074_v14  ;;  %v9397_v14 = vld [vmem:[%s11641_s14 + $0x208] sm:$0xff]  }
 0x94d   :  { %8274 = vmatprep.subr.bf16.mxu1 %v9392_v44  ;;  %v6153_v44 = vshll.u32 %v6106_v43, 16 }
 0x950   :  { %8275 = vmatpush3.bf16.msra.mxu1 %v9393_v30 }
 0x951   :  { %8300 = vmatprep.subr.bf16.mxu1 %v9394_v13  ;;  %v9408_v13 = vld [vmem:[%s11641_s14 + $0x278] sm:$0xff]  }
 0x953   :  { %6050 = vmatmul.mubr.bf16.vlgmr.msra.gmra.mrb[112].mxu1 %v11114_v31  ;;  %v9400_v31 = vld [vmem:[%s11641_s14 + $0x258] sm:$0xff]  }
 0x954   :  { %8301 = vmatpush3.bf16.msra.mxu1 %v9395_v23  ;;  %6057 = vmatprep.mubr.bf16.mxu1 %v11101_v15  ;;  %v11358_v15 = vld [vmem:[#allocation4 + $0x18] sm:$0xff]  ;;  %v11655_v23 = vrot.slane %v11087_v20, 3  ;;  %v9411_v20 = vld [vmem:[%s11641_s14 + $0x280] sm:$0xff]  }
 0x955   :  { %8302 = vmatprep.subr.bf16.mxu1 %v9396_v40  ;;  %v6107_v62 = vpack.c.bf16 %v11358_v15, %v6089_v17 }
 0x957   :  { %v6167_v33 = vshrl.u32 %v6107_v62, 16  ;;  %v6170_v41 = vshll.u32 %v6107_v62, 16  ;;  %v9414_v62 = vld [vmem:[%s11641_s14 + $0x2d0] sm:$0xff]  }
 0x958   :  { %8303 = vmatpush3.bf16.msra.mxu1 %v9397_v14  ;;  %v9409_v14 = vld [vmem:[%s11641_s14 + $0x238] sm:$0xff]  }
 0x959   :  { %8304 = vmatprep.subr.bf16.mxu1 %v9398_v18  ;;  %v6169_v57 = vrot.slane %v6167_v33, 3  ;;  %v6172_v19 = vrot.slane %v6170_v41, 4  ;;  %v6152_v18 = vrot.slane %v6150_v10, 3  ;;  %v9417_v33 = vld [vmem:[%s11641_s14 + $0x298] sm:$0xff]   ;;  %v9418_v41 = vld [vmem:[%s11641_s14 + $0x2e0] sm:$0xff]  }
 0x95b   :  { %6058 = vmatmul.mubr.bf16.gmra.mrb[116].mxu1 %v11104_v48  ;;  %v9403_v48 = vld [vmem:[%s11641_s14 + $0x220] sm:$0xff]   ;;  %v6173_v30 = vor.u32 %v6172_v19, %v6169_v57  ;;  %v9421_v57 = vld [vmem:[%s11641_s14 + $0x2a8] sm:$0xff]  }
 0x95c   :  { %8305 = vmatpush3.bf16.msra.mxu1 %v9399_v16  ;;  %6064 = vmatprep.mubr.bf16.mxu1 %v11121_v28  ;;  %v9404_v28 = vld [vmem:[%s11641_s14 + $0x268] sm:$0xff]   ;;  %v6155_v16 = vrot.slane %v6153_v44, 4 }
 0x95d   :  { %8306 = vmatprep.subr.bf16.mxu1 %v9400_v31  ;;  %v6182_v40 = vsel %vm6148_vm7, %v6173_v30, %v11189_v55  ;;  %v9410_v31 = vld [vmem:[%s11641_s14 + $0x2c0] sm:$0xff]   ;;  %v9412_v55 = vld [vmem:[%s11641_s14 + $0x2c8] sm:$0xff]   ;;  %v9474_v30 = vld [vmem:[#allocation4 + $0x28] sm:$0xff] }
 0x960   :  { %8307 = vmatpush3.bf16.msra.mxu1 %v9401_v11  ;;  %v6156_v11 = vor.u32 %v6155_v16, %v6152_v18  ;;  %v9428_v18 = vld [vmem:[%s11641_s14 + $0x348] sm:$0xff]  }
 0x961   :  { %8308 = vmatprep.subr.bf16.mxu1 %v9402_v26  ;;  %v9413_v26 = vld [vmem:[%s11641_s14 + $0x288] sm:$0xff]  }
 0x962   :  { %v6165_v17 = vsel %vm6148_vm7, %v6156_v11, %v11196_v0  ;;  %v9416_v0 = vld [vmem:[%s11641_s14 + $0x2d8] sm:$0xff]   ;;  %v9429_v16 = vld [vmem:[%s11641_s14 + $0x308] sm:$0xff]  }
 0x963   :  { %6065 = vmatmul.mubr.bf16.gmra.mrb[120].mxu1 %v11129_v22  ;;  %v9407_v22 = vld [vmem:[%s11641_s14 + $0x230] sm:$0xff]   ;;  %v9432_v11 = vld [vmem:[%s11641_s14 + $0x358] sm:$0xff]  }
 0x964   :  { %8309 = vmatpush3.bf16.msra.mxu1 %v9403_v48  ;;  %6072 = vmatprep.mubr.bf16.mxu1 %v11654_v60  ;;  %v6105_v48 = vld [vmem:[#allocation4 + $0x88] sm:$0x1]  ;;  %v6104_v60 = vld [vmem:[#allocation4 + $0x80] sm:$0x1] }
 0x965   :  { %8310 = vmatprep.subr.bf16.mxu1 %v9404_v28  ;;  %v9415_v28 = vld [vmem:[%s11641_s14 + $0x290] sm:$0xff]  }
 0x968   :  { %8311 = vmatpush3.bf16.msra.mxu1 %v9405_v32  ;;  %v9419_v32 = vld [vmem:[%s11641_s14 + $0x2a0] sm:$0xff]  }
 0x969   :  { %8312 = vmatprep.subr.bf16.mxu1 %v9406_v47 }
 0x96b   :  { %6073 = vmatmul.mubr.bf16.gmra.mrb[124].mxu1 %v11655_v23  ;;  %v9425_v23 = vld [vmem:[%s11641_s14 + $0x2b8] sm:$0xff]  }
 0x96c   :  { %8313 = vmatpush3.bf16.msra.mxu1 %v9407_v22  ;;  %6365 = vmatprep.mubr.bf16.mxu1 %v6182_v40  ;;  %v9422_v22 = vld [vmem:[%s11641_s14 + $0x2f0] sm:$0xff]   ;;  %v9426_v40 = vld [vmem:[%s11641_s14 + $0x340] sm:$0xff]  }
 0x96d   :  { %8314 = vmatprep.subr.bf16.mxu1 %v9408_v13  ;;  %v6407_v13 = vpack.c.bf16 %v9474_v30, %v11358_v15 }
 0x970   :  { %8315 = vmatpush3.bf16.msra.mxu1 %v9409_v14  ;;  %v9475_v14 = vld [vmem:[#allocation4 + $0x20] sm:$0xff] }
 0x971   :  { %8340 = vmatprep.subr.bf16.mxu1 %v9410_v31  ;;  %v6406_v15 = vpack.c.bf16 %v9475_v14, %v11375_v38  ;;  %v9430_v31 = vld [vmem:[%s11641_s14 + $0x350] sm:$0xff]  }
 0x972   :  { %v9431_v38 = vld [vmem:[%s11641_s14 + $0x310] sm:$0xff]  }
 0x973   :  { %6366 = vmatmul.mubr.bf16.vlgmr.msra.gmra.mrb[128].mxu1 %v6165_v17  ;;  %v6405_v17 = vld [vmem:[#allocation4 + $0x88] sm:$0x3] }
 0x974   :  { %8341 = vmatpush3.bf16.msra.mxu1 %v9411_v20  ;;  %6373 = vmatprep.mubr.bf16.mxu1 %v11200_v9  ;;  %v6115_v9 = vpack.c.bf16 %v6105_v48, %v6105_v48  ;;  %v9433_v20 = vld [vmem:[%s11641_s14 + $0x318] sm:$0xff]   ;;  %v6413_v48 = vpack.c.bf16 %v6405_v17, %v10961_v53 }
 0x975   :  { %8342 = vmatprep.subr.bf16.mxu1 %v9412_v55  ;;  %v9434_v55 = vld [vmem:[%s11641_s14 + $0x360] sm:$0xff]  }
 0x976   :  { %v6225_v59 = vshll.u32 %v6115_v9, 16  ;;  %v9438_v9 = vld [vmem:[%s11641_s14 + $0x370] sm:$0xff]  }
 0x978   :  { %8343 = vmatpush3.bf16.msra.mxu1 %v9413_v26  ;;  %v6227_v43 = vrot.slane %v6225_v59, 4  ;;  %v9435_v26 = vld [vmem:[%s11641_s14 + $0x320] sm:$0xff]   ;;  %v6666_v59 = vrot.slane %v10855_v34, 2 }
 0x979   :  { %8344 = vmatprep.subr.bf16.mxu1 %v9414_v62  ;;  %v9436_v62 = vld [vmem:[%s11641_s14 + $0x368] sm:$0xff]  }
 0x97a   :  { %v6228_v47 = vsel %vm6148_vm7, %v11208_v4, %v6227_v43  ;;  %v9424_v4 = vld [vmem:[%s11641_s14 + $0x2f8] sm:$0xff]  }
 0x97b   :  { %6374 = vmatmul.mubr.bf16.gmra.mrb[132].mxu1 %v11206_v50  ;;  %v6114_v50 = vpack.c.bf16 %v6104_v60, %v6104_v60  ;;  %v9439_v60 = vld [vmem:[%s11641_s14 + $0x330] sm:$0xff]   ;;  %v9440_v43 = vld [vmem:[%s11641_s14 + $0x378] sm:$0xff]  }
 0x97c   :  { %8345 = vmatpush3.bf16.msra.mxu1 %v9415_v28  ;;  %6380 = vmatprep.mubr.bf16.mxu1 %v11221_v24  ;;  %v9420_v24 = vld [vmem:[%s11641_s14 + $0x2e8] sm:$0xff]  }
 0x97d   :  { %8346 = vmatprep.subr.bf16.mxu1 %v9416_v0  ;;  %v6220_v19 = vshll.u32 %v6114_v50, 16  ;;  %v6614_v28 = vld [vmem:[#allocation4 + $0x18] sm:$0xf0] }
 0x97e   :  { %v9437_v0 = vld [vmem:[%s11641_s14 + $0x328] sm:$0xff]  }
 0x97f   :  { %v6222_v10 = vrot.slane %v6220_v19, 4  ;;  %v6663_v19 = vrot.slane %v10857_v35, 2 }
 0x980   :  { %8347 = vmatpush3.bf16.msra.mxu1 %v9417_v33  ;;  %v6618_v33 = vpack.c.bf16 %v9474_v30, %v6614_v28 }
 0x981   :  { %8348 = vmatprep.subr.bf16.mxu1 %v9418_v41  ;;  %v6223_v44 = vsel %vm6148_vm7, %v11213_v39, %v6222_v10  ;;  %v9427_v39 = vld [vmem:[%s11641_s14 + $0x300] sm:$0xff]   ;;  %v6404_v41 = vld [vmem:[#allocation4 + $0x80] sm:$0x3] }
 0x982   :  { %v6665_v50 = vrot.slane %v6618_v33, 2 }
 0x983   :  { %6381 = vmatmul.mubr.bf16.gmra.mrb[136].mxu1 %v11225_v63  ;;  %v9423_v63 = vld [vmem:[%s11641_s14 + $0x2b0] sm:$0xff]  }
 0x984   :  { %8349 = vmatpush3.bf16.msra.mxu1 %v9419_v32  ;;  %6388 = vmatprep.mubr.bf16.mxu1 %v6228_v47  ;;  %v6412_v32 = vpack.c.bf16 %v6404_v41, %v10982_v3  ;;  %v6667_v47 = vsel %vm6661_vm8, %v6665_v50, %v6666_v59 }
 0x985   :  { %8350 = vmatprep.subr.bf16.mxu1 %v9420_v24  ;;  %v6613_v24 = vld [vmem:[#allocation4 + $0x10] sm:$0xf0] }
 0x988   :  { %8351 = vmatpush3.bf16.msra.mxu1 %v9421_v57  ;;  %v6617_v57 = vpack.c.bf16 %v9475_v14, %v6613_v24 }
 0x989   :  { %8352 = vmatprep.subr.bf16.mxu1 %v9422_v22  ;;  %v6670_v22 = vrot.slane %v10935_v37, 2 }
 0x98a   :  { %v6662_v10 = vrot.slane %v6617_v57, 2 }
 0x98b   :  { %6389 = vmatmul.mubr.bf16.gmra.mrb[140].mxu1 %v6223_v44  ;;  %v6671_v30 = vsel %vm6661_vm8, %v6666_v59, %v6670_v22 }
 0x98c   :  { %8353 = vmatpush3.bf16.msra.mxu1 %v9423_v63  ;;  %6574 = vmatprep.mubr.bf16.mxu1 %v6407_v13  ;;  %v6616_v63 = vld [vmem:[#allocation4 + $0x88] sm:$0x3f]  ;;  %v6664_v44 = vsel %vm6661_vm8, %v6662_v10, %v6663_v19 }
 0x98d   :  { %8354 = vmatprep.subr.bf16.mxu1 %v9424_v4  ;;  %v9476_v4 = vld [vmem:[%s11641_s14 + $0x440] sm:$0xff]   ;;  %v6620_v13 = vpack.c.bf16 %v6616_v63, %v10961_v53 }
 0x990   :  { %8355 = vmatpush3.bf16.msra.mxu1 %v9425_v23  ;;  %v6615_v23 = vld [vmem:[#allocation4 + $0x80] sm:$0x3f] }
 0x991   :  { %8380 = vmatprep.subr.bf16.mxu1 %v9426_v40 }
 0x993   :  { %6575 = vmatmul.mubr.bf16.vlgmr.msra.gmra.mrb[144].mxu1 %v6406_v15 }
 0x994   :  { %8381 = vmatpush3.bf16.msra.mxu1 %v9427_v39  ;;  %6582 = vmatprep.mubr.bf16.mxu1 %v10855_v34  ;;  %v9441_v34 = vld [vmem:[%s11641_s14 + $0x338] sm:$0xff]   ;;  %v6619_v39 = vpack.c.bf16 %v6615_v23, %v10982_v3 }
 0x995   :  { %8382 = vmatprep.subr.bf16.mxu1 %v9428_v18 }
 0x998   :  { %8383 = vmatpush3.bf16.msra.mxu1 %v9429_v16 }
 0x999   :  { %8384 = vmatprep.subr.bf16.mxu1 %v9430_v31 }
 0x99b   :  { %6583 = vmatmul.mubr.bf16.gmra.mrb[148].mxu1 %v10857_v35  ;;  %v6668_v35 = vrot.slane %v10950_v21, 2 }
 0x99c   :  { %8385 = vmatpush3.bf16.msra.mxu1 %v9431_v38  ;;  %6589 = vmatprep.mubr.bf16.mxu1 %v10935_v37  ;;  %v6674_v37 = vrot.slane %v6620_v13, 2 }
 0x99d   :  { %8386 = vmatprep.subr.bf16.mxu1 %v9432_v11  ;;  %v6669_v40 = vsel %vm6661_vm8, %v6663_v19, %v6668_v35 }
 0x99e   :  { %v6675_v53 = vsel %vm6661_vm8, %v6670_v22, %v6674_v37 }
 0x9a0   :  { %8387 = vmatpush3.bf16.msra.mxu1 %v9433_v20 }
 0x9a1   :  { %8388 = vmatprep.subr.bf16.mxu1 %v9434_v55 }
 0x9a3   :  { %6590 = vmatmul.mubr.bf16.gmra.mrb[152].mxu1 %v10950_v21 }
 0x9a4   :  { %8389 = vmatpush3.bf16.msra.mxu1 %v9435_v26  ;;  %6597 = vmatprep.mubr.bf16.mxu1 %v6413_v48 }
 0x9a5   :  { %8390 = vmatprep.subr.bf16.mxu1 %v9436_v62 }
 0x9a8   :  { %8391 = vmatpush3.bf16.msra.mxu1 %v9437_v0 }
 0x9a9   :  { %8392 = vmatprep.subr.bf16.mxu1 %v9438_v9 }
 0x9ab   :  { %6598 = vmatmul.mubr.bf16.gmra.mrb[156].mxu1 %v6412_v32 }
 0x9ac   :  { %8393 = vmatpush3.bf16.msra.mxu1 %v9439_v60  ;;  %6812 = vmatprep.mubr.bf16.mxu1 %v6667_v47 }
 0x9ad   :  { %8394 = vmatprep.subr.bf16.mxu1 %v9440_v43 }
 0x9b0   :  { %8395 = vmatpush3.bf16.msra.mxu1 %v9441_v34 }
 0x9b1   :  { %8644 = vmatprep.subr.bf16.mxu1 %v9476_v4 }
 0x9b3   :  { %6813 = vmatmul.mubr.bf16.vlgmr.msra.gmra.mrb[160].mxu1 %v6664_v44 }
 0x9b4   :  { %8652 = vmatpush3.bf16.msra.mxu1 %v10909_v29  ;;  %6820 = vmatprep.mubr.bf16.mxu1 %v6671_v30  ;;  %v6672_v29 = vrot.slane %v6619_v39, 2 }
 0x9b5   :  { %8645 = vmatprep.subr.bf16.mxu1 %v10914_v46 }
 0x9b6   :  { %v6673_v46 = vsel %vm6661_vm8, %v6668_v35, %v6672_v29 }
 0x9b8   :  { %8653 = vmatpush3.bf16.msra.mxu1 %v10946_v61 }
 0x9b9   :  { %8646 = vmatprep.subr.bf16.mxu1 %v10959_v52 }
 0x9bb   :  { %6821 = vmatmul.mubr.bf16.gmra.mrb[164].mxu1 %v6669_v40 }
 0x9bc   :  { %8654 = vmatpush3.bf16.msra.mxu1 %v10980_v56  ;;  %6827 = vmatprep.mubr.bf16.mxu1 %v6675_v53 }
 0x9bd   :  { %8647 = vmatprep.subr.bf16.mxu1 %v11007_v42 }
 0x9c0   :  { %8655 = vmatpush3.bf16.msra.mxu1 %v11012_v1 }
 0x9c1   :  { %8648 = vmatprep.subr.bf16.mxu1 %v11022_v6 }
 0x9c3   :  { %6828 = vmatmul.mubr.bf16.gmra.mrb[168].mxu1 %v6673_v46 }
 0x9c4   :  { %8656 = vmatpush3.bf16.msra.mxu1 %v11051_v58  ;;  %6835 = vmatprep.mubr.bf16.mxu1 %v6674_v37 }
 0x9c5   :  { %8649 = vmatprep.subr.bf16.mxu1 %v11065_v45 }
 0x9c6   :  { %v8156_v61 = vpop.f32.mrb[64].mxu1 }
 0x9c7   :  { %v8157_v21 = vpop.f32.mrb[65].mxu1 }
 0x9c8   :  { %v8158_v52 = vadd.f32 %v8157_v21, %v8156_v61  ;;  %8657 = vmatpush3.bf16.msra.mxu1 %v11094_v51  ;;  %v8159_v56 = vpop.f32.mrb[66].mxu1 }
 0x9c9   :  { %v8160_v3 = vpop.f32.mrb[67].mxu1  ;;  %8650 = vmatprep.subr.bf16.mxu1 %v11111_v12 }
 0x9ca   :  { %v8161_v42 = vadd.f32 %v8160_v3, %v8159_v56 }
 0x9cb   :  { %6836 = vmatmul.mubr.bf16.gmra.mrb[172].mxu1 %v6672_v29 }
 0x9cc   :  { %v8436_v1 = vpop.f32.mrb[52].mxu0  ;;  %8658 = vmatpush3.bf16.msra.mxu1 %v11136_v25  ;;  %7339 = vmatprep.mubr.bf16.mxu1 %v11239_v5 }
 0x9cd   :  { %v8437_v6 = vpop.f32.mrb[53].mxu0  ;;  %8651 = vmatprep.subr.bf16.mxu1 %v11145_v8 }
 0x9ce   :  { %v11544_v58 = vadd.f32 %v8437_v6, %v8436_v1  ;;  %v8439_v45 = vpop.f32.mrb[54].mxu0  ;;  %v8162_v14 = vpop.f32.mrb[68].mxu1 }
 0x9cf   :  { %v8440_v15 = vpop.f32.mrb[55].mxu0  ;;  %v8163_v51 = vpop.f32.mrb[69].mxu1 }
 0x9d0   :  { %v11546_v18 = vadd.f32 %v8440_v15, %v8439_v45  ;;  %v8164_v16 = vadd.f32 %v8163_v51, %v8162_v14  ;;  %8659 = vmatpush3.bf16.msra.mxu1 %v11165_v49  ;;  %v8165_v12 = vpop.f32.mrb[70].mxu1 }
 0x9d1   :  { %v8166_v31 = vpop.f32.mrb[71].mxu1 }
 0x9d3   :  { %7340 = vmatmul.mubr.bf16.vlgmr.msra.gmra.mrb[176].mxu1 %v11243_v27 }
 0x9d4   :  { %7346 = vmatprep.mubr.bf16.mxu1 %v11261_v36 }
 0x9d6   :  { %v8168_v25 = vpop.f32.mrb[72].mxu1  ;;  %v8442_v5 = vpop.f32.mrb[56].mxu0 }
 0x9d7   :  { %v8169_v8 = vpop.f32.mrb[73].mxu1  ;;  %v8443_v38 = vpop.f32.mrb[57].mxu0 }
 0x9d8   :  { %v8170_v11 = vadd.f32 %v8169_v8, %v8168_v25  ;;  %v11551_v20 = vadd.f32 %v8443_v38, %v8442_v5  ;;  %v8171_v55 = vpop.f32.mrb[74].mxu1  ;;  %v8445_v17 = vpop.f32.mrb[58].mxu0 }
 0x9d9   :  { %v8172_v26 = vpop.f32.mrb[75].mxu1  ;;  %v8446_v62 = vpop.f32.mrb[59].mxu0 }
 0x9da   :  { %v8173_v48 = vadd.f32 %v8172_v26, %v8171_v55 }
 0x9db   :  { %7347 = vmatmul.mubr.bf16.gmra.mrb[180].mxu1 %v11265_v7 }
 0x9dc   :  { %7354 = vmatprep.mubr.bf16.mxu1 %v11254_v2 }
 0x9de   :  { %v8174_v49 = vpop.f32.mrb[76].mxu1  ;;  %v8448_v27 = vpop.f32.mrb[60].mxu0 }
 0x9df   :  { %v8175_v28 = vpop.f32.mrb[77].mxu1  ;;  %v8449_v36 = vpop.f32.mrb[61].mxu0 }
 0x9e0   :  { %v8176_v0 = vadd.f32 %v8175_v28, %v8174_v49  ;;  %v11555_v9 = vadd.f32 %v8449_v36, %v8448_v27  ;;  %v8177_v33 = vpop.f32.mrb[78].mxu1  ;;  %v8451_v41 = vpop.f32.mrb[62].mxu0 }
 0x9e1   :  { %v8178_v59 = vpop.f32.mrb[79].mxu1  ;;  %v8452_v60 = vpop.f32.mrb[63].mxu0 }
 0x9e2   :  { %v8179_v32 = vadd.f32 %v8178_v59, %v8177_v33  ;;  %v11557_v50 = vadd.f32 %v8452_v60, %v8451_v41 }
 0x9e3   :  { %7355 = vmatmul.mubr.bf16.gmra.mrb[184].mxu1 %v11256_v54 }
 0x9e6   :  { %v8196_v43 = vpop.f32.mrb[80].mxu1  ;;  %v8454_v7 = vpop.f32.mrb[64].mxu0 }
 0x9e7   :  { %v8197_v24 = vpop.f32.mrb[81].mxu1  ;;  %v8455_v2 = vpop.f32.mrb[65].mxu0 }
 0x9e8   :  { %v8198_v47 = vadd.f32 %v8197_v24, %v8196_v43  ;;  %v11560_v34 = vadd.f32 %v8455_v2, %v8454_v7  ;;  %v8199_v57 = vpop.f32.mrb[82].mxu1  ;;  %v8457_v19 = vpop.f32.mrb[66].mxu0 }
 0x9e9   :  { %v8200_v22 = vpop.f32.mrb[83].mxu1  ;;  %v8458_v10 = vpop.f32.mrb[67].mxu0 }
 0x9ea   :  { %v5587_v63 = vadd.f32 %v8198_v47, %v8158_v52  ;;  %v8201_v4 = vadd.f32 %v8200_v22, %v8199_v57  ;;  %v11562_v44 = vadd.f32 %v8458_v10, %v8457_v19 }
 0x9ec   :  { %v5590_v30 = vadd.f32 %v8201_v4, %v8161_v42 }
 0x9ee   :  { %v8202_v13 = vpop.f32.mrb[84].mxu1 }
 0x9ef   :  { %v8476_v35 = vpop.f32.mrb[68].mxu0  ;;  %v8203_v37 = vpop.f32.mrb[85].mxu1 }
 0x9f0   :  { %v8204_v54 = vadd.f32 %v8203_v37, %v8202_v13  ;;  %v8477_v23 = vpop.f32.mrb[69].mxu0  ;;  %v8205_v40 = vpop.f32.mrb[86].mxu1 }
 0x9f1   :  { %v11564_v39 = vadd.f32 %v8477_v23, %v8476_v35  ;;  %v8479_v53 = vpop.f32.mrb[70].mxu0  ;;  %v8206_v29 = vpop.f32.mrb[87].mxu1 }
 0x9f2   :  { %v5595_v46 = vadd.f32 %v8204_v54, %v8164_v16  ;;  %v8480_v61 = vpop.f32.mrb[71].mxu0 }
 0x9f3   :  { %v11566_v21 = vadd.f32 %v8480_v61, %v8479_v53 }
 0x9f6   :  { %v8208_v56 = vpop.f32.mrb[88].mxu1 }
 0x9f7   :  { %v8209_v52 = vpop.f32.mrb[89].mxu1 }
 0x9f8   :  { %v8210_v3 = vadd.f32 %v8209_v52, %v8208_v56  ;;  %v8211_v1 = vpop.f32.mrb[90].mxu1 }
 0x9f9   :  { %v8212_v6 = vpop.f32.mrb[91].mxu1 }
 0x9fa   :  { %v5602_v42 = vadd.f32 %v8210_v3, %v8170_v11  ;;  %v8213_v45 = vadd.f32 %v8212_v6, %v8211_v1 }
 0x9fc   :  { %v5605_v14 = vadd.f32 %v8213_v45, %v8173_v48 }
 0x9fe   :  { %v8214_v15 = vpop.f32.mrb[92].mxu1 }
 0x9ff   :  { %v8215_v51 = vpop.f32.mrb[93].mxu1 }
 0xa00   :  { %v8216_v12 = vadd.f32 %v8215_v51, %v8214_v15  ;;  %v8217_v31 = vpop.f32.mrb[94].mxu1 }
 0xa01   :  { %v8218_v25 = vpop.f32.mrb[95].mxu1 }
 0xa02   :  { %v5610_v5 = vadd.f32 %v8216_v12, %v8176_v0  ;;  %v8219_v8 = vadd.f32 %v8218_v25, %v8217_v31 }
 0xa04   :  { %v5613_v38 = vadd.f32 %v8219_v8, %v8179_v32 }
 0xa06   :  { %v8236_v16 = vpop.f32.mrb[96].mxu1 }
 0xa07   :  { %v8237_v55 = vpop.f32.mrb[97].mxu1 }
 0xa08   :  { %v8238_v17 = vadd.f32 %v8237_v55, %v8236_v16  ;;  %v8239_v26 = vpop.f32.mrb[98].mxu1 }
 0xa09   :  { %v8240_v62 = vpop.f32.mrb[99].mxu1 }
 0xa0a   :  { %v5847_v49 = vadd.f32 %v8238_v17, %v5587_v63  ;;  %v8241_v27 = vadd.f32 %v8240_v62, %v8239_v26 }
 0xa0c   :  { %v5848_v28 = vadd.f32 %v8241_v27, %v5590_v30 }
 0xa0e   :  { %v8242_v36 = vpop.f32.mrb[100].mxu1 }
 0xa0f   :  { %v8243_v11 = vpop.f32.mrb[101].mxu1 }
 0xa10   :  { %v8244_v33 = vadd.f32 %v8243_v11, %v8242_v36  ;;  %v8245_v48 = vpop.f32.mrb[102].mxu1 }
 0xa11   :  { %v8246_v41 = vpop.f32.mrb[103].mxu1 }
 0xa12   :  { %v5849_v59 = vadd.f32 %v8244_v33, %v5595_v46 }
 0xa16   :  { %v8248_v60 = vpop.f32.mrb[104].mxu1 }
 0xa17   :  { %v8249_v43 = vpop.f32.mrb[105].mxu1 }
 0xa18   :  { %v8250_v7 = vadd.f32 %v8249_v43, %v8248_v60  ;;  %v8251_v0 = vpop.f32.mrb[106].mxu1 }
 0xa19   :  { %v8252_v24 = vpop.f32.mrb[107].mxu1 }
 0xa1a   :  { %v5850_v32 = vadd.f32 %v8250_v7, %v5602_v42  ;;  %v8253_v2 = vadd.f32 %v8252_v24, %v8251_v0 }
 0xa1c   :  { %v5851_v47 = vadd.f32 %v8253_v2, %v5605_v14 }
 0xa1e   :  { %v8254_v57 = vpop.f32.mrb[108].mxu1 }
 0xa1f   :  { %v8255_v19 = vpop.f32.mrb[109].mxu1 }
 0xa20   :  { %v8256_v22 = vadd.f32 %v8255_v19, %v8254_v57  ;;  %v8257_v10 = vpop.f32.mrb[110].mxu1 }
 0xa21   :  { %v8258_v63 = vpop.f32.mrb[111].mxu1 }
 0xa22   :  { %v5852_v4 = vadd.f32 %v8256_v22, %v5610_v5  ;;  %v8259_v30 = vadd.f32 %v8258_v63, %v8257_v10 }
 0xa24   :  { %v5853_v13 = vadd.f32 %v8259_v30, %v5613_v38 }
 0xa26   :  { %v8276_v35 = vpop.f32.mrb[112].mxu1 }
 0xa27   :  { %v8277_v37 = vpop.f32.mrb[113].mxu1 }
 0xa28   :  { %v8278_v54 = vadd.f32 %v8277_v37, %v8276_v35  ;;  %v8279_v23 = vpop.f32.mrb[114].mxu1 }
 0xa29   :  { %v8280_v40 = vpop.f32.mrb[115].mxu1 }
 0xa2a   :  { %v6081_v53 = vadd.f32 %v8278_v54, %v5847_v49  ;;  %v8281_v29 = vadd.f32 %v8280_v40, %v8279_v23 }
 0xa2c   :  { %v6082_v46 = vadd.f32 %v8281_v29, %v5848_v28 }
 0xa2e   :  { %v8282_v61 = vpop.f32.mrb[116].mxu1 }
 0xa2f   :  { %v8283_v56 = vpop.f32.mrb[117].mxu1 }
 0xa30   :  { %v8284_v52 = vadd.f32 %v8283_v56, %v8282_v61  ;;  %v8285_v3 = vpop.f32.mrb[118].mxu1 }
 0xa31   :  { %v8286_v1 = vpop.f32.mrb[119].mxu1 }
 0xa32   :  { %v6083_v6 = vadd.f32 %v8284_v52, %v5849_v59 }
 0xa36   :  { %v8288_v42 = vpop.f32.mrb[120].mxu1 }
 0xa37   :  { %v8289_v45 = vpop.f32.mrb[121].mxu1 }
 0xa38   :  { %v8290_v14 = vadd.f32 %v8289_v45, %v8288_v42  ;;  %v8291_v15 = vpop.f32.mrb[122].mxu1 }
 0xa39   :  { %v8292_v51 = vpop.f32.mrb[123].mxu1 }
 0xa3a   :  { %v6084_v12 = vadd.f32 %v8290_v14, %v5850_v32  ;;  %v8293_v31 = vadd.f32 %v8292_v51, %v8291_v15 }
 0xa3c   :  { %v6085_v25 = vadd.f32 %v8293_v31, %v5851_v47 }
 0xa3e   :  { %v8294_v5 = vpop.f32.mrb[124].mxu1 }
 0xa3f   :  { %v8295_v8 = vpop.f32.mrb[125].mxu1 }
 0xa40   :  { %v8296_v38 = vadd.f32 %v8295_v8, %v8294_v5  ;;  %v8297_v16 = vpop.f32.mrb[126].mxu1 }
 0xa41   :  { %v8298_v55 = vpop.f32.mrb[127].mxu1 }
 0xa42   :  { %v6086_v17 = vadd.f32 %v8296_v38, %v5852_v4  ;;  %v8299_v26 = vadd.f32 %v8298_v55, %v8297_v16 }
 0xa44   :  { %v6087_v62 = vadd.f32 %v8299_v26, %v5853_v13 }
 0xa46   :  { %v8316_v49 = vpop.f32.mrb[128].mxu1 }
 0xa47   :  { %v8317_v27 = vpop.f32.mrb[129].mxu1 }
 0xa48   :  { %v8318_v28 = vadd.f32 %v8317_v27, %v8316_v49  ;;  %v8319_v36 = vpop.f32.mrb[130].mxu1 }
 0xa49   :  { %v8320_v11 = vpop.f32.mrb[131].mxu1 }
 0xa4a   :  { %v6397_v33 = vadd.f32 %v8318_v28, %v6081_v53  ;;  %v8321_v48 = vadd.f32 %v8320_v11, %v8319_v36 }
 0xa4c   :  { %v6398_v41 = vadd.f32 %v8321_v48, %v6082_v46 }
 0xa4e   :  { %v8322_v59 = vpop.f32.mrb[132].mxu1 }
 0xa4f   :  { %v8323_v60 = vpop.f32.mrb[133].mxu1 }
 0xa50   :  { %v8324_v43 = vadd.f32 %v8323_v60, %v8322_v59  ;;  %v8325_v7 = vpop.f32.mrb[134].mxu1 }
 0xa51   :  { %v8326_v0 = vpop.f32.mrb[135].mxu1 }
 0xa52   :  { %v6399_v24 = vadd.f32 %v8324_v43, %v6083_v6 }
 0xa56   :  { %v8328_v32 = vpop.f32.mrb[136].mxu1 }
 0xa57   :  { %v8329_v2 = vpop.f32.mrb[137].mxu1 }
 0xa58   :  { %v8330_v47 = vadd.f32 %v8329_v2, %v8328_v32  ;;  %v8331_v57 = vpop.f32.mrb[138].mxu1  ;;  %v11572_v32 = vld [vmem:[%s11642_s15] ss:$0 sm:$0xff] }
 0xa59   :  { %v8332_v19 = vpop.f32.mrb[139].mxu1 }
 0xa5a   :  { %v6400_v22 = vadd.f32 %v8330_v47, %v6084_v12  ;;  %v8333_v10 = vadd.f32 %v8332_v19, %v8331_v57 }
 0xa5c   :  { %v6401_v63 = vadd.f32 %v8333_v10, %v6085_v25 }
 0xa5e   :  { %v8334_v4 = vpop.f32.mrb[140].mxu1 }
 0xa5f   :  { %v8335_v30 = vpop.f32.mrb[141].mxu1 }
 0xa60   :  { %v8336_v13 = vadd.f32 %v8335_v30, %v8334_v4  ;;  %v8337_v35 = vpop.f32.mrb[142].mxu1 }
 0xa61   :  { %v8338_v37 = vpop.f32.mrb[143].mxu1 }
 0xa62   :  { %v6402_v54 = vadd.f32 %v8336_v13, %v6086_v17  ;;  %v8339_v23 = vadd.f32 %v8338_v37, %v8337_v35 }
 0xa64   :  { %v6403_v40 = vadd.f32 %v8339_v23, %v6087_v62 }
 0xa66   :  { %v8356_v53 = vpop.f32.mrb[144].mxu1 }
 0xa67   :  { %v8357_v29 = vpop.f32.mrb[145].mxu1 }
 0xa68   :  { %v8358_v46 = vadd.f32 %v8357_v29, %v8356_v53  ;;  %v8359_v61 = vpop.f32.mrb[146].mxu1 }
 0xa69   :  { %v8360_v56 = vpop.f32.mrb[147].mxu1 }
 0xa6a   :  { %v6606_v52 = vadd.f32 %v8358_v46, %v6397_v33  ;;  %v8361_v3 = vadd.f32 %v8360_v56, %v8359_v61 }
 0xa6c   :  { %v6607_v1 = vadd.f32 %v8361_v3, %v6398_v41 }
 0xa6e   :  { %v8362_v6 = vpop.f32.mrb[148].mxu1 }
 0xa6f   :  { %v8363_v42 = vpop.f32.mrb[149].mxu1 }
 0xa70   :  { %v8364_v45 = vadd.f32 %v8363_v42, %v8362_v6  ;;  %v8365_v14 = vpop.f32.mrb[150].mxu1 }
 0xa71   :  { %v8366_v15 = vpop.f32.mrb[151].mxu1 }
 0xa72   :  { %v6608_v51 = vadd.f32 %v8364_v45, %v6399_v24 }
 0xa76   :  { %v8368_v12 = vpop.f32.mrb[152].mxu1 }
 0xa77   :  { %v8369_v31 = vpop.f32.mrb[153].mxu1 }
 0xa78   :  { %v8370_v25 = vadd.f32 %v8369_v31, %v8368_v12  ;;  %v8371_v5 = vpop.f32.mrb[154].mxu1 }
 0xa79   :  { %v8372_v8 = vpop.f32.mrb[155].mxu1 }
 0xa7a   :  { %v6609_v38 = vadd.f32 %v8370_v25, %v6400_v22  ;;  %v8373_v16 = vadd.f32 %v8372_v8, %v8371_v5 }
 0xa7c   :  { %v6610_v55 = vadd.f32 %v8373_v16, %v6401_v63 }
 0xa7e   :  { %v8374_v17 = vpop.f32.mrb[156].mxu1 }
 0xa7f   :  { %v8375_v26 = vpop.f32.mrb[157].mxu1 }
 0xa80   :  { %v8376_v62 = vadd.f32 %v8375_v26, %v8374_v17  ;;  %v8377_v49 = vpop.f32.mrb[158].mxu1 }
 0xa81   :  { %v8378_v27 = vpop.f32.mrb[159].mxu1 }
 0xa82   :  { %v6611_v28 = vadd.f32 %v8376_v62, %v6402_v54  ;;  %v8379_v36 = vadd.f32 %v8378_v27, %v8377_v49 }
 0xa84   :  { %v6612_v11 = vadd.f32 %v8379_v36, %v6403_v40 }
 0xa86   :  { %v8396_v33 = vpop.f32.mrb[160].mxu1 }
 0xa87   :  { %v8397_v48 = vpop.f32.mrb[161].mxu1 }
 0xa88   :  { %v8398_v41 = vadd.f32 %v8397_v48, %v8396_v33  ;;  %v8399_v59 = vpop.f32.mrb[162].mxu1 }
 0xa89   :  { %v8400_v60 = vpop.f32.mrb[163].mxu1 }
 0xa8a   :  { %v6844_v43 = vadd.f32 %v8398_v41, %v6606_v52  ;;  %v8401_v7 = vadd.f32 %v8400_v60, %v8399_v59 }
 0xa8c   :  { %v7130_v0 = vadd.f32 %v11544_v58, %v6844_v43  ;;  %v6845_v24 = vadd.f32 %v8401_v7, %v6607_v1 }
 0xa8e   :  { %v7363_v2 = vadd.f32 %v11564_v39, %v7130_v0  ;;  %v7131_v47 = vadd.f32 %v11546_v18, %v6845_v24  ;;  %v8402_v57 = vpop.f32.mrb[164].mxu1 }
 0xa8f   :  { %v8403_v19 = vpop.f32.mrb[165].mxu1 }
 0xa90   :  { %v7377_v22 = vadd.f32 %v11572_v32, %v7363_v2  ;;  %v7364_v10 = vadd.f32 %v11566_v21, %v7131_v47  ;;  %v8404_v63 = vadd.f32 %v8403_v19, %v8402_v57  ;;  %v8405_v4 = vpop.f32.mrb[166].mxu1 }
 0xa91   :  { %v8406_v30 = vpop.f32.mrb[167].mxu1 }
 0xa92   :  { %v8039_v58 = vmul.f32 -1.442695, %v7377_v22  ;;  %v7378_v13 = vadd.f32 %v11572_v32, %v7364_v10  ;;  %v6846_v35 = vadd.f32 %v8404_v63, %v6608_v51 }
 0xa94   :  { %9444 = vpow2.f32 %v8039_v58  ;;  %v8040_v37 = vmul.f32 -1.442695, %v7378_v13  ;;  %v7132_v54 = vadd.f32 %v11551_v20, %v6846_v35 }
 0xa96   :  { %9446 = vpow2.f32 %v8040_v37  ;;  %v8408_v39 = vpop.f32.mrb[168].mxu1 }
 0xa97   :  { %v8409_v18 = vpop.f32.mrb[169].mxu1 }
 0xa98   :  { %v8410_v23 = vadd.f32 %v8409_v18, %v8408_v39  ;;  %v8411_v40 = vpop.f32.mrb[170].mxu1 }
 0xa99   :  { %v8412_v53 = vpop.f32.mrb[171].mxu1 }
 0xa9a   :  { %v6847_v29 = vadd.f32 %v8410_v23, %v6609_v38  ;;  %v8413_v46 = vadd.f32 %v8412_v53, %v8411_v40 }
 0xa9c   :  { %v6848_v21 = vadd.f32 %v8413_v46, %v6610_v55  ;;  %v7133_v61 = vadd.f32 %v11555_v9, %v6847_v29 }
 0xa9e   :  { %v9445_v56 = vpop.eup %9444  ;;  %v8414_v52 = vpop.f32.mrb[172].mxu1  ;;  %v7134_v3 = vadd.f32 %v11557_v50, %v6848_v21 }
 0xa9f   :  { %v7405_v1 = vadd.f32 1.0, %v9445_v56  ;;  %v8415_v6 = vpop.f32.mrb[173].mxu1 }
 0xaa0   :  { %v9447_v42 = vpop.eup %9446  ;;  %v8416_v45 = vadd.f32 %v8415_v6, %v8414_v52  ;;  %v8417_v20 = vpop.f32.mrb[174].mxu1 }
 0xaa1   :  { %9448 = vrcp.f32 %v7405_v1  ;;  %v7406_v14 = vadd.f32 1.0, %v9447_v42  ;;  %v8418_v15 = vpop.f32.mrb[175].mxu1 }
 0xaa2   :  { %v6849_v51 = vadd.f32 %v8416_v45, %v6611_v28  ;;  %v8419_v12 = vadd.f32 %v8418_v15, %v8417_v20 }
 0xaa3   :  { %9450 = vrcp.f32 %v7406_v14 }
 0xaa4   :  { %v6850_v31 = vadd.f32 %v8419_v12, %v6612_v11  ;;  %v7135_v25 = vadd.f32 %v11560_v34, %v6849_v51 }
 0xaa6   :  { %v8482_v5 = vpop.f32.mrb[176].mxu1  ;;  %v7136_v9 = vadd.f32 %v11562_v44, %v6850_v31 }
 0xaa7   :  { %v8483_v8 = vpop.f32.mrb[177].mxu1 }
 0xaa8   :  { %v8484_v38 = vadd.f32 %v8483_v8, %v8482_v5  ;;  %v8485_v50 = vpop.f32.mrb[178].mxu1 }
 0xaa9   :  { %v8486_v16 = vpop.f32.mrb[179].mxu1 }
 0xaaa   :  { %v7365_v55 = vadd.f32 %v8484_v38, %v7132_v54 }
 0xaab   :  { %v9449_v17 = vpop.eup %9448 }
 0xaac   :  { %v7379_v26 = vadd.f32 %v11572_v32, %v7365_v55  ;;  %7427 = vst.msk [vmem:[%s11644_s17] sm:$0xf] %vm7426_vm9, %v9449_v17 }
 0xaad   :  { %7429 = vst.msk [vmem:[%s11644_s17 - $0x2] sm:$0xc0] %vm7428_vm10, %v9449_v17  ;;  %v9451_v34 = vpop.eup %9450 }
 0xaae   :  { %v8041_v44 = vmul.f32 -1.442695, %v7379_v26  ;;  %v8488_v62 = vpop.f32.mrb[180].mxu1  ;;  %7433 = vst.msk [vmem:[%s11644_s17 + $0x4] sm:$0xf0] %vm7432_vm11, %v9451_v34 }
 0xaaf   :  { %7431 = vst.msk [vmem:[%s11644_s17 + $0x6] sm:$0x3] %vm7430_vm12, %v9451_v34  ;;  %v8489_v49 = vpop.f32.mrb[181].mxu1 }
 0xab0   :  { %9452 = vpow2.f32 %v8041_v44  ;;  %v8490_v27 = vadd.f32 %v8489_v49, %v8488_v62  ;;  %v8491_v28 = vpop.f32.mrb[182].mxu1 }
 0xab1   :  { %v8492_v36 = vpop.f32.mrb[183].mxu1 }
 0xab2   :  { %v7366_v11 = vadd.f32 %v8490_v27, %v7133_v61  ;;  %v8493_v33 = vadd.f32 %v8492_v36, %v8491_v28 }
 0xab4   :  { %v7380_v48 = vadd.f32 %v11572_v32, %v7366_v11  ;;  %v7367_v41 = vadd.f32 %v8493_v33, %v7134_v3 }
 0xab6   :  { %v8042_v59 = vmul.f32 -1.442695, %v7380_v48  ;;  %v7381_v60 = vadd.f32 %v11572_v32, %v7367_v41  ;;  %v8494_v43 = vpop.f32.mrb[184].mxu1 }
 0xab7   :  { %v8495_v7 = vpop.f32.mrb[185].mxu1 }
 0xab8   :  { %9454 = vpow2.f32 %v8042_v59  ;;  %v8043_v0 = vmul.f32 -1.442695, %v7381_v60  ;;  %v8496_v24 = vadd.f32 %v8495_v7, %v8494_v43  ;;  %v8497_v2 = vpop.f32.mrb[186].mxu1 }
 0xab9   :  { %v8498_v47 = vpop.f32.mrb[187].mxu1 }
 0xaba   :  { %v9453_v57 = vpop.eup %9452  ;;  %9456 = vpow2.f32 %v8043_v0  ;;  %v7368_v19 = vadd.f32 %v8496_v24, %v7135_v25  ;;  %v8499_v22 = vadd.f32 %v8498_v47, %v8497_v2 }
 0xabb   :  { %v7407_v10 = vadd.f32 1.0, %v9453_v57 }
 0xabc   :  { %v7382_v63 = vadd.f32 %v11572_v32, %v7368_v19  ;;  %v7369_v4 = vadd.f32 %v8499_v22, %v7136_v9 }
 0xabd   :  { %9458 = vrcp.f32 %v7407_v10 }
 0xabe   :  { %v8044_v30 = vmul.f32 -1.442695, %v7382_v63  ;;  %v7383_v58 = vadd.f32 %v11572_v32, %v7369_v4 }
 0xac0   :  { %9460 = vpow2.f32 %v8044_v30  ;;  %v8045_v13 = vmul.f32 -1.442695, %v7383_v58 }
 0xac2   :  { %v9455_v35 = vpop.eup %9454  ;;  %9462 = vpow2.f32 %v8045_v13 }
 0xac3   :  { %v7408_v37 = vadd.f32 1.0, %v9455_v35 }
 0xac4   :  { %v9457_v54 = vpop.eup %9456 }
 0xac5   :  { %9464 = vrcp.f32 %v7408_v37  ;;  %v7409_v39 = vadd.f32 1.0, %v9457_v54 }
 0xac7   :  { %v9459_v18 = vpop.eup %9458  ;;  %9466 = vrcp.f32 %v7409_v39 }
 0xac8   :  { %7435 = vst.msk [vmem:[%s11644_s17 + $0xa] sm:$0x3c] %vm7434_vm13, %v9459_v18 }
 0xaca   :  { %v9461_v23 = vpop.eup %9460 }
 0xacb   :  { %v7410_v40 = vadd.f32 1.0, %v9461_v23 }
 0xacc   :  { %v9463_v53 = vpop.eup %9462 }
 0xacd   :  { %9468 = vrcp.f32 %v7410_v40  ;;  %v7411_v32 = vadd.f32 1.0, %v9463_v53 }
 0xacf   :  { %v9465_v29 = vpop.eup %9464  ;;  %9470 = vrcp.f32 %v7411_v32 }
 0xad0   :  { %7436 = vst.msk [vmem:[%s11644_s17 + $0xc] sm:$0xf0] %vm7432_vm11, %v9465_v29 }
 0xad1   :  { %v9467_v46 = vpop.eup %9466 }
 0xad2   :  { %7437 = vst.msk [vmem:[%s11644_s17 + $0x12] sm:$0x3c] %vm7434_vm13, %v9467_v46 }
 0xad7   :  { %v9469_v21 = vpop.eup %9468 }
 0xad8   :  { %7438 = vst.msk [vmem:[%s11644_s17 + $0x18] sm:$0xf] %vm7426_vm9, %v9469_v21 }
 0xad9   :  { %7439 = vst.msk [vmem:[%s11644_s17 + $0x16] sm:$0xc0] %vm7428_vm10, %v9469_v21  ;;  %v9471_v61 = vpop.eup %9470 }
 0xada   :  { %7440 = vst.msk [vmem:[%s11644_s17 + $0x1e] sm:$0x3] %vm7430_vm12, %v9471_v61 }
 0xadb   :  { %7449 = vsyncpa [#allocation6], 1 }
 0xadc   :  { %7450 = vsyncpa [#allocation8], 1 }

</bundles_post_ra>
